<compile_context>
chip_gen: v5e
topology: v5e:2x2
jax: 0.10.0
libtpu: 0.0.40
codegen_flags: <defaults>
</compile_context>

<pallas_src>
import math
import functools

import jax
import jax.numpy as jnp
from jax import lax
from jax.experimental import pallas as pl
from jax.experimental.pallas import tpu as pltpu


# -----------------------------------------------------------------------------
# Pallas kernel: one full MambaBlock (bidirectional LSTM + fc + residual)
# -----------------------------------------------------------------------------
def mamba_block_kernel(x_ref,            # (T*B, D)  f32   time-major flattened input
                       wih_f_ref,        # (D, 4H)   bf16  forward  LSTM input weights (pre-T)
                       whh_f_ref,        # (H, 4H)   bf16  forward  LSTM hidden weights (pre-T)
                       b_f_ref,          # (1, 4H)   f32   forward  bias (b_ih + b_hh)
                       wih_b_ref,        # (D, 4H)   bf16  backward LSTM input weights
                       whh_b_ref,        # (H, 4H)   bf16  backward LSTM hidden weights
                       b_b_ref,          # (1, 4H)   f32   backward bias
                       wfc_f_ref,        # (H, D)    bf16  fc weights applied to fwd hidden
                       wfc_b_ref,        # (H, D)    bf16  fc weights applied to bwd hidden
                       bfc_ref,          # (1, D)    f32   fc bias
                       out_ref,          # (T*B, D)  f32   out = x + fc(lstm(x))
                       gxf_scr,          # (T*B, 4H) f32   scratch: hoisted fwd input projection
                       gxb_scr,          # (T*B, 4H) f32   scratch: hoisted bwd input projection
                       hf_scr,           # (T*B, H)  f32   scratch: fwd hidden states
                       hb_scr,           # (T*B, H)  f32   scratch: bwd hidden states
                       *, seq_len, batch):
    T, B = seq_len, batch
    H = whh_f_ref.shape[0]

    x_f32 = x_ref[...]
    x_bf = x_f32.astype(jnp.bfloat16)

    # --- hoisted, time-independent input projections (one big MXU matmul per direction),
    #     with the (b_ih + b_hh) bias folded in once (no per-step broadcast).
    gxf_scr[...] = (jnp.dot(x_bf, wih_f_ref[...], preferred_element_type=jnp.float32)
                    + b_f_ref[...])
    gxb_scr[...] = (jnp.dot(x_bf, wih_b_ref[...], preferred_element_type=jnp.float32)
                    + b_b_ref[...])

    whh_f = whh_f_ref[...]
    whh_b = whh_b_ref[...]

    def gate_step(gx, h, c, whh):
        # Only the h @ W_hh matmul remains on the serial critical path.
        gates = gx + jnp.dot(h.astype(jnp.bfloat16), whh,
                             preferred_element_type=jnp.float32)
        i = jax.nn.sigmoid(gates[:, 0:H])
        f = jax.nn.sigmoid(gates[:, H:2 * H])
        g = jnp.tanh(gates[:, 2 * H:3 * H])
        o = jax.nn.sigmoid(gates[:, 3 * H:4 * H])
        c_new = f * c + i * g           # cell state kept in f32
        h_new = o * jnp.tanh(c_new)
        return h_new, c_new

    zeros = jnp.zeros((B, H), jnp.float32)
    h_f = c_f = h_b = c_b = zeros

    # --- fused forward + backward recurrence: one serial loop of length T; the two
    #     directions are independent so their MXU/EUP latencies overlap. T is small
    #     and static -> fully unrolled Python loop with static VMEM slices.
    # TODO(synk): for long T, chunk the sequence over a grid axis (carrying h/c) to
    #             bound scratch VMEM on v7x's 64 MiB.
    for s in range(T):
        rf = s * B                 # forward step  t = s
        rb = (T - 1 - s) * B       # backward step t = T-1-s
        h_f, c_f = gate_step(gxf_scr[rf:rf + B, :], h_f, c_f, whh_f)
        h_b, c_b = gate_step(gxb_scr[rb:rb + B, :], h_b, c_b, whh_b)
        hf_scr[rf:rf + B, :] = h_f
        hb_scr[rb:rb + B, :] = h_b

    # --- fc + residual once, as dense slab matmuls + a single lane-dense store.
    y = (jnp.dot(hf_scr[...].astype(jnp.bfloat16), wfc_f_ref[...],
                 preferred_element_type=jnp.float32)
         + jnp.dot(hb_scr[...].astype(jnp.bfloat16), wfc_b_ref[...],
                   preferred_element_type=jnp.float32)
         + bfc_ref[...])
    out_ref[...] = x_f32 + y


# -----------------------------------------------------------------------------
# Wrapper (glue): flattened time-major layout + pallas_call
# -----------------------------------------------------------------------------
def mamba_block_apply_flat(x_flat, p, *, seq_len, batch):
    """x_flat: (T*B, D) f32 time-major flattened. Returns x_flat + block(x_flat)."""
    TB, D = x_flat.shape
    H = p["whh_f"].shape[0]
    bf16 = jnp.bfloat16

    vmem = pl.BlockSpec(memory_space=pltpu.MemorySpace.VMEM)
    kernel = functools.partial(mamba_block_kernel, seq_len=seq_len, batch=batch)

    # TODO(synk): for large batch on v7x, add a batch-parallel grid axis
    #             (dimension_semantics=("parallel",)) to shard across the 2 TensorCores.
    return pl.pallas_call(
        kernel,
        out_shape=jax.ShapeDtypeStruct((TB, D), jnp.float32),
        in_specs=[vmem] * 10,
        out_specs=vmem,
        scratch_shapes=[
            pltpu.VMEM((TB, 4 * H), jnp.float32),   # gxf
            pltpu.VMEM((TB, 4 * H), jnp.float32),   # gxb
            pltpu.VMEM((TB, H), jnp.float32),       # hf
            pltpu.VMEM((TB, H), jnp.float32),       # hb
        ],
    )(x_flat,
      p["wih_f"].astype(bf16), p["whh_f"].astype(bf16), p["b_f"],
      p["wih_b"].astype(bf16), p["whh_b"].astype(bf16), p["b_b"],
      p["wfc"][:H].astype(bf16), p["wfc"][H:].astype(bf16), p["bfc"])


def mamba_temporal_model_apply(x, block_params_list):
    """MambaTemporalModel.forward: for block in blocks: x = x + block(x).
    The residual add is fused in-kernel; the time-major flattened layout is set up
    once for all blocks (no per-block transposes)."""
    B, T, D = x.shape
    x_flat = jnp.transpose(x, (1, 0, 2)).reshape(T * B, D)   # (T*B, D), row = t*B + b
    for p in block_params_list:
        x_flat = mamba_block_apply_flat(x_flat, p, seq_len=T, batch=B)
    return jnp.transpose(x_flat.reshape(T, B, D), (1, 0, 2))  # back to (B, T, D)


# -----------------------------------------------------------------------------
# Deterministic synthetic parameter init (shapes per nn.LSTM / nn.Linear)
# -----------------------------------------------------------------------------
def init_block_params(key, input_dim, hidden_dim):
    D, H = input_dim, hidden_dim
    k_lstm = 1.0 / math.sqrt(H)
    k_fc = 1.0 / math.sqrt(2 * H)
    keys = jax.random.split(key, 10)

    def u(k, shape, bound):
        return jax.random.uniform(k, shape, jnp.float32, -bound, bound)

    # pre-transposed weights: weight_ih_l0 (4H,D) -> (D,4H); weight_hh_l0 (4H,H) -> (H,4H)
    return {
        "wih_f": u(keys[0], (D, 4 * H), k_lstm),
        "whh_f": u(keys[1], (H, 4 * H), k_lstm),
        "b_f":   (u(keys[2], (1, 4 * H), k_lstm) + u(keys[3], (1, 4 * H), k_lstm)),  # b_ih + b_hh
        "wih_b": u(keys[4], (D, 4 * H), k_lstm),
        "whh_b": u(keys[5], (H, 4 * H), k_lstm),
        "b_b":   (u(keys[6], (1, 4 * H), k_lstm) + u(keys[7], (1, 4 * H), k_lstm)),
        "wfc":   u(keys[8], (2 * H, D), k_fc),   # nn.Linear weight (D, 2H) pre-transposed
        "bfc":   u(keys[9], (1, D), k_fc),
    }


# -----------------------------------------------------------------------------
# Pure-JAX reference (full f32, HIGHEST precision) for a correctness check
# -----------------------------------------------------------------------------
def _lstm_ref(x, wih, whh, b, reverse):
    B, T, D = x.shape
    H = whh.shape[0]

    def step(carry, x_t):
        h, c = carry
        gates = (jnp.dot(x_t, wih, precision=lax.Precision.HIGHEST)
                 + jnp.dot(h, whh, precision=lax.Precision.HIGHEST) + b[0])
        i = jax.nn.sigmoid(gates[:, 0:H])
        f = jax.nn.sigmoid(gates[:, H:2 * H])
        g = jnp.tanh(gates[:, 2 * H:3 * H])
        o = jax.nn.sigmoid(gates[:, 3 * H:4 * H])
        c = f * c + i * g
        h = o * jnp.tanh(c)
        return (h, c), h

    xs = jnp.transpose(x, (1, 0, 2))
    if reverse:
        xs = xs[::-1]
    zeros = jnp.zeros((B, H), jnp.float32)
    _, hs = lax.scan(step, (zeros, zeros), xs)
    if reverse:
        hs = hs[::-1]
    return jnp.transpose(hs, (1, 0, 2))  # (B, T, H)


def mamba_temporal_model_ref(x, block_params_list):
    for p in block_params_list:
        hf = _lstm_ref(x, p["wih_f"], p["whh_f"], p["b_f"], reverse=False)
        hb = _lstm_ref(x, p["wih_b"], p["whh_b"], p["b_b"], reverse=True)
        lstm_out = jnp.concatenate([hf, hb], axis=-1)          # (B, T, 2H)
        y = jnp.einsum("bth,hd->btd", lstm_out, p["wfc"],
                       precision=lax.Precision.HIGHEST) + p["bfc"][0]
        x = x + y
    return x


# -----------------------------------------------------------------------------
if __name__ == "__main__":
    B, T, D = 2, 8, 32          # batch, sequence, input_dim
    H = 128                     # MambaBlock default hidden_dim
    NUM_BLOCKS = 2

    key = jax.random.PRNGKey(0)
    kx, kp = jax.random.split(key)
    x = jax.random.normal(kx, (B, T, D), jnp.float32)

    block_params = [init_block_params(k, D, H)
                    for k in jax.random.split(kp, NUM_BLOCKS)]

    run = jax.jit(functools.partial(mamba_temporal_model_apply,
                                    block_params_list=block_params))
    out = run(x)
    jax.block_until_ready(out)

    ref = mamba_temporal_model_ref(x, block_params)
    assert out.shape == (B, T, D)
    assert jnp.all(jnp.isfinite(out))
    assert jnp.allclose(out, ref, atol=2e-2, rtol=2e-2), (
        float(jnp.max(jnp.abs(out - ref))))

    print("KERNEL_OK")
</pallas_src>

<mosaic_0001>
module attributes {stable_mosaic.version = 11 : i64} {
  func.func @mamba_block_kernel(%arg0: memref<16x32xf32, #tpu.memory_space<vmem>>, %arg1: memref<32x512xbf16, #tpu.memory_space<vmem>>, %arg2: memref<128x512xbf16, #tpu.memory_space<vmem>>, %arg3: memref<1x512xf32, #tpu.memory_space<vmem>>, %arg4: memref<32x512xbf16, #tpu.memory_space<vmem>>, %arg5: memref<128x512xbf16, #tpu.memory_space<vmem>>, %arg6: memref<1x512xf32, #tpu.memory_space<vmem>>, %arg7: memref<128x32xbf16, #tpu.memory_space<vmem>>, %arg8: memref<128x32xbf16, #tpu.memory_space<vmem>>, %arg9: memref<1x32xf32, #tpu.memory_space<vmem>>, %arg10: memref<16x32xf32, #tpu.memory_space<vmem>>, %arg11: memref<16x512xf32, #tpu.memory_space<vmem>>, %arg12: memref<16x512xf32, #tpu.memory_space<vmem>>, %arg13: memref<16x128xf32, #tpu.memory_space<vmem>>, %arg14: memref<16x128xf32, #tpu.memory_space<vmem>>) attributes {dimension_semantics = [], scalar_prefetch = 0 : i64, scratch_operands = 4 : i64, tpu.core_type = #tpu.core_type<tc>} {
    %c0 = arith.constant 0 : index
    %c0_0 = arith.constant 0 : index
    %0 = vector.load %arg0[%c0, %c0_0] : memref<16x32xf32, #tpu.memory_space<vmem>>, vector<16x32xf32>
    %1 = arith.truncf %0 : vector<16x32xf32> to vector<16x32xbf16>
    %c0_1 = arith.constant 0 : index
    %c0_2 = arith.constant 0 : index
    %2 = vector.load %arg1[%c0_1, %c0_2] : memref<32x512xbf16, #tpu.memory_space<vmem>>, vector<32x512xbf16>
    %cst = arith.constant dense<0.000000e+00> : vector<16x512xf32>
    %3 = tpu.matmul %1, %2, %cst {dimension_numbers = #tpu.dot_dimension_numbers<[1], [0], [0], [1], [0, 0, 1, 1], [], []>} : vector<16x32xbf16>, vector<32x512xbf16>, vector<16x512xf32> -> vector<16x512xf32>
    %c0_3 = arith.constant 0 : index
    %c0_4 = arith.constant 0 : index
    %4 = vector.load %arg3[%c0_3, %c0_4] : memref<1x512xf32, #tpu.memory_space<vmem>>, vector<1x512xf32>
    %5 = vector.broadcast %4 : vector<1x512xf32> to vector<16x512xf32>
    %6 = arith.addf %3, %5 : vector<16x512xf32>
    %c0_5 = arith.constant 0 : index
    %c0_6 = arith.constant 0 : index
    %7 = vector.load %arg11[%c0_5, %c0_6] : memref<16x512xf32, #tpu.memory_space<vmem>>, vector<16x512xf32>
    tpu.vector_store %arg11[%c0_5, %c0_6], %6 {strides = array<i32>} : memref<16x512xf32, #tpu.memory_space<vmem>>, vector<16x512xf32>,
    %c0_7 = arith.constant 0 : index
    %c0_8 = arith.constant 0 : index
    %8 = vector.load %arg4[%c0_7, %c0_8] : memref<32x512xbf16, #tpu.memory_space<vmem>>, vector<32x512xbf16>
    %cst_9 = arith.constant dense<0.000000e+00> : vector<16x512xf32>
    %9 = tpu.matmul %1, %8, %cst_9 {dimension_numbers = #tpu.dot_dimension_numbers<[1], [0], [0], [1], [0, 0, 1, 1], [], []>} : vector<16x32xbf16>, vector<32x512xbf16>, vector<16x512xf32> -> vector<16x512xf32>
    %c0_10 = arith.constant 0 : index
    %c0_11 = arith.constant 0 : index
    %10 = vector.load %arg6[%c0_10, %c0_11] : memref<1x512xf32, #tpu.memory_space<vmem>>, vector<1x512xf32>
    %11 = vector.broadcast %10 : vector<1x512xf32> to vector<16x512xf32>
    %12 = arith.addf %9, %11 : vector<16x512xf32>
    %c0_12 = arith.constant 0 : index
    %c0_13 = arith.constant 0 : index
    %13 = vector.load %arg12[%c0_12, %c0_13] : memref<16x512xf32, #tpu.memory_space<vmem>>, vector<16x512xf32>
    tpu.vector_store %arg12[%c0_12, %c0_13], %12 {strides = array<i32>} : memref<16x512xf32, #tpu.memory_space<vmem>>, vector<16x512xf32>,
    %c0_14 = arith.constant 0 : index
    %c0_15 = arith.constant 0 : index
    %14 = vector.load %arg2[%c0_14, %c0_15] : memref<128x512xbf16, #tpu.memory_space<vmem>>, vector<128x512xbf16>
    %c0_16 = arith.constant 0 : index
    %c0_17 = arith.constant 0 : index
    %15 = vector.load %arg5[%c0_16, %c0_17] : memref<128x512xbf16, #tpu.memory_space<vmem>>, vector<128x512xbf16>
    %cst_18 = arith.constant 0.000000e+00 : f32
    %16 = vector.broadcast %cst_18 : f32 to vector<2x128xf32>
    %c0_19 = arith.constant 0 : index
    %c0_20 = arith.constant 0 : index
    %17 = vector.load %arg11[%c0_19, %c0_20] : memref<16x512xf32, #tpu.memory_space<vmem>>, vector<2x512xf32>
    %18 = arith.truncf %16 : vector<2x128xf32> to vector<2x128xbf16>
    %cst_21 = arith.constant dense<0.000000e+00> : vector<2x512xf32>
    %19 = tpu.matmul %18, %14, %cst_21 {dimension_numbers = #tpu.dot_dimension_numbers<[1], [0], [0], [1], [0, 0, 1, 1], [], []>} : vector<2x128xbf16>, vector<128x512xbf16>, vector<2x512xf32> -> vector<2x512xf32>
    %20 = arith.addf %17, %19 : vector<2x512xf32>
    %21 = vector.extract_strided_slice %20 {offsets = [0, 0], sizes = [2, 128], strides = [1, 1]} : vector<2x512xf32> to vector<2x128xf32>
    %22 = arith.negf %21 : vector<2x128xf32>
    %23 = math.exp %22 : vector<2x128xf32>
    %cst_22 = arith.constant 1.000000e+00 : f32
    %24 = vector.broadcast %cst_22 : f32 to vector<2x128xf32>
    %25 = arith.addf %24, %23 : vector<2x128xf32>
    %26 = arith.divf %24, %25 : vector<2x128xf32>
    %27 = vector.extract_strided_slice %20 {offsets = [0, 128], sizes = [2, 128], strides = [1, 1]} : vector<2x512xf32> to vector<2x128xf32>
    %28 = arith.negf %27 : vector<2x128xf32>
    %29 = math.exp %28 : vector<2x128xf32>
    %cst_23 = arith.constant 1.000000e+00 : f32
    %30 = vector.broadcast %cst_23 : f32 to vector<2x128xf32>
    %31 = arith.addf %30, %29 : vector<2x128xf32>
    %32 = arith.divf %30, %31 : vector<2x128xf32>
    %33 = vector.extract_strided_slice %20 {offsets = [0, 256], sizes = [2, 128], strides = [1, 1]} : vector<2x512xf32> to vector<2x128xf32>
    %34 = math.tanh %33 : vector<2x128xf32>
    %35 = vector.extract_strided_slice %20 {offsets = [0, 384], sizes = [2, 128], strides = [1, 1]} : vector<2x512xf32> to vector<2x128xf32>
    %36 = arith.negf %35 : vector<2x128xf32>
    %37 = math.exp %36 : vector<2x128xf32>
    %cst_24 = arith.constant 1.000000e+00 : f32
    %38 = vector.broadcast %cst_24 : f32 to vector<2x128xf32>
    %39 = arith.addf %38, %37 : vector<2x128xf32>
    %40 = arith.divf %38, %39 : vector<2x128xf32>
    %41 = arith.mulf %32, %16 : vector<2x128xf32>
    %42 = arith.mulf %26, %34 : vector<2x128xf32>
    %43 = arith.addf %41, %42 : vector<2x128xf32>
    %44 = math.tanh %43 : vector<2x128xf32>
    %45 = arith.mulf %40, %44 : vector<2x128xf32>
    %c14 = arith.constant 14 : index
    %c0_25 = arith.constant 0 : index
    %46 = vector.load %arg12[%c14, %c0_25] : memref<16x512xf32, #tpu.memory_space<vmem>>, vector<2x512xf32>
    %47 = arith.truncf %16 : vector<2x128xf32> to vector<2x128xbf16>
    %cst_26 = arith.constant dense<0.000000e+00> : vector<2x512xf32>
    %48 = tpu.matmul %47, %15, %cst_26 {dimension_numbers = #tpu.dot_dimension_numbers<[1], [0], [0], [1], [0, 0, 1, 1], [], []>} : vector<2x128xbf16>, vector<128x512xbf16>, vector<2x512xf32> -> vector<2x512xf32>
    %49 = arith.addf %46, %48 : vector<2x512xf32>
    %50 = vector.extract_strided_slice %49 {offsets = [0, 0], sizes = [2, 128], strides = [1, 1]} : vector<2x512xf32> to vector<2x128xf32>
    %51 = arith.negf %50 : vector<2x128xf32>
    %52 = math.exp %51 : vector<2x128xf32>
    %cst_27 = arith.constant 1.000000e+00 : f32
    %53 = vector.broadcast %cst_27 : f32 to vector<2x128xf32>
    %54 = arith.addf %53, %52 : vector<2x128xf32>
    %55 = arith.divf %53, %54 : vector<2x128xf32>
    %56 = vector.extract_strided_slice %49 {offsets = [0, 128], sizes = [2, 128], strides = [1, 1]} : vector<2x512xf32> to vector<2x128xf32>
    %57 = arith.negf %56 : vector<2x128xf32>
    %58 = math.exp %57 : vector<2x128xf32>
    %cst_28 = arith.constant 1.000000e+00 : f32
    %59 = vector.broadcast %cst_28 : f32 to vector<2x128xf32>
    %60 = arith.addf %59, %58 : vector<2x128xf32>
    %61 = arith.divf %59, %60 : vector<2x128xf32>
    %62 = vector.extract_strided_slice %49 {offsets = [0, 256], sizes = [2, 128], strides = [1, 1]} : vector<2x512xf32> to vector<2x128xf32>
    %63 = math.tanh %62 : vector<2x128xf32>
    %64 = vector.extract_strided_slice %49 {offsets = [0, 384], sizes = [2, 128], strides = [1, 1]} : vector<2x512xf32> to vector<2x128xf32>
    %65 = arith.negf %64 : vector<2x128xf32>
    %66 = math.exp %65 : vector<2x128xf32>
    %cst_29 = arith.constant 1.000000e+00 : f32
    %67 = vector.broadcast %cst_29 : f32 to vector<2x128xf32>
    %68 = arith.addf %67, %66 : vector<2x128xf32>
    %69 = arith.divf %67, %68 : vector<2x128xf32>
    %70 = arith.mulf %61, %16 : vector<2x128xf32>
    %71 = arith.mulf %55, %63 : vector<2x128xf32>
    %72 = arith.addf %70, %71 : vector<2x128xf32>
    %73 = math.tanh %72 : vector<2x128xf32>
    %74 = arith.mulf %69, %73 : vector<2x128xf32>
    %c0_30 = arith.constant 0 : index
    %c0_31 = arith.constant 0 : index
    %75 = vector.load %arg13[%c0_30, %c0_31] : memref<16x128xf32, #tpu.memory_space<vmem>>, vector<2x128xf32>
    tpu.vector_store %arg13[%c0_30, %c0_31], %45 {strides = array<i32>} : memref<16x128xf32, #tpu.memory_space<vmem>>, vector<2x128xf32>,
    %c14_32 = arith.constant 14 : index
    %c0_33 = arith.constant 0 : index
    %76 = vector.load %arg14[%c14_32, %c0_33] : memref<16x128xf32, #tpu.memory_space<vmem>>, vector<2x128xf32>
    tpu.vector_store %arg14[%c14_32, %c0_33], %74 {strides = array<i32>} : memref<16x128xf32, #tpu.memory_space<vmem>>, vector<2x128xf32>,
    %c2 = arith.constant 2 : index
    %c0_34 = arith.constant 0 : index
    %77 = vector.load %arg11[%c2, %c0_34] : memref<16x512xf32, #tpu.memory_space<vmem>>, vector<2x512xf32>
    %78 = arith.truncf %45 : vector<2x128xf32> to vector<2x128xbf16>
    %cst_35 = arith.constant dense<0.000000e+00> : vector<2x512xf32>
    %79 = tpu.matmul %78, %14, %cst_35 {dimension_numbers = #tpu.dot_dimension_numbers<[1], [0], [0], [1], [0, 0, 1, 1], [], []>} : vector<2x128xbf16>, vector<128x512xbf16>, vector<2x512xf32> -> vector<2x512xf32>
    %80 = arith.addf %77, %79 : vector<2x512xf32>
    %81 = vector.extract_strided_slice %80 {offsets = [0, 0], sizes = [2, 128], strides = [1, 1]} : vector<2x512xf32> to vector<2x128xf32>
    %82 = arith.negf %81 : vector<2x128xf32>
    %83 = math.exp %82 : vector<2x128xf32>
    %cst_36 = arith.constant 1.000000e+00 : f32
    %84 = vector.broadcast %cst_36 : f32 to vector<2x128xf32>
    %85 = arith.addf %84, %83 : vector<2x128xf32>
    %86 = arith.divf %84, %85 : vector<2x128xf32>
    %87 = vector.extract_strided_slice %80 {offsets = [0, 128], sizes = [2, 128], strides = [1, 1]} : vector<2x512xf32> to vector<2x128xf32>
    %88 = arith.negf %87 : vector<2x128xf32>
    %89 = math.exp %88 : vector<2x128xf32>
    %cst_37 = arith.constant 1.000000e+00 : f32
    %90 = vector.broadcast %cst_37 : f32 to vector<2x128xf32>
    %91 = arith.addf %90, %89 : vector<2x128xf32>
    %92 = arith.divf %90, %91 : vector<2x128xf32>
    %93 = vector.extract_strided_slice %80 {offsets = [0, 256], sizes = [2, 128], strides = [1, 1]} : vector<2x512xf32> to vector<2x128xf32>
    %94 = math.tanh %93 : vector<2x128xf32>
    %95 = vector.extract_strided_slice %80 {offsets = [0, 384], sizes = [2, 128], strides = [1, 1]} : vector<2x512xf32> to vector<2x128xf32>
    %96 = arith.negf %95 : vector<2x128xf32>
    %97 = math.exp %96 : vector<2x128xf32>
    %cst_38 = arith.constant 1.000000e+00 : f32
    %98 = vector.broadcast %cst_38 : f32 to vector<2x128xf32>
    %99 = arith.addf %98, %97 : vector<2x128xf32>
    %100 = arith.divf %98, %99 : vector<2x128xf32>
    %101 = arith.mulf %92, %43 : vector<2x128xf32>
    %102 = arith.mulf %86, %94 : vector<2x128xf32>
    %103 = arith.addf %101, %102 : vector<2x128xf32>
    %104 = math.tanh %103 : vector<2x128xf32>
    %105 = arith.mulf %100, %104 : vector<2x128xf32>
    %c12 = arith.constant 12 : index
    %c0_39 = arith.constant 0 : index
    %106 = vector.load %arg12[%c12, %c0_39] : memref<16x512xf32, #tpu.memory_space<vmem>>, vector<2x512xf32>
    %107 = arith.truncf %74 : vector<2x128xf32> to vector<2x128xbf16>
    %cst_40 = arith.constant dense<0.000000e+00> : vector<2x512xf32>
    %108 = tpu.matmul %107, %15, %cst_40 {dimension_numbers = #tpu.dot_dimension_numbers<[1], [0], [0], [1], [0, 0, 1, 1], [], []>} : vector<2x128xbf16>, vector<128x512xbf16>, vector<2x512xf32> -> vector<2x512xf32>
    %109 = arith.addf %106, %108 : vector<2x512xf32>
    %110 = vector.extract_strided_slice %109 {offsets = [0, 0], sizes = [2, 128], strides = [1, 1]} : vector<2x512xf32> to vector<2x128xf32>
    %111 = arith.negf %110 : vector<2x128xf32>
    %112 = math.exp %111 : vector<2x128xf32>
    %cst_41 = arith.constant 1.000000e+00 : f32
    %113 = vector.broadcast %cst_41 : f32 to vector<2x128xf32>
    %114 = arith.addf %113, %112 : vector<2x128xf32>
    %115 = arith.divf %113, %114 : vector<2x128xf32>
    %116 = vector.extract_strided_slice %109 {offsets = [0, 128], sizes = [2, 128], strides = [1, 1]} : vector<2x512xf32> to vector<2x128xf32>
    %117 = arith.negf %116 : vector<2x128xf32>
    %118 = math.exp %117 : vector<2x128xf32>
    %cst_42 = arith.constant 1.000000e+00 : f32
    %119 = vector.broadcast %cst_42 : f32 to vector<2x128xf32>
    %120 = arith.addf %119, %118 : vector<2x128xf32>
    %121 = arith.divf %119, %120 : vector<2x128xf32>
    %122 = vector.extract_strided_slice %109 {offsets = [0, 256], sizes = [2, 128], strides = [1, 1]} : vector<2x512xf32> to vector<2x128xf32>
    %123 = math.tanh %122 : vector<2x128xf32>
    %124 = vector.extract_strided_slice %109 {offsets = [0, 384], sizes = [2, 128], strides = [1, 1]} : vector<2x512xf32> to vector<2x128xf32>
    %125 = arith.negf %124 : vector<2x128xf32>
    %126 = math.exp %125 : vector<2x128xf32>
    %cst_43 = arith.constant 1.000000e+00 : f32
    %127 = vector.broadcast %cst_43 : f32 to vector<2x128xf32>
    %128 = arith.addf %127, %126 : vector<2x128xf32>
    %129 = arith.divf %127, %128 : vector<2x128xf32>
    %130 = arith.mulf %121, %72 : vector<2x128xf32>
    %131 = arith.mulf %115, %123 : vector<2x128xf32>
    %132 = arith.addf %130, %131 : vector<2x128xf32>
    %133 = math.tanh %132 : vector<2x128xf32>
    %134 = arith.mulf %129, %133 : vector<2x128xf32>
    %c2_44 = arith.constant 2 : index
    %c0_45 = arith.constant 0 : index
    %135 = vector.load %arg13[%c2_44, %c0_45] : memref<16x128xf32, #tpu.memory_space<vmem>>, vector<2x128xf32>
    tpu.vector_store %arg13[%c2_44, %c0_45], %105 {strides = array<i32>} : memref<16x128xf32, #tpu.memory_space<vmem>>, vector<2x128xf32>,
    %c12_46 = arith.constant 12 : index
    %c0_47 = arith.constant 0 : index
    %136 = vector.load %arg14[%c12_46, %c0_47] : memref<16x128xf32, #tpu.memory_space<vmem>>, vector<2x128xf32>
    tpu.vector_store %arg14[%c12_46, %c0_47], %134 {strides = array<i32>} : memref<16x128xf32, #tpu.memory_space<vmem>>, vector<2x128xf32>,
    %c4 = arith.constant 4 : index
    %c0_48 = arith.constant 0 : index
    %137 = vector.load %arg11[%c4, %c0_48] : memref<16x512xf32, #tpu.memory_space<vmem>>, vector<2x512xf32>
    %138 = arith.truncf %105 : vector<2x128xf32> to vector<2x128xbf16>
    %cst_49 = arith.constant dense<0.000000e+00> : vector<2x512xf32>
    %139 = tpu.matmul %138, %14, %cst_49 {dimension_numbers = #tpu.dot_dimension_numbers<[1], [0], [0], [1], [0, 0, 1, 1], [], []>} : vector<2x128xbf16>, vector<128x512xbf16>, vector<2x512xf32> -> vector<2x512xf32>
    %140 = arith.addf %137, %139 : vector<2x512xf32>
    %141 = vector.extract_strided_slice %140 {offsets = [0, 0], sizes = [2, 128], strides = [1, 1]} : vector<2x512xf32> to vector<2x128xf32>
    %142 = arith.negf %141 : vector<2x128xf32>
    %143 = math.exp %142 : vector<2x128xf32>
    %cst_50 = arith.constant 1.000000e+00 : f32
    %144 = vector.broadcast %cst_50 : f32 to vector<2x128xf32>
    %145 = arith.addf %144, %143 : vector<2x128xf32>
    %146 = arith.divf %144, %145 : vector<2x128xf32>
    %147 = vector.extract_strided_slice %140 {offsets = [0, 128], sizes = [2, 128], strides = [1, 1]} : vector<2x512xf32> to vector<2x128xf32>
    %148 = arith.negf %147 : vector<2x128xf32>
    %149 = math.exp %148 : vector<2x128xf32>
    %cst_51 = arith.constant 1.000000e+00 : f32
    %150 = vector.broadcast %cst_51 : f32 to vector<2x128xf32>
    %151 = arith.addf %150, %149 : vector<2x128xf32>
    %152 = arith.divf %150, %151 : vector<2x128xf32>
    %153 = vector.extract_strided_slice %140 {offsets = [0, 256], sizes = [2, 128], strides = [1, 1]} : vector<2x512xf32> to vector<2x128xf32>
    %154 = math.tanh %153 : vector<2x128xf32>
    %155 = vector.extract_strided_slice %140 {offsets = [0, 384], sizes = [2, 128], strides = [1, 1]} : vector<2x512xf32> to vector<2x128xf32>
    %156 = arith.negf %155 : vector<2x128xf32>
    %157 = math.exp %156 : vector<2x128xf32>
    %cst_52 = arith.constant 1.000000e+00 : f32
    %158 = vector.broadcast %cst_52 : f32 to vector<2x128xf32>
    %159 = arith.addf %158, %157 : vector<2x128xf32>
    %160 = arith.divf %158, %159 : vector<2x128xf32>
    %161 = arith.mulf %152, %103 : vector<2x128xf32>
    %162 = arith.mulf %146, %154 : vector<2x128xf32>
    %163 = arith.addf %161, %162 : vector<2x128xf32>
    %164 = math.tanh %163 : vector<2x128xf32>
    %165 = arith.mulf %160, %164 : vector<2x128xf32>
    %c10 = arith.constant 10 : index
    %c0_53 = arith.constant 0 : index
    %166 = vector.load %arg12[%c10, %c0_53] : memref<16x512xf32, #tpu.memory_space<vmem>>, vector<2x512xf32>
    %167 = arith.truncf %134 : vector<2x128xf32> to vector<2x128xbf16>
    %cst_54 = arith.constant dense<0.000000e+00> : vector<2x512xf32>
    %168 = tpu.matmul %167, %15, %cst_54 {dimension_numbers = #tpu.dot_dimension_numbers<[1], [0], [0], [1], [0, 0, 1, 1], [], []>} : vector<2x128xbf16>, vector<128x512xbf16>, vector<2x512xf32> -> vector<2x512xf32>
    %169 = arith.addf %166, %168 : vector<2x512xf32>
    %170 = vector.extract_strided_slice %169 {offsets = [0, 0], sizes = [2, 128], strides = [1, 1]} : vector<2x512xf32> to vector<2x128xf32>
    %171 = arith.negf %170 : vector<2x128xf32>
    %172 = math.exp %171 : vector<2x128xf32>
    %cst_55 = arith.constant 1.000000e+00 : f32
    %173 = vector.broadcast %cst_55 : f32 to vector<2x128xf32>
    %174 = arith.addf %173, %172 : vector<2x128xf32>
    %175 = arith.divf %173, %174 : vector<2x128xf32>
    %176 = vector.extract_strided_slice %169 {offsets = [0, 128], sizes = [2, 128], strides = [1, 1]} : vector<2x512xf32> to vector<2x128xf32>
    %177 = arith.negf %176 : vector<2x128xf32>
    %178 = math.exp %177 : vector<2x128xf32>
    %cst_56 = arith.constant 1.000000e+00 : f32
    %179 = vector.broadcast %cst_56 : f32 to vector<2x128xf32>
    %180 = arith.addf %179, %178 : vector<2x128xf32>
    %181 = arith.divf %179, %180 : vector<2x128xf32>
    %182 = vector.extract_strided_slice %169 {offsets = [0, 256], sizes = [2, 128], strides = [1, 1]} : vector<2x512xf32> to vector<2x128xf32>
    %183 = math.tanh %182 : vector<2x128xf32>
    %184 = vector.extract_strided_slice %169 {offsets = [0, 384], sizes = [2, 128], strides = [1, 1]} : vector<2x512xf32> to vector<2x128xf32>
    %185 = arith.negf %184 : vector<2x128xf32>
    %186 = math.exp %185 : vector<2x128xf32>
    %cst_57 = arith.constant 1.000000e+00 : f32
    %187 = vector.broadcast %cst_57 : f32 to vector<2x128xf32>
    %188 = arith.addf %187, %186 : vector<2x128xf32>
    %189 = arith.divf %187, %188 : vector<2x128xf32>
    %190 = arith.mulf %181, %132 : vector<2x128xf32>
    %191 = arith.mulf %175, %183 : vector<2x128xf32>
    %192 = arith.addf %190, %191 : vector<2x128xf32>
    %193 = math.tanh %192 : vector<2x128xf32>
    %194 = arith.mulf %189, %193 : vector<2x128xf32>
    %c4_58 = arith.constant 4 : index
    %c0_59 = arith.constant 0 : index
    %195 = vector.load %arg13[%c4_58, %c0_59] : memref<16x128xf32, #tpu.memory_space<vmem>>, vector<2x128xf32>
    tpu.vector_store %arg13[%c4_58, %c0_59], %165 {strides = array<i32>} : memref<16x128xf32, #tpu.memory_space<vmem>>, vector<2x128xf32>,
    %c10_60 = arith.constant 10 : index
    %c0_61 = arith.constant 0 : index
    %196 = vector.load %arg14[%c10_60, %c0_61] : memref<16x128xf32, #tpu.memory_space<vmem>>, vector<2x128xf32>
    tpu.vector_store %arg14[%c10_60, %c0_61], %194 {strides = array<i32>} : memref<16x128xf32, #tpu.memory_space<vmem>>, vector<2x128xf32>,
    %c6 = arith.constant 6 : index
    %c0_62 = arith.constant 0 : index
    %197 = vector.load %arg11[%c6, %c0_62] : memref<16x512xf32, #tpu.memory_space<vmem>>, vector<2x512xf32>
    %198 = arith.truncf %165 : vector<2x128xf32> to vector<2x128xbf16>
    %cst_63 = arith.constant dense<0.000000e+00> : vector<2x512xf32>
    %199 = tpu.matmul %198, %14, %cst_63 {dimension_numbers = #tpu.dot_dimension_numbers<[1], [0], [0], [1], [0, 0, 1, 1], [], []>} : vector<2x128xbf16>, vector<128x512xbf16>, vector<2x512xf32> -> vector<2x512xf32>
    %200 = arith.addf %197, %199 : vector<2x512xf32>
    %201 = vector.extract_strided_slice %200 {offsets = [0, 0], sizes = [2, 128], strides = [1, 1]} : vector<2x512xf32> to vector<2x128xf32>
    %202 = arith.negf %201 : vector<2x128xf32>
    %203 = math.exp %202 : vector<2x128xf32>
    %cst_64 = arith.constant 1.000000e+00 : f32
    %204 = vector.broadcast %cst_64 : f32 to vector<2x128xf32>
    %205 = arith.addf %204, %203 : vector<2x128xf32>
    %206 = arith.divf %204, %205 : vector<2x128xf32>
    %207 = vector.extract_strided_slice %200 {offsets = [0, 128], sizes = [2, 128], strides = [1, 1]} : vector<2x512xf32> to vector<2x128xf32>
    %208 = arith.negf %207 : vector<2x128xf32>
    %209 = math.exp %208 : vector<2x128xf32>
    %cst_65 = arith.constant 1.000000e+00 : f32
    %210 = vector.broadcast %cst_65 : f32 to vector<2x128xf32>
    %211 = arith.addf %210, %209 : vector<2x128xf32>
    %212 = arith.divf %210, %211 : vector<2x128xf32>
    %213 = vector.extract_strided_slice %200 {offsets = [0, 256], sizes = [2, 128], strides = [1, 1]} : vector<2x512xf32> to vector<2x128xf32>
    %214 = math.tanh %213 : vector<2x128xf32>
    %215 = vector.extract_strided_slice %200 {offsets = [0, 384], sizes = [2, 128], strides = [1, 1]} : vector<2x512xf32> to vector<2x128xf32>
    %216 = arith.negf %215 : vector<2x128xf32>
    %217 = math.exp %216 : vector<2x128xf32>
    %cst_66 = arith.constant 1.000000e+00 : f32
    %218 = vector.broadcast %cst_66 : f32 to vector<2x128xf32>
    %219 = arith.addf %218, %217 : vector<2x128xf32>
    %220 = arith.divf %218, %219 : vector<2x128xf32>
    %221 = arith.mulf %212, %163 : vector<2x128xf32>
    %222 = arith.mulf %206, %214 : vector<2x128xf32>
    %223 = arith.addf %221, %222 : vector<2x128xf32>
    %224 = math.tanh %223 : vector<2x128xf32>
    %225 = arith.mulf %220, %224 : vector<2x128xf32>
    %c8 = arith.constant 8 : index
    %c0_67 = arith.constant 0 : index
    %226 = vector.load %arg12[%c8, %c0_67] : memref<16x512xf32, #tpu.memory_space<vmem>>, vector<2x512xf32>
    %227 = arith.truncf %194 : vector<2x128xf32> to vector<2x128xbf16>
    %cst_68 = arith.constant dense<0.000000e+00> : vector<2x512xf32>
    %228 = tpu.matmul %227, %15, %cst_68 {dimension_numbers = #tpu.dot_dimension_numbers<[1], [0], [0], [1], [0, 0, 1, 1], [], []>} : vector<2x128xbf16>, vector<128x512xbf16>, vector<2x512xf32> -> vector<2x512xf32>
    %229 = arith.addf %226, %228 : vector<2x512xf32>
    %230 = vector.extract_strided_slice %229 {offsets = [0, 0], sizes = [2, 128], strides = [1, 1]} : vector<2x512xf32> to vector<2x128xf32>
    %231 = arith.negf %230 : vector<2x128xf32>
    %232 = math.exp %231 : vector<2x128xf32>
    %cst_69 = arith.constant 1.000000e+00 : f32
    %233 = vector.broadcast %cst_69 : f32 to vector<2x128xf32>
    %234 = arith.addf %233, %232 : vector<2x128xf32>
    %235 = arith.divf %233, %234 : vector<2x128xf32>
    %236 = vector.extract_strided_slice %229 {offsets = [0, 128], sizes = [2, 128], strides = [1, 1]} : vector<2x512xf32> to vector<2x128xf32>
    %237 = arith.negf %236 : vector<2x128xf32>
    %238 = math.exp %237 : vector<2x128xf32>
    %cst_70 = arith.constant 1.000000e+00 : f32
    %239 = vector.broadcast %cst_70 : f32 to vector<2x128xf32>
    %240 = arith.addf %239, %238 : vector<2x128xf32>
    %241 = arith.divf %239, %240 : vector<2x128xf32>
    %242 = vector.extract_strided_slice %229 {offsets = [0, 256], sizes = [2, 128], strides = [1, 1]} : vector<2x512xf32> to vector<2x128xf32>
    %243 = math.tanh %242 : vector<2x128xf32>
    %244 = vector.extract_strided_slice %229 {offsets = [0, 384], sizes = [2, 128], strides = [1, 1]} : vector<2x512xf32> to vector<2x128xf32>
    %245 = arith.negf %244 : vector<2x128xf32>
    %246 = math.exp %245 : vector<2x128xf32>
    %cst_71 = arith.constant 1.000000e+00 : f32
    %247 = vector.broadcast %cst_71 : f32 to vector<2x128xf32>
    %248 = arith.addf %247, %246 : vector<2x128xf32>
    %249 = arith.divf %247, %248 : vector<2x128xf32>
    %250 = arith.mulf %241, %192 : vector<2x128xf32>
    %251 = arith.mulf %235, %243 : vector<2x128xf32>
    %252 = arith.addf %250, %251 : vector<2x128xf32>
    %253 = math.tanh %252 : vector<2x128xf32>
    %254 = arith.mulf %249, %253 : vector<2x128xf32>
    %c6_72 = arith.constant 6 : index
    %c0_73 = arith.constant 0 : index
    %255 = vector.load %arg13[%c6_72, %c0_73] : memref<16x128xf32, #tpu.memory_space<vmem>>, vector<2x128xf32>
    tpu.vector_store %arg13[%c6_72, %c0_73], %225 {strides = array<i32>} : memref<16x128xf32, #tpu.memory_space<vmem>>, vector<2x128xf32>,
    %c8_74 = arith.constant 8 : index
    %c0_75 = arith.constant 0 : index
    %256 = vector.load %arg14[%c8_74, %c0_75] : memref<16x128xf32, #tpu.memory_space<vmem>>, vector<2x128xf32>
    tpu.vector_store %arg14[%c8_74, %c0_75], %254 {strides = array<i32>} : memref<16x128xf32, #tpu.memory_space<vmem>>, vector<2x128xf32>,
    %c8_76 = arith.constant 8 : index
    %c0_77 = arith.constant 0 : index
    %257 = vector.load %arg11[%c8_76, %c0_77] : memref<16x512xf32, #tpu.memory_space<vmem>>, vector<2x512xf32>
    %258 = arith.truncf %225 : vector<2x128xf32> to vector<2x128xbf16>
    %cst_78 = arith.constant dense<0.000000e+00> : vector<2x512xf32>
    %259 = tpu.matmul %258, %14, %cst_78 {dimension_numbers = #tpu.dot_dimension_numbers<[1], [0], [0], [1], [0, 0, 1, 1], [], []>} : vector<2x128xbf16>, vector<128x512xbf16>, vector<2x512xf32> -> vector<2x512xf32>
    %260 = arith.addf %257, %259 : vector<2x512xf32>
    %261 = vector.extract_strided_slice %260 {offsets = [0, 0], sizes = [2, 128], strides = [1, 1]} : vector<2x512xf32> to vector<2x128xf32>
    %262 = arith.negf %261 : vector<2x128xf32>
    %263 = math.exp %262 : vector<2x128xf32>
    %cst_79 = arith.constant 1.000000e+00 : f32
    %264 = vector.broadcast %cst_79 : f32 to vector<2x128xf32>
    %265 = arith.addf %264, %263 : vector<2x128xf32>
    %266 = arith.divf %264, %265 : vector<2x128xf32>
    %267 = vector.extract_strided_slice %260 {offsets = [0, 128], sizes = [2, 128], strides = [1, 1]} : vector<2x512xf32> to vector<2x128xf32>
    %268 = arith.negf %267 : vector<2x128xf32>
    %269 = math.exp %268 : vector<2x128xf32>
    %cst_80 = arith.constant 1.000000e+00 : f32
    %270 = vector.broadcast %cst_80 : f32 to vector<2x128xf32>
    %271 = arith.addf %270, %269 : vector<2x128xf32>
    %272 = arith.divf %270, %271 : vector<2x128xf32>
    %273 = vector.extract_strided_slice %260 {offsets = [0, 256], sizes = [2, 128], strides = [1, 1]} : vector<2x512xf32> to vector<2x128xf32>
    %274 = math.tanh %273 : vector<2x128xf32>
    %275 = vector.extract_strided_slice %260 {offsets = [0, 384], sizes = [2, 128], strides = [1, 1]} : vector<2x512xf32> to vector<2x128xf32>
    %276 = arith.negf %275 : vector<2x128xf32>
    %277 = math.exp %276 : vector<2x128xf32>
    %cst_81 = arith.constant 1.000000e+00 : f32
    %278 = vector.broadcast %cst_81 : f32 to vector<2x128xf32>
    %279 = arith.addf %278, %277 : vector<2x128xf32>
    %280 = arith.divf %278, %279 : vector<2x128xf32>
    %281 = arith.mulf %272, %223 : vector<2x128xf32>
    %282 = arith.mulf %266, %274 : vector<2x128xf32>
    %283 = arith.addf %281, %282 : vector<2x128xf32>
    %284 = math.tanh %283 : vector<2x128xf32>
    %285 = arith.mulf %280, %284 : vector<2x128xf32>
    %c6_82 = arith.constant 6 : index
    %c0_83 = arith.constant 0 : index
    %286 = vector.load %arg12[%c6_82, %c0_83] : memref<16x512xf32, #tpu.memory_space<vmem>>, vector<2x512xf32>
    %287 = arith.truncf %254 : vector<2x128xf32> to vector<2x128xbf16>
    %cst_84 = arith.constant dense<0.000000e+00> : vector<2x512xf32>
    %288 = tpu.matmul %287, %15, %cst_84 {dimension_numbers = #tpu.dot_dimension_numbers<[1], [0], [0], [1], [0, 0, 1, 1], [], []>} : vector<2x128xbf16>, vector<128x512xbf16>, vector<2x512xf32> -> vector<2x512xf32>
    %289 = arith.addf %286, %288 : vector<2x512xf32>
    %290 = vector.extract_strided_slice %289 {offsets = [0, 0], sizes = [2, 128], strides = [1, 1]} : vector<2x512xf32> to vector<2x128xf32>
    %291 = arith.negf %290 : vector<2x128xf32>
    %292 = math.exp %291 : vector<2x128xf32>
    %cst_85 = arith.constant 1.000000e+00 : f32
    %293 = vector.broadcast %cst_85 : f32 to vector<2x128xf32>
    %294 = arith.addf %293, %292 : vector<2x128xf32>
    %295 = arith.divf %293, %294 : vector<2x128xf32>
    %296 = vector.extract_strided_slice %289 {offsets = [0, 128], sizes = [2, 128], strides = [1, 1]} : vector<2x512xf32> to vector<2x128xf32>
    %297 = arith.negf %296 : vector<2x128xf32>
    %298 = math.exp %297 : vector<2x128xf32>
    %cst_86 = arith.constant 1.000000e+00 : f32
    %299 = vector.broadcast %cst_86 : f32 to vector<2x128xf32>
    %300 = arith.addf %299, %298 : vector<2x128xf32>
    %301 = arith.divf %299, %300 : vector<2x128xf32>
    %302 = vector.extract_strided_slice %289 {offsets = [0, 256], sizes = [2, 128], strides = [1, 1]} : vector<2x512xf32> to vector<2x128xf32>
    %303 = math.tanh %302 : vector<2x128xf32>
    %304 = vector.extract_strided_slice %289 {offsets = [0, 384], sizes = [2, 128], strides = [1, 1]} : vector<2x512xf32> to vector<2x128xf32>
    %305 = arith.negf %304 : vector<2x128xf32>
    %306 = math.exp %305 : vector<2x128xf32>
    %cst_87 = arith.constant 1.000000e+00 : f32
    %307 = vector.broadcast %cst_87 : f32 to vector<2x128xf32>
    %308 = arith.addf %307, %306 : vector<2x128xf32>
    %309 = arith.divf %307, %308 : vector<2x128xf32>
    %310 = arith.mulf %301, %252 : vector<2x128xf32>
    %311 = arith.mulf %295, %303 : vector<2x128xf32>
    %312 = arith.addf %310, %311 : vector<2x128xf32>
    %313 = math.tanh %312 : vector<2x128xf32>
    %314 = arith.mulf %309, %313 : vector<2x128xf32>
    %c8_88 = arith.constant 8 : index
    %c0_89 = arith.constant 0 : index
    %315 = vector.load %arg13[%c8_88, %c0_89] : memref<16x128xf32, #tpu.memory_space<vmem>>, vector<2x128xf32>
    tpu.vector_store %arg13[%c8_88, %c0_89], %285 {strides = array<i32>} : memref<16x128xf32, #tpu.memory_space<vmem>>, vector<2x128xf32>,
    %c6_90 = arith.constant 6 : index
    %c0_91 = arith.constant 0 : index
    %316 = vector.load %arg14[%c6_90, %c0_91] : memref<16x128xf32, #tpu.memory_space<vmem>>, vector<2x128xf32>
    tpu.vector_store %arg14[%c6_90, %c0_91], %314 {strides = array<i32>} : memref<16x128xf32, #tpu.memory_space<vmem>>, vector<2x128xf32>,
    %c10_92 = arith.constant 10 : index
    %c0_93 = arith.constant 0 : index
    %317 = vector.load %arg11[%c10_92, %c0_93] : memref<16x512xf32, #tpu.memory_space<vmem>>, vector<2x512xf32>
    %318 = arith.truncf %285 : vector<2x128xf32> to vector<2x128xbf16>
    %cst_94 = arith.constant dense<0.000000e+00> : vector<2x512xf32>
    %319 = tpu.matmul %318, %14, %cst_94 {dimension_numbers = #tpu.dot_dimension_numbers<[1], [0], [0], [1], [0, 0, 1, 1], [], []>} : vector<2x128xbf16>, vector<128x512xbf16>, vector<2x512xf32> -> vector<2x512xf32>
    %320 = arith.addf %317, %319 : vector<2x512xf32>
    %321 = vector.extract_strided_slice %320 {offsets = [0, 0], sizes = [2, 128], strides = [1, 1]} : vector<2x512xf32> to vector<2x128xf32>
    %322 = arith.negf %321 : vector<2x128xf32>
    %323 = math.exp %322 : vector<2x128xf32>
    %cst_95 = arith.constant 1.000000e+00 : f32
    %324 = vector.broadcast %cst_95 : f32 to vector<2x128xf32>
    %325 = arith.addf %324, %323 : vector<2x128xf32>
    %326 = arith.divf %324, %325 : vector<2x128xf32>
    %327 = vector.extract_strided_slice %320 {offsets = [0, 128], sizes = [2, 128], strides = [1, 1]} : vector<2x512xf32> to vector<2x128xf32>
    %328 = arith.negf %327 : vector<2x128xf32>
    %329 = math.exp %328 : vector<2x128xf32>
    %cst_96 = arith.constant 1.000000e+00 : f32
    %330 = vector.broadcast %cst_96 : f32 to vector<2x128xf32>
    %331 = arith.addf %330, %329 : vector<2x128xf32>
    %332 = arith.divf %330, %331 : vector<2x128xf32>
    %333 = vector.extract_strided_slice %320 {offsets = [0, 256], sizes = [2, 128], strides = [1, 1]} : vector<2x512xf32> to vector<2x128xf32>
    %334 = math.tanh %333 : vector<2x128xf32>
    %335 = vector.extract_strided_slice %320 {offsets = [0, 384], sizes = [2, 128], strides = [1, 1]} : vector<2x512xf32> to vector<2x128xf32>
    %336 = arith.negf %335 : vector<2x128xf32>
    %337 = math.exp %336 : vector<2x128xf32>
    %cst_97 = arith.constant 1.000000e+00 : f32
    %338 = vector.broadcast %cst_97 : f32 to vector<2x128xf32>
    %339 = arith.addf %338, %337 : vector<2x128xf32>
    %340 = arith.divf %338, %339 : vector<2x128xf32>
    %341 = arith.mulf %332, %283 : vector<2x128xf32>
    %342 = arith.mulf %326, %334 : vector<2x128xf32>
    %343 = arith.addf %341, %342 : vector<2x128xf32>
    %344 = math.tanh %343 : vector<2x128xf32>
    %345 = arith.mulf %340, %344 : vector<2x128xf32>
    %c4_98 = arith.constant 4 : index
    %c0_99 = arith.constant 0 : index
    %346 = vector.load %arg12[%c4_98, %c0_99] : memref<16x512xf32, #tpu.memory_space<vmem>>, vector<2x512xf32>
    %347 = arith.truncf %314 : vector<2x128xf32> to vector<2x128xbf16>
    %cst_100 = arith.constant dense<0.000000e+00> : vector<2x512xf32>
    %348 = tpu.matmul %347, %15, %cst_100 {dimension_numbers = #tpu.dot_dimension_numbers<[1], [0], [0], [1], [0, 0, 1, 1], [], []>} : vector<2x128xbf16>, vector<128x512xbf16>, vector<2x512xf32> -> vector<2x512xf32>
    %349 = arith.addf %346, %348 : vector<2x512xf32>
    %350 = vector.extract_strided_slice %349 {offsets = [0, 0], sizes = [2, 128], strides = [1, 1]} : vector<2x512xf32> to vector<2x128xf32>
    %351 = arith.negf %350 : vector<2x128xf32>
    %352 = math.exp %351 : vector<2x128xf32>
    %cst_101 = arith.constant 1.000000e+00 : f32
    %353 = vector.broadcast %cst_101 : f32 to vector<2x128xf32>
    %354 = arith.addf %353, %352 : vector<2x128xf32>
    %355 = arith.divf %353, %354 : vector<2x128xf32>
    %356 = vector.extract_strided_slice %349 {offsets = [0, 128], sizes = [2, 128], strides = [1, 1]} : vector<2x512xf32> to vector<2x128xf32>
    %357 = arith.negf %356 : vector<2x128xf32>
    %358 = math.exp %357 : vector<2x128xf32>
    %cst_102 = arith.constant 1.000000e+00 : f32
    %359 = vector.broadcast %cst_102 : f32 to vector<2x128xf32>
    %360 = arith.addf %359, %358 : vector<2x128xf32>
    %361 = arith.divf %359, %360 : vector<2x128xf32>
    %362 = vector.extract_strided_slice %349 {offsets = [0, 256], sizes = [2, 128], strides = [1, 1]} : vector<2x512xf32> to vector<2x128xf32>
    %363 = math.tanh %362 : vector<2x128xf32>
    %364 = vector.extract_strided_slice %349 {offsets = [0, 384], sizes = [2, 128], strides = [1, 1]} : vector<2x512xf32> to vector<2x128xf32>
    %365 = arith.negf %364 : vector<2x128xf32>
    %366 = math.exp %365 : vector<2x128xf32>
    %cst_103 = arith.constant 1.000000e+00 : f32
    %367 = vector.broadcast %cst_103 : f32 to vector<2x128xf32>
    %368 = arith.addf %367, %366 : vector<2x128xf32>
    %369 = arith.divf %367, %368 : vector<2x128xf32>
    %370 = arith.mulf %361, %312 : vector<2x128xf32>
    %371 = arith.mulf %355, %363 : vector<2x128xf32>
    %372 = arith.addf %370, %371 : vector<2x128xf32>
    %373 = math.tanh %372 : vector<2x128xf32>
    %374 = arith.mulf %369, %373 : vector<2x128xf32>
    %c10_104 = arith.constant 10 : index
    %c0_105 = arith.constant 0 : index
    %375 = vector.load %arg13[%c10_104, %c0_105] : memref<16x128xf32, #tpu.memory_space<vmem>>, vector<2x128xf32>
    tpu.vector_store %arg13[%c10_104, %c0_105], %345 {strides = array<i32>} : memref<16x128xf32, #tpu.memory_space<vmem>>, vector<2x128xf32>,
    %c4_106 = arith.constant 4 : index
    %c0_107 = arith.constant 0 : index
    %376 = vector.load %arg14[%c4_106, %c0_107] : memref<16x128xf32, #tpu.memory_space<vmem>>, vector<2x128xf32>
    tpu.vector_store %arg14[%c4_106, %c0_107], %374 {strides = array<i32>} : memref<16x128xf32, #tpu.memory_space<vmem>>, vector<2x128xf32>,
    %c12_108 = arith.constant 12 : index
    %c0_109 = arith.constant 0 : index
    %377 = vector.load %arg11[%c12_108, %c0_109] : memref<16x512xf32, #tpu.memory_space<vmem>>, vector<2x512xf32>
    %378 = arith.truncf %345 : vector<2x128xf32> to vector<2x128xbf16>
    %cst_110 = arith.constant dense<0.000000e+00> : vector<2x512xf32>
    %379 = tpu.matmul %378, %14, %cst_110 {dimension_numbers = #tpu.dot_dimension_numbers<[1], [0], [0], [1], [0, 0, 1, 1], [], []>} : vector<2x128xbf16>, vector<128x512xbf16>, vector<2x512xf32> -> vector<2x512xf32>
    %380 = arith.addf %377, %379 : vector<2x512xf32>
    %381 = vector.extract_strided_slice %380 {offsets = [0, 0], sizes = [2, 128], strides = [1, 1]} : vector<2x512xf32> to vector<2x128xf32>
    %382 = arith.negf %381 : vector<2x128xf32>
    %383 = math.exp %382 : vector<2x128xf32>
    %cst_111 = arith.constant 1.000000e+00 : f32
    %384 = vector.broadcast %cst_111 : f32 to vector<2x128xf32>
    %385 = arith.addf %384, %383 : vector<2x128xf32>
    %386 = arith.divf %384, %385 : vector<2x128xf32>
    %387 = vector.extract_strided_slice %380 {offsets = [0, 128], sizes = [2, 128], strides = [1, 1]} : vector<2x512xf32> to vector<2x128xf32>
    %388 = arith.negf %387 : vector<2x128xf32>
    %389 = math.exp %388 : vector<2x128xf32>
    %cst_112 = arith.constant 1.000000e+00 : f32
    %390 = vector.broadcast %cst_112 : f32 to vector<2x128xf32>
    %391 = arith.addf %390, %389 : vector<2x128xf32>
    %392 = arith.divf %390, %391 : vector<2x128xf32>
    %393 = vector.extract_strided_slice %380 {offsets = [0, 256], sizes = [2, 128], strides = [1, 1]} : vector<2x512xf32> to vector<2x128xf32>
    %394 = math.tanh %393 : vector<2x128xf32>
    %395 = vector.extract_strided_slice %380 {offsets = [0, 384], sizes = [2, 128], strides = [1, 1]} : vector<2x512xf32> to vector<2x128xf32>
    %396 = arith.negf %395 : vector<2x128xf32>
    %397 = math.exp %396 : vector<2x128xf32>
    %cst_113 = arith.constant 1.000000e+00 : f32
    %398 = vector.broadcast %cst_113 : f32 to vector<2x128xf32>
    %399 = arith.addf %398, %397 : vector<2x128xf32>
    %400 = arith.divf %398, %399 : vector<2x128xf32>
    %401 = arith.mulf %392, %343 : vector<2x128xf32>
    %402 = arith.mulf %386, %394 : vector<2x128xf32>
    %403 = arith.addf %401, %402 : vector<2x128xf32>
    %404 = math.tanh %403 : vector<2x128xf32>
    %405 = arith.mulf %400, %404 : vector<2x128xf32>
    %c2_114 = arith.constant 2 : index
    %c0_115 = arith.constant 0 : index
    %406 = vector.load %arg12[%c2_114, %c0_115] : memref<16x512xf32, #tpu.memory_space<vmem>>, vector<2x512xf32>
    %407 = arith.truncf %374 : vector<2x128xf32> to vector<2x128xbf16>
    %cst_116 = arith.constant dense<0.000000e+00> : vector<2x512xf32>
    %408 = tpu.matmul %407, %15, %cst_116 {dimension_numbers = #tpu.dot_dimension_numbers<[1], [0], [0], [1], [0, 0, 1, 1], [], []>} : vector<2x128xbf16>, vector<128x512xbf16>, vector<2x512xf32> -> vector<2x512xf32>
    %409 = arith.addf %406, %408 : vector<2x512xf32>
    %410 = vector.extract_strided_slice %409 {offsets = [0, 0], sizes = [2, 128], strides = [1, 1]} : vector<2x512xf32> to vector<2x128xf32>
    %411 = arith.negf %410 : vector<2x128xf32>
    %412 = math.exp %411 : vector<2x128xf32>
    %cst_117 = arith.constant 1.000000e+00 : f32
    %413 = vector.broadcast %cst_117 : f32 to vector<2x128xf32>
    %414 = arith.addf %413, %412 : vector<2x128xf32>
    %415 = arith.divf %413, %414 : vector<2x128xf32>
    %416 = vector.extract_strided_slice %409 {offsets = [0, 128], sizes = [2, 128], strides = [1, 1]} : vector<2x512xf32> to vector<2x128xf32>
    %417 = arith.negf %416 : vector<2x128xf32>
    %418 = math.exp %417 : vector<2x128xf32>
    %cst_118 = arith.constant 1.000000e+00 : f32
    %419 = vector.broadcast %cst_118 : f32 to vector<2x128xf32>
    %420 = arith.addf %419, %418 : vector<2x128xf32>
    %421 = arith.divf %419, %420 : vector<2x128xf32>
    %422 = vector.extract_strided_slice %409 {offsets = [0, 256], sizes = [2, 128], strides = [1, 1]} : vector<2x512xf32> to vector<2x128xf32>
    %423 = math.tanh %422 : vector<2x128xf32>
    %424 = vector.extract_strided_slice %409 {offsets = [0, 384], sizes = [2, 128], strides = [1, 1]} : vector<2x512xf32> to vector<2x128xf32>
    %425 = arith.negf %424 : vector<2x128xf32>
    %426 = math.exp %425 : vector<2x128xf32>
    %cst_119 = arith.constant 1.000000e+00 : f32
    %427 = vector.broadcast %cst_119 : f32 to vector<2x128xf32>
    %428 = arith.addf %427, %426 : vector<2x128xf32>
    %429 = arith.divf %427, %428 : vector<2x128xf32>
    %430 = arith.mulf %421, %372 : vector<2x128xf32>
    %431 = arith.mulf %415, %423 : vector<2x128xf32>
    %432 = arith.addf %430, %431 : vector<2x128xf32>
    %433 = math.tanh %432 : vector<2x128xf32>
    %434 = arith.mulf %429, %433 : vector<2x128xf32>
    %c12_120 = arith.constant 12 : index
    %c0_121 = arith.constant 0 : index
    %435 = vector.load %arg13[%c12_120, %c0_121] : memref<16x128xf32, #tpu.memory_space<vmem>>, vector<2x128xf32>
    tpu.vector_store %arg13[%c12_120, %c0_121], %405 {strides = array<i32>} : memref<16x128xf32, #tpu.memory_space<vmem>>, vector<2x128xf32>,
    %c2_122 = arith.constant 2 : index
    %c0_123 = arith.constant 0 : index
    %436 = vector.load %arg14[%c2_122, %c0_123] : memref<16x128xf32, #tpu.memory_space<vmem>>, vector<2x128xf32>
    tpu.vector_store %arg14[%c2_122, %c0_123], %434 {strides = array<i32>} : memref<16x128xf32, #tpu.memory_space<vmem>>, vector<2x128xf32>,
    %c14_124 = arith.constant 14 : index
    %c0_125 = arith.constant 0 : index
    %437 = vector.load %arg11[%c14_124, %c0_125] : memref<16x512xf32, #tpu.memory_space<vmem>>, vector<2x512xf32>
    %438 = arith.truncf %405 : vector<2x128xf32> to vector<2x128xbf16>
    %cst_126 = arith.constant dense<0.000000e+00> : vector<2x512xf32>
    %439 = tpu.matmul %438, %14, %cst_126 {dimension_numbers = #tpu.dot_dimension_numbers<[1], [0], [0], [1], [0, 0, 1, 1], [], []>} : vector<2x128xbf16>, vector<128x512xbf16>, vector<2x512xf32> -> vector<2x512xf32>
    %440 = arith.addf %437, %439 : vector<2x512xf32>
    %441 = vector.extract_strided_slice %440 {offsets = [0, 0], sizes = [2, 128], strides = [1, 1]} : vector<2x512xf32> to vector<2x128xf32>
    %442 = arith.negf %441 : vector<2x128xf32>
    %443 = math.exp %442 : vector<2x128xf32>
    %cst_127 = arith.constant 1.000000e+00 : f32
    %444 = vector.broadcast %cst_127 : f32 to vector<2x128xf32>
    %445 = arith.addf %444, %443 : vector<2x128xf32>
    %446 = arith.divf %444, %445 : vector<2x128xf32>
    %447 = vector.extract_strided_slice %440 {offsets = [0, 128], sizes = [2, 128], strides = [1, 1]} : vector<2x512xf32> to vector<2x128xf32>
    %448 = arith.negf %447 : vector<2x128xf32>
    %449 = math.exp %448 : vector<2x128xf32>
    %cst_128 = arith.constant 1.000000e+00 : f32
    %450 = vector.broadcast %cst_128 : f32 to vector<2x128xf32>
    %451 = arith.addf %450, %449 : vector<2x128xf32>
    %452 = arith.divf %450, %451 : vector<2x128xf32>
    %453 = vector.extract_strided_slice %440 {offsets = [0, 256], sizes = [2, 128], strides = [1, 1]} : vector<2x512xf32> to vector<2x128xf32>
    %454 = math.tanh %453 : vector<2x128xf32>
    %455 = vector.extract_strided_slice %440 {offsets = [0, 384], sizes = [2, 128], strides = [1, 1]} : vector<2x512xf32> to vector<2x128xf32>
    %456 = arith.negf %455 : vector<2x128xf32>
    %457 = math.exp %456 : vector<2x128xf32>
    %cst_129 = arith.constant 1.000000e+00 : f32
    %458 = vector.broadcast %cst_129 : f32 to vector<2x128xf32>
    %459 = arith.addf %458, %457 : vector<2x128xf32>
    %460 = arith.divf %458, %459 : vector<2x128xf32>
    %461 = arith.mulf %452, %403 : vector<2x128xf32>
    %462 = arith.mulf %446, %454 : vector<2x128xf32>
    %463 = arith.addf %461, %462 : vector<2x128xf32>
    %464 = math.tanh %463 : vector<2x128xf32>
    %465 = arith.mulf %460, %464 : vector<2x128xf32>
    %c0_130 = arith.constant 0 : index
    %c0_131 = arith.constant 0 : index
    %466 = vector.load %arg12[%c0_130, %c0_131] : memref<16x512xf32, #tpu.memory_space<vmem>>, vector<2x512xf32>
    %467 = arith.truncf %434 : vector<2x128xf32> to vector<2x128xbf16>
    %cst_132 = arith.constant dense<0.000000e+00> : vector<2x512xf32>
    %468 = tpu.matmul %467, %15, %cst_132 {dimension_numbers = #tpu.dot_dimension_numbers<[1], [0], [0], [1], [0, 0, 1, 1], [], []>} : vector<2x128xbf16>, vector<128x512xbf16>, vector<2x512xf32> -> vector<2x512xf32>
    %469 = arith.addf %466, %468 : vector<2x512xf32>
    %470 = vector.extract_strided_slice %469 {offsets = [0, 0], sizes = [2, 128], strides = [1, 1]} : vector<2x512xf32> to vector<2x128xf32>
    %471 = arith.negf %470 : vector<2x128xf32>
    %472 = math.exp %471 : vector<2x128xf32>
    %cst_133 = arith.constant 1.000000e+00 : f32
    %473 = vector.broadcast %cst_133 : f32 to vector<2x128xf32>
    %474 = arith.addf %473, %472 : vector<2x128xf32>
    %475 = arith.divf %473, %474 : vector<2x128xf32>
    %476 = vector.extract_strided_slice %469 {offsets = [0, 128], sizes = [2, 128], strides = [1, 1]} : vector<2x512xf32> to vector<2x128xf32>
    %477 = arith.negf %476 : vector<2x128xf32>
    %478 = math.exp %477 : vector<2x128xf32>
    %cst_134 = arith.constant 1.000000e+00 : f32
    %479 = vector.broadcast %cst_134 : f32 to vector<2x128xf32>
    %480 = arith.addf %479, %478 : vector<2x128xf32>
    %481 = arith.divf %479, %480 : vector<2x128xf32>
    %482 = vector.extract_strided_slice %469 {offsets = [0, 256], sizes = [2, 128], strides = [1, 1]} : vector<2x512xf32> to vector<2x128xf32>
    %483 = math.tanh %482 : vector<2x128xf32>
    %484 = vector.extract_strided_slice %469 {offsets = [0, 384], sizes = [2, 128], strides = [1, 1]} : vector<2x512xf32> to vector<2x128xf32>
    %485 = arith.negf %484 : vector<2x128xf32>
    %486 = math.exp %485 : vector<2x128xf32>
    %cst_135 = arith.constant 1.000000e+00 : f32
    %487 = vector.broadcast %cst_135 : f32 to vector<2x128xf32>
    %488 = arith.addf %487, %486 : vector<2x128xf32>
    %489 = arith.divf %487, %488 : vector<2x128xf32>
    %490 = arith.mulf %481, %432 : vector<2x128xf32>
    %491 = arith.mulf %475, %483 : vector<2x128xf32>
    %492 = arith.addf %490, %491 : vector<2x128xf32>
    %493 = math.tanh %492 : vector<2x128xf32>
    %494 = arith.mulf %489, %493 : vector<2x128xf32>
    %c14_136 = arith.constant 14 : index
    %c0_137 = arith.constant 0 : index
    %495 = vector.load %arg13[%c14_136, %c0_137] : memref<16x128xf32, #tpu.memory_space<vmem>>, vector<2x128xf32>
    tpu.vector_store %arg13[%c14_136, %c0_137], %465 {strides = array<i32>} : memref<16x128xf32, #tpu.memory_space<vmem>>, vector<2x128xf32>,
    %c0_138 = arith.constant 0 : index
    %c0_139 = arith.constant 0 : index
    %496 = vector.load %arg14[%c0_138, %c0_139] : memref<16x128xf32, #tpu.memory_space<vmem>>, vector<2x128xf32>
    tpu.vector_store %arg14[%c0_138, %c0_139], %494 {strides = array<i32>} : memref<16x128xf32, #tpu.memory_space<vmem>>, vector<2x128xf32>,
    %c0_140 = arith.constant 0 : index
    %c0_141 = arith.constant 0 : index
    %497 = vector.load %arg13[%c0_140, %c0_141] : memref<16x128xf32, #tpu.memory_space<vmem>>, vector<16x128xf32>
    %498 = arith.truncf %497 : vector<16x128xf32> to vector<16x128xbf16>
    %c0_142 = arith.constant 0 : index
    %c0_143 = arith.constant 0 : index
    %499 = vector.load %arg7[%c0_142, %c0_143] : memref<128x32xbf16, #tpu.memory_space<vmem>>, vector<128x32xbf16>
    %cst_144 = arith.constant dense<0.000000e+00> : vector<16x32xf32>
    %500 = tpu.matmul %498, %499, %cst_144 {dimension_numbers = #tpu.dot_dimension_numbers<[1], [0], [0], [1], [0, 0, 1, 1], [], []>} : vector<16x128xbf16>, vector<128x32xbf16>, vector<16x32xf32> -> vector<16x32xf32>
    %c0_145 = arith.constant 0 : index
    %c0_146 = arith.constant 0 : index
    %501 = vector.load %arg14[%c0_145, %c0_146] : memref<16x128xf32, #tpu.memory_space<vmem>>, vector<16x128xf32>
    %502 = arith.truncf %501 : vector<16x128xf32> to vector<16x128xbf16>
    %c0_147 = arith.constant 0 : index
    %c0_148 = arith.constant 0 : index
    %503 = vector.load %arg8[%c0_147, %c0_148] : memref<128x32xbf16, #tpu.memory_space<vmem>>, vector<128x32xbf16>
    %cst_149 = arith.constant dense<0.000000e+00> : vector<16x32xf32>
    %504 = tpu.matmul %502, %503, %cst_149 {dimension_numbers = #tpu.dot_dimension_numbers<[1], [0], [0], [1], [0, 0, 1, 1], [], []>} : vector<16x128xbf16>, vector<128x32xbf16>, vector<16x32xf32> -> vector<16x32xf32>
    %505 = arith.addf %500, %504 : vector<16x32xf32>
    %c0_150 = arith.constant 0 : index
    %c0_151 = arith.constant 0 : index
    %506 = vector.load %arg9[%c0_150, %c0_151] : memref<1x32xf32, #tpu.memory_space<vmem>>, vector<1x32xf32>
    %507 = vector.broadcast %506 : vector<1x32xf32> to vector<16x32xf32>
    %508 = arith.addf %505, %507 : vector<16x32xf32>
    %509 = arith.addf %0, %508 : vector<16x32xf32>
    %c0_152 = arith.constant 0 : index
    %c0_153 = arith.constant 0 : index
    %510 = vector.load %arg10[%c0_152, %c0_153] : memref<16x32xf32, #tpu.memory_space<vmem>>, vector<16x32xf32>
    tpu.vector_store %arg10[%c0_152, %c0_153], %509 {strides = array<i32>} : memref<16x32xf32, #tpu.memory_space<vmem>>, vector<16x32xf32>,
    return
  }
}

</mosaic_0001>

<bundles_post_ra>
// kernel: mamba_temporal_model_apply.2
= control target key start
LH: loop header
LB: loop body
LE: loop exit
PB: predicated region body
PF: predicated region fallthrough
CT: control target
= control target key end

     0   :  { %15 = vsyncpa [#allocation7], 0  ;;  %s5124_s0 = inlined_call_operand.vmem [shape: f32[16,32], index: 0, kind: input, shape index: {}]   ;;  %s5125_s1 = inlined_call_operand.hbm [shape: bf16[32,512], index: 1, kind: input, shape index: {}]   ;;  %s5126_s2 = inlined_call_operand.hbm [shape: bf16[128,512], index: 2, kind: input, shape index: {}]   ;;  %s5127_s3 = inlined_call_operand.vmem [shape: f32[1,512], index: 3, kind: input, shape index: {}]   ;;  %s5128_s4 = inlined_call_operand.hbm [shape: bf16[32,512], index: 4, kind: input, shape index: {}]   ;;  %s5129_s5 = inlined_call_operand.hbm [shape: bf16[128,512], index: 5, kind: input, shape index: {}]   ;;  %s5130_s6 = inlined_call_operand.vmem [shape: f32[1,512], index: 6, kind: input, shape index: {}]   ;;  %s5131_s7 = inlined_call_operand.hbm [shape: bf16[128,32], index: 7, kind: input, shape index: {}]   ;;  %s5132_s8 = inlined_call_operand.hbm [shape: bf16[128,32], index: 8, kind: input, shape index: {}]   ;;  %s5133_s9 = inlined_call_operand.vmem [shape: f32[1,32], index: 9, kind: input, shape index: {}]   ;;  %s5134_s10 = inlined_call_operand.vmem [shape: f32[16,32], index: 10, kind: output, shape index: {}]  }
   0x1   :  { %16 = vsyncpa [#allocation9], 0 }
   0x2   :  { %17 = vsyncpa [#allocation12], 0 }
   0x3   :  { %18 = vsyncpa [#allocation15], 0  ;;  %s38_s15 = sshll.u32 %s5126_s2, 4  ;;  %s4120_s16 = smov [#allocation8]   ;;  %s39_s15 = int_to_ptr.hbm [resolvable:$true] %s38_s15 }
   0x4   :  { %s40_s17 = sshll.u32 %s4120_s16, 4  ;;  %s66_s20 = sshll.u32 %s5129_s5, 4  ;;  %s41_s17 = int_to_ptr.vmem [resolvable:$true] %s40_s17  ;;  %s67_s20 = int_to_ptr.hbm [resolvable:$true] %s66_s20 }
   0x5   :  { %s4121_s21 = smov 256   ;;  %s4122_s22 = smov 16  }
   0x6   :  { %46 = dma.hbm_to_vmem [thread:$0]  %s39_s15, 4096, %s41_s17, [#allocation9], %s4121_s21, %s4121_s21, %s4122_s22  }
   0x7   :  { %s4123_s23 = smov [#allocation11]   ;;  %s25_s27 = sshll.u32 %s5125_s1, 4  ;;  %s26_s27 = int_to_ptr.hbm [resolvable:$true] %s25_s27 }
   0x8   :  { %s68_s24 = sshll.u32 %s4123_s23, 4  ;;  %s53_s29 = sshll.u32 %s5128_s4, 4  ;;  %s69_s24 = int_to_ptr.vmem [resolvable:$true] %s68_s24  ;;  %s54_s29 = int_to_ptr.hbm [resolvable:$true] %s53_s29 }
   0x9   :  { %74 = dma.hbm_to_vmem [thread:$0]  %s67_s20, 4096, %s69_s24, [#allocation12], %s4121_s21, %s4121_s21, %s4122_s22  }
   0xa   :  { %s4124_s30 = smov [#allocation6]   ;;  %s4125_s5 = smov [#allocation10]  }
   0xb   :  { %s27_s11 = sshll.u32 %s4124_s30, 4  ;;  %s55_s12 = sshll.u32 %s4125_s5, 4  ;;  %s28_s11 = int_to_ptr.vmem [resolvable:$true] %s27_s11  ;;  %s56_s12 = int_to_ptr.vmem [resolvable:$true] %s55_s12 }
   0xc   :  { %33 = dma.hbm_to_vmem [thread:$0]  %s26_s27, 1024, %s28_s11, [#allocation7], %s4121_s21, %s4121_s21, %s4122_s22  }
   0xd   :  { %s81_s15 = sshll.u32 %s5131_s7, 4  ;;  %s4126_s1 = smov [#allocation13]   ;;  %s82_s15 = int_to_ptr.hbm [resolvable:$true] %s81_s15 }
   0xe   :  { %61 = dma.hbm_to_vmem [thread:$0]  %s54_s29, 1024, %s56_s12, [#allocation9], %s4121_s21, %s4121_s21, %s4122_s22  }
   0xf   :  { %s83_s16 = sshll.u32 %s4126_s1, 4  ;;  %s94_s4 = sshll.u32 %s5132_s8, 4  ;;  %s84_s16 = int_to_ptr.vmem [resolvable:$true] %s83_s16  ;;  %s95_s4 = int_to_ptr.hbm [resolvable:$true] %s94_s4 }
  0x10   :  { %s4127_s19 = smov 64   ;;  %s4128_s20 = smov 4  }
  0x11   :  { %89 = dma.hbm_to_vmem [thread:$0]  %s82_s15, 1024, %s84_s16, [#allocation12], %s4127_s19, %s4127_s19, %s4128_s20  }
  0x12   :  { %s4129_s23 = smov [#allocation14]  }
  0x13   :  { %s96_s24 = sshll.u32 %s4129_s23, 4  ;;  %s97_s24 = int_to_ptr.vmem [resolvable:$true] %s96_s24 }
  0x14   :  { %102 = dma.hbm_to_vmem [thread:$0]  %s95_s4, 1024, %s97_s24, [#allocation15], %s4127_s19, %s4127_s19, %s4128_s20  }
  0x15   :  { %4112 = dma.done.wait [#allocation7], 1024  }
  0x16   :  { %4113 = vsyncadd [#allocation7], 4294966272 }
  0x17   :  { %4114 = dma.done.wait [#allocation9], 5120  }
  0x18   :  { %4115 = vsyncadd [#allocation9], 4294962176 }
  0x19   :  { %4116 = dma.done.wait [#allocation12], 5120  }
  0x1a   :  { %4117 = vsyncadd [#allocation12], 4294962176 }
  0x1b   :  { %4118 = dma.done.wait [#allocation15], 1024  }
  0x1c   :  { %4119 = vsyncadd [#allocation15], 4294966272  ;;  %v3180_v0 = vld [vmem:[#allocation6 + $0x20] sm:$0xf]  ;;  %v3608_v1 = vld [vmem:[#allocation6 + $0x2c] sm:$0xf0] }
  0x1d   :  { %v3606_v2 = vld [vmem:[#allocation6 + $0x24] sm:$0xf]  ;;  %v3181_v3 = vor.u32 %v3608_v1, %v3180_v0  ;;  %v3182_v4 = vld [vmem:[#allocation6 + $0x30] sm:$0xf0]  ;;  %v3216_v5 = vld [vmem:[#allocation10 + $0x20] sm:$0xf] }
  0x1e   :  { %v3616_v6 = vld [vmem:[#allocation10 + $0x2c] sm:$0xf0]  ;;  %v3185_v7 = vor.u32 %v3606_v2, %v3182_v4  ;;  %v3614_v9 = vld [vmem:[#allocation10 + $0x24] sm:$0xf]  ;;  %v3218_v10 = vld [vmem:[#allocation10 + $0x30] sm:$0xf0] }
  0x1f   :  { %v3217_v8 = vor.u32 %v3616_v6, %v3216_v5  ;;  %v3164_v11 = vld [vmem:[#allocation6] sm:$0xf]  ;;  %201 = vmatpush.bf16.msra.mxu2 %v3181_v3  ;;  %v3221_v12 = vor.u32 %v3614_v9, %v3218_v10  ;;  %v3604_v13 = vld [vmem:[#allocation6 + $0xc] sm:$0xf0]  ;;  %v3602_v14 = vld [vmem:[#allocation6 + $0x4] sm:$0xf] }
  0x20   :  { %v3166_v15 = vld [vmem:[#allocation6 + $0x10] sm:$0xf0]  ;;  %215 = vmatpush.bf16.msra.mxu3 %v3185_v7  ;;  %v3165_v16 = vor.u32 %v3604_v13, %v3164_v11  ;;  %v3200_v18 = vld [vmem:[#allocation10] sm:$0xf]  ;;  %v3612_v19 = vld [vmem:[#allocation10 + $0xc] sm:$0xf0] }
  0x21   :  { %323 = vmatpush.bf16.msra.mxu0 %v3217_v8  ;;  %v3169_v17 = vor.u32 %v3602_v14, %v3166_v15  ;;  %v3610_v20 = vld [vmem:[#allocation10 + $0x4] sm:$0xf]  ;;  %337 = vmatpush.bf16.msra.mxu1 %v3221_v12  ;;  %v3201_v21 = vor.u32 %v3612_v19, %v3200_v18  ;;  %v3202_v22 = vld [vmem:[#allocation10 + $0x10] sm:$0xf0]  ;;  %v3348_v23 = vld [vmem:[#allocation8 + $0xe0] sm:$0xf] }
  0x22   :  { %v3648_v24 = vld [vmem:[#allocation8 + $0xec] sm:$0xf0]  ;;  %v3205_v25 = vor.u32 %v3610_v20, %v3202_v22  ;;  %v3646_v27 = vld [vmem:[#allocation8 + $0xe4] sm:$0xf]  ;;  %v3350_v28 = vld [vmem:[#allocation8 + $0xf0] sm:$0xf0] }
  0x23   :  { %v4204_v26 = vor.u32 %v3648_v24, %v3348_v23  ;;  %v130_v29 = vld [vmem:[%s5124_s0] sm:$0xff]  ;;  %202 = vmatpush.bf16.msra.mxu2 %v3165_v16  ;;  %v4209_v30 = vor.u32 %v3646_v27, %v3350_v28  ;;  %v131_v31 = vld [vmem:[%s5124_s0 + $0x8] sm:$0xff]  ;;  %vm191_vm0 = vcmask 261120   ;;  %v3644_v33 = vld [vmem:[#allocation8 + $0xcc] sm:$0xf0] }
  0x24   :  { %v3332_v32 = vld [vmem:[#allocation8 + $0xc0] sm:$0xf]  ;;  %216 = vmatpush.bf16.msra.mxu3 %v3169_v17  ;;  %v4214_v34 = vpack.c.bf16 %v131_v31, %v130_v29  ;;  %v3642_v35 = vld [vmem:[#allocation8 + $0xc4] sm:$0xf]  ;;  %v3334_v36 = vld [vmem:[#allocation8 + $0xd0] sm:$0xf0] }
  0x25   :  { %5216 = vst [vmem:[#allocation20_spill] sm:$0xff] %v4204_v26  ;;  %324 = vmatpush.bf16.msra.mxu0 %v3201_v21  ;;  %v3188_v37 = vld [vmem:[#allocation6 + $0x28] sm:$0xf]  ;;  %338 = vmatpush.bf16.msra.mxu1 %v3205_v25  ;;  %v4217_v38 = vor.u32 %v3644_v33, %v3332_v32  ;;  %v3609_v39 = vld [vmem:[#allocation6 + $0x34] sm:$0xf0]  ;;  %v4222_v42 = vor.u32 %v3642_v35, %v3334_v36 }
  0x26   :  { %5217 = vst [vmem:[#allocation21_spill] sm:$0xff] %v4209_v30  ;;  %v3607_v40 = vld [vmem:[#allocation6 + $0x2c] sm:$0xf]  ;;  %v3190_v41 = vld [vmem:[#allocation6 + $0x38] sm:$0xf0]  ;;  %3194 = vmatmul.msk.bf16.vlgmr.msra.gmra.mxu2 %vm191_vm0, %v4214_v34  ;;  %v3189_v43 = vor.u32 %v3609_v39, %v3188_v37 }
  0x27   :  { %5218 = vst [vmem:[#allocation22_spill] sm:$0xff] %v4217_v38  ;;  %v3193_v44 = vor.u32 %v3607_v40, %v3190_v41  ;;  %v3316_v45 = vld [vmem:[#allocation8 + $0xa0] sm:$0xf]  ;;  %v3640_v46 = vld [vmem:[#allocation8 + $0xac] sm:$0xf0]  ;;  %3195 = vmatmul.msk.bf16.vlgmr.msra.gmra.mxu3 %vm191_vm0, %v4214_v34 }
  0x28   :  { %5219 = vst [vmem:[#allocation23_spill] sm:$0xff] %v4222_v42  ;;  %v3638_v47 = vld [vmem:[#allocation8 + $0xa4] sm:$0xf]  ;;  %v3318_v48 = vld [vmem:[#allocation8 + $0xb0] sm:$0xf0]  ;;  %3230 = vmatmul.msk.bf16.vlgmr.msra.gmra.mxu0 %vm191_vm0, %v4214_v34  ;;  %229 = vmatpush.bf16.msrb.mxu2 %v3189_v43  ;;  %v4229_v54 = vor.u32 %v3640_v46, %v3316_v45 }
  0x29   :  { %609 = vmatpush.bf16.msrb.mxu0 %v4204_v26  ;;  %622 = vmatpush.bf16.msrb.mxu1 %v4209_v30  ;;  %v3172_v49 = vld [vmem:[#allocation6 + $0x8] sm:$0xf]  ;;  %v3605_v50 = vld [vmem:[#allocation6 + $0x14] sm:$0xf0]  ;;  %v3603_v52 = vld [vmem:[#allocation6 + $0xc] sm:$0xf]  ;;  %v4234_v58 = vor.u32 %v3638_v47, %v3318_v48 }
  0x2a   :  { %243 = vmatpush.bf16.msrb.mxu3 %v3193_v44  ;;  %v3173_v51 = vor.u32 %v3605_v50, %v3172_v49  ;;  %v3174_v53 = vld [vmem:[#allocation6 + $0x18] sm:$0xf0]  ;;  %5220 = vst [vmem:[#allocation24_spill] sm:$0xff] %v4229_v54  ;;  %v3300_v56 = vld [vmem:[#allocation8 + $0x80] sm:$0xf]  ;;  %3231 = vmatmul.msk.bf16.vlgmr.msra.gmra.mxu1 %vm191_vm0, %v4214_v34 }
  0x2b   :  { %v3177_v55 = vor.u32 %v3603_v52, %v3174_v53  ;;  %v3636_v57 = vld [vmem:[#allocation8 + $0x8c] sm:$0xf0]  ;;  %5221 = vst [vmem:[#allocation25_spill] sm:$0xff] %v4234_v58  ;;  %v3224_v59 = vld [vmem:[#allocation10 + $0x28] sm:$0xf] }
  0x2c   :  { %v3617_v60 = vld [vmem:[#allocation10 + $0x34] sm:$0xf0]  ;;  %v3615_v61 = vld [vmem:[#allocation10 + $0x2c] sm:$0xf]  ;;  %v3634_v62 = vld [vmem:[#allocation8 + $0x84] sm:$0xf]  ;;  %230 = vmatpush.bf16.msrb.mxu2 %v3173_v51  ;;  %v4237_v4 = vor.u32 %v3636_v57, %v3300_v56 }
  0x2d   :  { %610 = vmatpush.bf16.msrb.mxu0 %v4217_v38  ;;  %623 = vmatpush.bf16.msrb.mxu1 %v4222_v42  ;;  %v3302_v63 = vld [vmem:[#allocation8 + $0x90] sm:$0xf0]  ;;  %v3225_v0 = vor.u32 %v3617_v60, %v3224_v59  ;;  %v3226_v1 = vld [vmem:[#allocation10 + $0x38] sm:$0xf0]  ;;  %v3208_v3 = vld [vmem:[#allocation10 + $0x8] sm:$0xf] }
  0x2e   :  { %244 = vmatpush.bf16.msrb.mxu3 %v3177_v55  ;;  %v3229_v2 = vor.u32 %v3615_v61, %v3226_v1  ;;  %v3613_v5 = vld [vmem:[#allocation10 + $0x14] sm:$0xf0]  ;;  %v3611_v6 = vld [vmem:[#allocation10 + $0xc] sm:$0xf]  ;;  %v3210_v7 = vld [vmem:[#allocation10 + $0x18] sm:$0xf0]  ;;  %v4240_v8 = vor.u32 %v3634_v62, %v3302_v63 }
  0x2f   :  { %v3284_v9 = vld [vmem:[#allocation8 + $0x60] sm:$0xf]  ;;  %v3632_v10 = vld [vmem:[#allocation8 + $0x6c] sm:$0xf0]  ;;  %v3209_v11 = vor.u32 %v3613_v5, %v3208_v3  ;;  %v3213_v12 = vor.u32 %v3611_v6, %v3210_v7  ;;  %v3630_v13 = vld [vmem:[#allocation8 + $0x64] sm:$0xf] }
  0x30   :  { %351 = vmatpush.bf16.msra.mxu2 %v3225_v0  ;;  %v3286_v14 = vld [vmem:[#allocation8 + $0x70] sm:$0xf0]  ;;  %v3356_v15 = vld [vmem:[#allocation8 + $0xe8] sm:$0xf]  ;;  %v3649_v16 = vld [vmem:[#allocation8 + $0xf4] sm:$0xf0]  ;;  %v4243_v17 = vor.u32 %v3632_v10, %v3284_v9 }
  0x31   :  { %611 = vmatpush.bf16.msrb.mxu0 %v4229_v54  ;;  %624 = vmatpush.bf16.msrb.mxu1 %v4234_v58  ;;  %v3647_v18 = vld [vmem:[#allocation8 + $0xec] sm:$0xf]  ;;  %v3358_v19 = vld [vmem:[#allocation8 + $0xf8] sm:$0xf0]  ;;  %v4246_v20 = vor.u32 %v3630_v13, %v3286_v14  ;;  %v3268_v21 = vld [vmem:[#allocation8 + $0x40] sm:$0xf]  ;;  %v4248_v23 = vor.u32 %v3649_v16, %v3356_v15 }
  0x32   :  { %365 = vmatpush.bf16.msra.mxu3 %v3229_v2  ;;  %v3628_v22 = vld [vmem:[#allocation8 + $0x4c] sm:$0xf0]  ;;  %v3626_v24 = vld [vmem:[#allocation8 + $0x44] sm:$0xf]  ;;  %v3270_v25 = vld [vmem:[#allocation8 + $0x50] sm:$0xf0]  ;;  %v4250_v27 = vor.u32 %v3647_v18, %v3358_v19 }
  0x33   :  { %v3340_v28 = vld [vmem:[#allocation8 + $0xc8] sm:$0xf]  ;;  %v3645_v29 = vld [vmem:[#allocation8 + $0xd4] sm:$0xf0]  ;;  %v4253_v31 = vor.u32 %v3628_v22, %v3268_v21  ;;  %v3643_v32 = vld [vmem:[#allocation8 + $0xcc] sm:$0xf]  ;;  %v4258_v35 = vor.u32 %v3626_v24, %v3270_v25 }
  0x34   :  { %352 = vmatpush.bf16.msra.mxu2 %v3209_v11  ;;  %v3342_v33 = vld [vmem:[#allocation8 + $0xd8] sm:$0xf0]  ;;  %v3252_v36 = vld [vmem:[#allocation8 + $0x20] sm:$0xf]  ;;  %v3624_v37 = vld [vmem:[#allocation8 + $0x2c] sm:$0xf0]  ;;  %v4263_v39 = vor.u32 %v3645_v29, %v3340_v28 }
  0x35   :  { %612 = vmatpush.bf16.msrb.mxu0 %v4237_v4  ;;  %625 = vmatpush.bf16.msrb.mxu1 %v4240_v8  ;;  %v3622_v40 = vld [vmem:[#allocation8 + $0x24] sm:$0xf]  ;;  %v3254_v41 = vld [vmem:[#allocation8 + $0x30] sm:$0xf0]  ;;  %v4266_v43 = vor.u32 %v3643_v32, %v3342_v33  ;;  %v3324_v44 = vld [vmem:[#allocation8 + $0xa8] sm:$0xf]  ;;  %v4269_v46 = vor.u32 %v3624_v37, %v3252_v36 }
  0x36   :  { %366 = vmatpush.bf16.msra.mxu3 %v3213_v12  ;;  %3196 = vmatmul.msk.bf16.vlgmr.msrb.gmra.mxu2 %vm191_vm0, %v4214_v34  ;;  %v3641_v45 = vld [vmem:[#allocation8 + $0xb4] sm:$0xf0]  ;;  %v3639_v47 = vld [vmem:[#allocation8 + $0xac] sm:$0xf]  ;;  %v3326_v48 = vld [vmem:[#allocation8 + $0xb8] sm:$0xf0]  ;;  %v4272_v50 = vor.u32 %v3622_v40, %v3254_v41 }
  0x37   :  { %3197 = vmatmul.msk.bf16.vlgmr.msrb.gmra.mxu3 %vm191_vm0, %v4214_v34  ;;  %v3236_v49 = vld [vmem:[#allocation8] sm:$0xf]  ;;  %v3620_v51 = vld [vmem:[#allocation8 + $0xc] sm:$0xf0]  ;;  %v3618_v52 = vld [vmem:[#allocation8 + $0x4] sm:$0xf]  ;;  %v4275_v55 = vor.u32 %v3641_v45, %v3324_v44  ;;  %v4278_v60 = vor.u32 %v3639_v47, %v3326_v48 }
  0x38   :  { %635 = vmatpush.bf16.msrb.mxu2 %v4248_v23  ;;  %v3238_v53 = vld [vmem:[#allocation8 + $0x10] sm:$0xf0]  ;;  %v3479_v56 = vld [vmem:[#allocation11 + $0xe0] sm:$0xf]  ;;  %v3680_v57 = vld [vmem:[#allocation11 + $0xec] sm:$0xf0]  ;;  %v4281_v0 = vor.u32 %v3620_v51, %v3236_v49 }
  0x39   :  { %613 = vmatpush.bf16.msrb.mxu0 %v4243_v17  ;;  %626 = vmatpush.bf16.msrb.mxu1 %v4246_v20  ;;  %v3678_v59 = vld [vmem:[#allocation11 + $0xe4] sm:$0xf]  ;;  %v3481_v61 = vld [vmem:[#allocation11 + $0xf0] sm:$0xf0]  ;;  %v3308_v62 = vld [vmem:[#allocation8 + $0x88] sm:$0xf]  ;;  %v4284_v3 = vor.u32 %v3618_v52, %v3238_v53  ;;  %v4286_v5 = vor.u32 %v3680_v57, %v3479_v56 }
  0x3a   :  { %648 = vmatpush.bf16.msrb.mxu3 %v4250_v27  ;;  %v3637_v63 = vld [vmem:[#allocation8 + $0x94] sm:$0xf0]  ;;  %v3635_v1 = vld [vmem:[#allocation8 + $0x8c] sm:$0xf]  ;;  %v3310_v2 = vld [vmem:[#allocation8 + $0x98] sm:$0xf0]  ;;  %v4289_v6 = vor.u32 %v3678_v59, %v3481_v61 }
  0x3b   :  { %5222 = vst [vmem:[#allocation26_spill] sm:$0xff] %v4286_v5  ;;  %v4291_v7 = vor.u32 %v3637_v63, %v3308_v62  ;;  %v3463_v9 = vld [vmem:[#allocation11 + $0xc0] sm:$0xf]  ;;  %v3676_v10 = vld [vmem:[#allocation11 + $0xcc] sm:$0xf0]  ;;  %v4294_v11 = vor.u32 %v3635_v1, %v3310_v2  ;;  %v5139_v25 = vmov 0  }
  0x3c   :  { %636 = vmatpush.bf16.msrb.mxu2 %v4263_v39  ;;  %5223 = vst [vmem:[#allocation27_spill] sm:$0xff] %v4289_v6  ;;  %v3674_v12 = vld [vmem:[#allocation11 + $0xc4] sm:$0xf]  ;;  %v3465_v13 = vld [vmem:[#allocation11 + $0xd0] sm:$0xf0]  ;;  %v4299_v19 = vor.u32 %v3676_v10, %v3463_v9 }
  0x3d   :  { %614 = vmatpush.bf16.msrb.mxu0 %v4253_v31  ;;  %627 = vmatpush.bf16.msrb.mxu1 %v4258_v35  ;;  %v3292_v14 = vld [vmem:[#allocation8 + $0x68] sm:$0xf]  ;;  %v3633_v15 = vld [vmem:[#allocation8 + $0x74] sm:$0xf0]  ;;  %v3631_v16 = vld [vmem:[#allocation8 + $0x6c] sm:$0xf]  ;;  %v4303_v21 = vor.u32 %v3674_v12, %v3465_v13 }
  0x3e   :  { %649 = vmatpush.bf16.msrb.mxu3 %v4266_v43  ;;  %v3294_v18 = vld [vmem:[#allocation8 + $0x78] sm:$0xf0]  ;;  %5224 = vst [vmem:[#allocation28_spill] sm:$0xff] %v4299_v19  ;;  %v3447_v22 = vld [vmem:[#allocation11 + $0xa0] sm:$0xf]  ;;  %v4307_v28 = vor.u32 %v3633_v15, %v3292_v14 }
  0x3f   :  { %5225 = vst [vmem:[#allocation29_spill] sm:$0xff] %v4303_v21  ;;  %v3672_v24 = vld [vmem:[#allocation11 + $0xac] sm:$0xf0]  ;;  %v4309_v29 = vor.u32 %v3631_v16, %v3294_v18  ;;  %v3670_v32 = vld [vmem:[#allocation11 + $0xa4] sm:$0xf] }
  0x40   :  { %637 = vmatpush.bf16.msrb.mxu2 %v4275_v55  ;;  %v3449_v33 = vld [vmem:[#allocation11 + $0xb0] sm:$0xf0]  ;;  %v3276_v36 = vld [vmem:[#allocation8 + $0x48] sm:$0xf]  ;;  %v3629_v37 = vld [vmem:[#allocation8 + $0x54] sm:$0xf0]  ;;  %v4315_v44 = vor.u32 %v3672_v24, %v3447_v22 }
  0x41   :  { %615 = vmatpush.bf16.msrb.mxu0 %v4269_v46  ;;  %628 = vmatpush.bf16.msrb.mxu1 %v4272_v50  ;;  %v3627_v40 = vld [vmem:[#allocation8 + $0x4c] sm:$0xf]  ;;  %v3278_v41 = vld [vmem:[#allocation8 + $0x58] sm:$0xf0]  ;;  %v4320_v45 = vor.u32 %v3670_v32, %v3449_v33  ;;  %v3431_v47 = vld [vmem:[#allocation11 + $0x80] sm:$0xf]  ;;  %v4324_v49 = vor.u32 %v3629_v37, %v3276_v36 }
  0x42   :  { %650 = vmatpush.bf16.msrb.mxu3 %v4278_v60  ;;  %5226 = vst [vmem:[#allocation30_spill] sm:$0xff] %v4315_v44  ;;  %v3668_v48 = vld [vmem:[#allocation11 + $0x8c] sm:$0xf0]  ;;  %v4326_v51 = vor.u32 %v3627_v40, %v3278_v41  ;;  %v3666_v52 = vld [vmem:[#allocation11 + $0x84] sm:$0xf] }
  0x43   :  { %5227 = vst [vmem:[#allocation31_spill] sm:$0xff] %v4320_v45  ;;  %v3433_v53 = vld [vmem:[#allocation11 + $0x90] sm:$0xf0]  ;;  %v3260_v56 = vld [vmem:[#allocation8 + $0x28] sm:$0xf] }
  0x44   :  { %638 = vmatpush.bf16.msrb.mxu2 %v4291_v7  ;;  %v3625_v57 = vld [vmem:[#allocation8 + $0x34] sm:$0xf0]  ;;  %v3623_v59 = vld [vmem:[#allocation8 + $0x2c] sm:$0xf]  ;;  %v3262_v61 = vld [vmem:[#allocation8 + $0x38] sm:$0xf0]  ;;  %v4332_v62 = vor.u32 %v3666_v52, %v3433_v53 }
  0x45   :  { %616 = vmatpush.bf16.msrb.mxu0 %v4281_v0  ;;  %629 = vmatpush.bf16.msrb.mxu1 %v4284_v3  ;;  %v3415_v63 = vld [vmem:[#allocation11 + $0x60] sm:$0xf]  ;;  %v3664_v1 = vld [vmem:[#allocation11 + $0x6c] sm:$0xf0]  ;;  %v3662_v2 = vld [vmem:[#allocation11 + $0x64] sm:$0xf]  ;;  %v4336_v9 = vor.u32 %v3625_v57, %v3260_v56  ;;  %v4338_v10 = vor.u32 %v3623_v59, %v3262_v61 }
  0x46   :  { %651 = vmatpush.bf16.msrb.mxu3 %v4294_v11  ;;  %3232 = vmatmul.msk.bf16.vlgmr.msra.gmra.mxu2 %vm191_vm0, %v4214_v34  ;;  %5229 = vst [vmem:[#allocation33_spill] sm:$0xff] %v4332_v62  ;;  %v3417_v12 = vld [vmem:[#allocation11 + $0x70] sm:$0xf0]  ;;  %v3244_v13 = vld [vmem:[#allocation8 + $0x8] sm:$0xf]  ;;  %v4341_v22 = vor.u32 %v3664_v1, %v3415_v63 }
  0x47   :  { %3233 = vmatmul.msk.bf16.vlgmr.msra.gmra.mxu3 %vm191_vm0, %v4214_v34  ;;  %v4329_v34 = vor.u32 %v3668_v48, %v3431_v47  ;;  %v3621_v14 = vld [vmem:[#allocation8 + $0x14] sm:$0xf0]  ;;  %v3619_v15 = vld [vmem:[#allocation8 + $0xc] sm:$0xf]  ;;  %v3246_v16 = vld [vmem:[#allocation8 + $0x18] sm:$0xf0]  ;;  %v4344_v36 = vor.u32 %v3662_v2, %v3417_v12 }
  0x48   :  { %617 = vmatmul.bf16.vlgmr.msrb.gmra.mxu0 %v5139_v25  ;;  %630 = vmatmul.bf16.vlgmr.msrb.gmra.mxu1 %v5139_v25  ;;  %v3487_v18 = vld [vmem:[#allocation11 + $0xe8] sm:$0xf]  ;;  %5230 = vst [vmem:[#allocation34_spill] sm:$0xff] %v4341_v22  ;;  %v3681_v24 = vld [vmem:[#allocation11 + $0xf4] sm:$0xf0]  ;;  %v4348_v41 = vor.u32 %v3621_v14, %v3244_v13  ;;  %v4350_v47 = vor.u32 %v3619_v15, %v3246_v16 }
  0x49   :  { %892 = vmatpush.bf16.msra.mxu0 %v4286_v5  ;;  %905 = vmatpush.bf16.msra.mxu1 %v4289_v6  ;;  %5228 = vst [vmem:[#allocation32_spill] sm:$0xff] %v4329_v34  ;;  %v3679_v32 = vld [vmem:[#allocation11 + $0xec] sm:$0xf]  ;;  %v3489_v33 = vld [vmem:[#allocation11 + $0xf8] sm:$0xf0]  ;;  %v4352_v53 = vor.u32 %v3681_v24, %v3487_v18 }
  0x4a   :  { %639 = vmatpush.bf16.msrb.mxu2 %v4307_v28  ;;  %652 = vmatpush.bf16.msrb.mxu3 %v4309_v29  ;;  %5231 = vst [vmem:[#allocation35_spill] sm:$0xff] %v4344_v36  ;;  %v3399_v37 = vld [vmem:[#allocation11 + $0x40] sm:$0xf]  ;;  %v3660_v40 = vld [vmem:[#allocation11 + $0x4c] sm:$0xf0]  ;;  %v4354_v56 = vor.u32 %v3679_v32, %v3489_v33 }
  0x4b   :  { %5232 = vst [vmem:[#allocation36_spill] sm:$0xff] %v4348_v41  ;;  %v3658_v48 = vld [vmem:[#allocation11 + $0x44] sm:$0xf]  ;;  %v3401_v52 = vld [vmem:[#allocation11 + $0x50] sm:$0xf0]  ;;  %v4357_v61 = vor.u32 %v3660_v40, %v3399_v37 }
  0x4c   :  { %5233 = vst [vmem:[#allocation37_spill] sm:$0xff] %v4350_v47  ;;  %v3471_v57 = vld [vmem:[#allocation11 + $0xc8] sm:$0xf]  ;;  %v3677_v59 = vld [vmem:[#allocation11 + $0xd4] sm:$0xf0]  ;;  %v4360_v2 = vor.u32 %v3658_v48, %v3401_v52 }
  0x4d   :  { %893 = vmatpush.bf16.msra.mxu0 %v4299_v19  ;;  %906 = vmatpush.bf16.msra.mxu1 %v4303_v21  ;;  %5234 = vst [vmem:[#allocation38_spill] sm:$0xff] %v4352_v53  ;;  %v3675_v63 = vld [vmem:[#allocation11 + $0xcc] sm:$0xf]  ;;  %v3473_v1 = vld [vmem:[#allocation11 + $0xd8] sm:$0xf0]  ;;  %v4366_v16 = vor.u32 %v3677_v59, %v3471_v57 }
  0x4e   :  { %640 = vmatpush.bf16.msrb.mxu2 %v4324_v49  ;;  %653 = vmatpush.bf16.msrb.mxu3 %v4326_v51  ;;  %5235 = vst [vmem:[#allocation39_spill] sm:$0xff] %v4354_v56  ;;  %v3383_v12 = vld [vmem:[#allocation11 + $0x20] sm:$0xf]  ;;  %v3656_v13 = vld [vmem:[#allocation11 + $0x2c] sm:$0xf0]  ;;  %v4368_v18 = vor.u32 %v3675_v63, %v3473_v1 }
  0x4f   :  { %5236 = vst [vmem:[#allocation40_spill] sm:$0xff] %v4357_v61  ;;  %v3654_v14 = vld [vmem:[#allocation11 + $0x24] sm:$0xf]  ;;  %v3385_v15 = vld [vmem:[#allocation11 + $0x30] sm:$0xf0]  ;;  %v4371_v32 = vor.u32 %v3656_v13, %v3383_v12 }
  0x50   :  { %5237 = vst [vmem:[#allocation41_spill] sm:$0xff] %v4360_v2  ;;  %v3455_v24 = vld [vmem:[#allocation11 + $0xa8] sm:$0xf]  ;;  %v3673_v33 = vld [vmem:[#allocation11 + $0xb4] sm:$0xf0]  ;;  %v4375_v48 = vor.u32 %v3654_v14, %v3385_v15 }
  0x51   :  { %894 = vmatpush.bf16.msra.mxu0 %v4315_v44  ;;  %907 = vmatpush.bf16.msra.mxu1 %v4320_v45  ;;  %5238 = vst [vmem:[#allocation42_spill] sm:$0xff] %v4366_v16  ;;  %v3671_v37 = vld [vmem:[#allocation11 + $0xac] sm:$0xf]  ;;  %v3457_v40 = vld [vmem:[#allocation11 + $0xb8] sm:$0xf0]  ;;  %v4380_v63 = vor.u32 %v3673_v33, %v3455_v24 }
  0x52   :  { %641 = vmatpush.bf16.msrb.mxu2 %v4336_v9  ;;  %654 = vmatpush.bf16.msrb.mxu3 %v4338_v10  ;;  %5239 = vst [vmem:[#allocation43_spill] sm:$0xff] %v4368_v18  ;;  %v3367_v52 = vld [vmem:[#allocation11] sm:$0xf]  ;;  %v3650_v57 = vld [vmem:[#allocation11 + $0x4] sm:$0xf]  ;;  %v4382_v1 = vor.u32 %v3671_v37, %v3457_v40 }
  0x53   :  { %5240 = vst [vmem:[#allocation44_spill] sm:$0xff] %v4371_v32  ;;  %v3369_v59 = vld [vmem:[#allocation11 + $0x10] sm:$0xf0]  ;;  %v3439_v12 = vld [vmem:[#allocation11 + $0x88] sm:$0xf] }
  0x54   :  { %5241 = vst [vmem:[#allocation45_spill] sm:$0xff] %v4375_v48  ;;  %v3669_v14 = vld [vmem:[#allocation11 + $0x94] sm:$0xf0]  ;;  %v3667_v15 = vld [vmem:[#allocation11 + $0x8c] sm:$0xf] }
  0x55   :  { %895 = vmatpush.bf16.msra.mxu0 %v4329_v34  ;;  %908 = vmatpush.bf16.msra.mxu1 %v4332_v62  ;;  %5242 = vst [vmem:[#allocation46_spill] sm:$0xff] %v4380_v63  ;;  %v4392_v24 = vor.u32 %v3669_v14, %v3439_v12  ;;  %v3423_v37 = vld [vmem:[#allocation11 + $0x68] sm:$0xf]  ;;  %v3663_v40 = vld [vmem:[#allocation11 + $0x6c] sm:$0xf]  ;;  %v5250_v12 = vmov 0  }
  0x56   :  { %642 = vmatpush.bf16.msrb.mxu2 %v4348_v41  ;;  %655 = vmatpush.bf16.msrb.mxu3 %v4350_v47  ;;  %5243 = vst [vmem:[#allocation47_spill] sm:$0xff] %v4382_v1  ;;  %v3661_v14 = vld [vmem:[#allocation11 + $0x54] sm:$0xf0] }
  0x57   :  { %5246 = vst [vmem:[#allocation50_spill] sm:$0xff] %v4392_v24 }
  0x59   :  { %896 = vmatpush.bf16.msra.mxu0 %v4341_v22  ;;  %909 = vmatpush.bf16.msra.mxu1 %v4344_v36  ;;  %v3652_v36 = vld [vmem:[#allocation11 + $0xc] sm:$0xf0] }
  0x5a   :  { %918 = vmatpush.bf16.msra.mxu2 %v4352_v53  ;;  %931 = vmatpush.bf16.msra.mxu3 %v4354_v56  ;;  %v4385_v13 = vor.u32 %v3652_v36, %v3367_v52  ;;  %v3665_v36 = vld [vmem:[#allocation11 + $0x74] sm:$0xf0]  ;;  %v3425_v52 = vld [vmem:[#allocation11 + $0x78] sm:$0xf0] }
  0x5b   :  { %643 = vmatmul.bf16.vlgmr.msrb.gmra.mxu2 %v5139_v25  ;;  %656 = vmatmul.bf16.vlgmr.msrb.gmra.mxu3 %v5139_v25  ;;  %v4388_v25 = vor.u32 %v3650_v57, %v3369_v59  ;;  %v4402_v57 = vor.u32 %v3665_v36, %v3423_v37  ;;  %v3407_v59 = vld [vmem:[#allocation11 + $0x48] sm:$0xf] }
  0x5c   :  { %5244 = vst [vmem:[#allocation48_spill] sm:$0xff] %v4385_v13  ;;  %v4412_v37 = vor.u32 %v3661_v14, %v3407_v59  ;;  %v3375_v59 = vld [vmem:[#allocation11 + $0x8] sm:$0xf]  ;;  %v3653_v14 = vld [vmem:[#allocation11 + $0x14] sm:$0xf0] }
  0x5d   :  { %897 = vmatpush.bf16.msra.mxu0 %v4357_v61  ;;  %910 = vmatpush.bf16.msra.mxu1 %v4360_v2  ;;  %v3441_v2 = vld [vmem:[#allocation11 + $0x98] sm:$0xf0]  ;;  %5245 = vst [vmem:[#allocation49_spill] sm:$0xff] %v4388_v25 }
  0x5e   :  { %919 = vmatpush.bf16.msra.mxu2 %v4366_v16  ;;  %932 = vmatpush.bf16.msra.mxu3 %v4368_v18  ;;  %v4394_v33 = vor.u32 %v3667_v15, %v3441_v2  ;;  %5248 = vst [vmem:[#allocation52_spill] sm:$0xff] %v4402_v57  ;;  %v4404_v2 = vor.u32 %v3663_v40, %v3425_v52  ;;  %v3659_v15 = vld [vmem:[#allocation11 + $0x4c] sm:$0xf]  ;;  %v3391_v40 = vld [vmem:[#allocation11 + $0x28] sm:$0xf] }
  0x5f   :  { %5251 = vst [vmem:[#allocation54_spill] sm:$0xff] %v4412_v37  ;;  %v3657_v52 = vld [vmem:[#allocation11 + $0x34] sm:$0xf0] }
  0x60   :  { %5247 = vst [vmem:[#allocation51_spill] sm:$0xff] %v4394_v33 }
  0x61   :  { %898 = vmatpush.bf16.msra.mxu0 %v4371_v32  ;;  %911 = vmatpush.bf16.msra.mxu1 %v4375_v48  ;;  %5249 = vst [vmem:[#allocation53_spill] sm:$0xff] %v4404_v2 }
  0x62   :  { %920 = vmatpush.bf16.msra.mxu2 %v4380_v63  ;;  %933 = vmatpush.bf16.msra.mxu3 %v4382_v1 }
  0x65   :  { %899 = vmatpush.bf16.msra.mxu0 %v4385_v13  ;;  %912 = vmatpush.bf16.msra.mxu1 %v4388_v25  ;;  %v3409_v25 = vld [vmem:[#allocation11 + $0x58] sm:$0xf0] }
  0x66   :  { %921 = vmatpush.bf16.msra.mxu2 %v4392_v24  ;;  %934 = vmatpush.bf16.msra.mxu3 %v4394_v33  ;;  %v4414_v36 = vor.u32 %v3659_v15, %v3409_v25  ;;  %v3651_v25 = vld [vmem:[#allocation11 + $0xc] sm:$0xf]  ;;  %v3377_v15 = vld [vmem:[#allocation11 + $0x18] sm:$0xf0] }
  0x68   :  { %900 = vmatmul.bf16.vlgmr.msra.gmra.mxu0 %v5250_v12  ;;  %913 = vmatmul.bf16.vlgmr.msra.gmra.mxu1 %v5250_v12  ;;  %5252 = vst [vmem:[#allocation55_spill] sm:$0xff] %v4414_v36 }
  0x69   :  { %1030 = vmatpush.bf16.msrb.mxu0 %v4204_v26  ;;  %1043 = vmatpush.bf16.msrb.mxu1 %v4209_v30  ;;  %v3655_v30 = vld [vmem:[#allocation11 + $0x2c] sm:$0xf]  ;;  %v3393_v26 = vld [vmem:[#allocation11 + $0x38] sm:$0xf0] }
  0x6a   :  { %922 = vmatpush.bf16.msra.mxu2 %v4402_v57  ;;  %935 = vmatpush.bf16.msra.mxu3 %v4404_v2 }
  0x6d   :  { %1031 = vmatpush.bf16.msrb.mxu0 %v4217_v38  ;;  %1044 = vmatpush.bf16.msrb.mxu1 %v4222_v42  ;;  %v4420_v42 = vor.u32 %v3657_v52, %v3391_v40  ;;  %v4422_v38 = vor.u32 %v3655_v30, %v3393_v26  ;;  %v5257_v26 = vld [vmem:[#allocation35_spill] sm:$0xff]  ;;  %v5258_v30 = vld [vmem:[#allocation41_spill] sm:$0xff]  ;;  %v4487_v40 = vld [vmem:[%s5130_s6] sm:$0xf] }
  0x6e   :  { %923 = vmatpush.bf16.msra.mxu2 %v4412_v37  ;;  %936 = vmatpush.bf16.msra.mxu3 %v4414_v36  ;;  %v269_v52 = vperm.slane %v4487_v40, 0 }
  0x6f   :  { %5253 = vst [vmem:[#allocation56_spill] sm:$0xff] %v4420_v42 }
  0x70   :  { %5254 = vst [vmem:[#allocation57_spill] sm:$0xff] %v4422_v38 }
  0x71   :  { %1032 = vmatpush.bf16.msrb.mxu0 %v4229_v54  ;;  %1045 = vmatpush.bf16.msrb.mxu1 %v4234_v58  ;;  %v4428_v58 = vor.u32 %v3653_v14, %v3375_v59  ;;  %v4430_v54 = vor.u32 %v3651_v25, %v3377_v15  ;;  %v270_v59 = vperm.slane %v4487_v40, 1  ;;  %v141_v14 = vld [vmem:[%s5127_s3] sm:$0xf] }
  0x72   :  { %924 = vmatpush.bf16.msra.mxu2 %v4420_v42  ;;  %937 = vmatpush.bf16.msra.mxu3 %v4422_v38 }
  0x73   :  { %5255 = vst [vmem:[#allocation58_spill] sm:$0xff] %v4428_v58 }
  0x74   :  { %5256 = vst [vmem:[#allocation59_spill] sm:$0xff] %v4430_v54 }
  0x75   :  { %1033 = vmatpush.bf16.msrb.mxu0 %v4237_v4  ;;  %1046 = vmatpush.bf16.msrb.mxu1 %v4240_v8 }
  0x76   :  { %925 = vmatpush.bf16.msra.mxu2 %v4428_v58  ;;  %938 = vmatpush.bf16.msra.mxu3 %v4430_v54 }
  0x79   :  { %1034 = vmatpush.bf16.msrb.mxu0 %v4243_v17  ;;  %1047 = vmatpush.bf16.msrb.mxu1 %v4246_v20 }
  0x7a   :  { %1056 = vmatpush.bf16.msrb.mxu2 %v4248_v23  ;;  %1069 = vmatpush.bf16.msrb.mxu3 %v4250_v27 }
  0x7b   :  { %926 = vmatmul.bf16.vlgmr.msra.gmra.mxu2 %v5250_v12  ;;  %939 = vmatmul.bf16.vlgmr.msra.gmra.mxu3 %v5250_v12  ;;  %v5259_v12 = vld [vmem:[#allocation49_spill] sm:$0xff] }
  0x7d   :  { %1035 = vmatpush.bf16.msrb.mxu0 %v4253_v31  ;;  %1048 = vmatpush.bf16.msrb.mxu1 %v4258_v35 }
  0x7e   :  { %1057 = vmatpush.bf16.msrb.mxu2 %v4263_v39  ;;  %1070 = vmatpush.bf16.msrb.mxu3 %v4266_v43 }
  0x81   :  { %1036 = vmatpush.bf16.msrb.mxu0 %v4269_v46  ;;  %1049 = vmatpush.bf16.msrb.mxu1 %v4272_v50 }
  0x82   :  { %1058 = vmatpush.bf16.msrb.mxu2 %v4275_v55  ;;  %1071 = vmatpush.bf16.msrb.mxu3 %v4278_v60 }
  0x85   :  { %1037 = vmatpush.bf16.msrb.mxu0 %v4281_v0  ;;  %1050 = vmatpush.bf16.msrb.mxu1 %v4284_v3 }
  0x86   :  { %1059 = vmatpush.bf16.msrb.mxu2 %v4291_v7  ;;  %1072 = vmatpush.bf16.msrb.mxu3 %v4294_v11 }
  0x89   :  { %1172 = vmatpush.bf16.msra.mxu0 %v4286_v5  ;;  %1185 = vmatpush.bf16.msra.mxu1 %v4289_v6 }
  0x8a   :  { %1060 = vmatpush.bf16.msrb.mxu2 %v4307_v28  ;;  %1073 = vmatpush.bf16.msrb.mxu3 %v4309_v29 }
  0x8d   :  { %1173 = vmatpush.bf16.msra.mxu0 %v4299_v19  ;;  %1186 = vmatpush.bf16.msra.mxu1 %v4303_v21 }
  0x8e   :  { %1061 = vmatpush.bf16.msrb.mxu2 %v4324_v49  ;;  %1074 = vmatpush.bf16.msrb.mxu3 %v4326_v51 }
  0x91   :  { %1174 = vmatpush.bf16.msra.mxu0 %v4315_v44  ;;  %1187 = vmatpush.bf16.msra.mxu1 %v4320_v45 }
  0x92   :  { %1062 = vmatpush.bf16.msrb.mxu2 %v4336_v9  ;;  %1075 = vmatpush.bf16.msrb.mxu3 %v4338_v10 }
  0x95   :  { %1175 = vmatpush.bf16.msra.mxu0 %v4329_v34  ;;  %1188 = vmatpush.bf16.msra.mxu1 %v4332_v62 }
  0x96   :  { %1063 = vmatpush.bf16.msrb.mxu2 %v4348_v41  ;;  %1076 = vmatpush.bf16.msrb.mxu3 %v4350_v47 }
  0x99   :  { %1176 = vmatpush.bf16.msra.mxu0 %v4341_v22  ;;  %1189 = vmatpush.bf16.msra.mxu1 %v5257_v26 }
  0x9a   :  { %1198 = vmatpush.bf16.msra.mxu2 %v4352_v53  ;;  %1211 = vmatpush.bf16.msra.mxu3 %v4354_v56 }
  0x9d   :  { %1177 = vmatpush.bf16.msra.mxu0 %v4357_v61  ;;  %1190 = vmatpush.bf16.msra.mxu1 %v5258_v30 }
  0x9e   :  { %1199 = vmatpush.bf16.msra.mxu2 %v4366_v16  ;;  %1212 = vmatpush.bf16.msra.mxu3 %v4368_v18 }
  0xa1   :  { %1178 = vmatpush.bf16.msra.mxu0 %v4371_v32  ;;  %1191 = vmatpush.bf16.msra.mxu1 %v4375_v48  ;;  %v144_v48 = vperm.slane %v141_v14, 1 }
  0xa2   :  { %1200 = vmatpush.bf16.msra.mxu2 %v4380_v63  ;;  %1213 = vmatpush.bf16.msra.mxu3 %v4382_v1 }
  0xa5   :  { %1179 = vmatpush.bf16.msra.mxu0 %v4385_v13  ;;  %1192 = vmatpush.bf16.msra.mxu1 %v5259_v12  ;;  %v326_v25 = vpop.f32.mrf.mxu0  ;;  %v143_v12 = vperm.slane %v141_v14, 0 }
  0xa6   :  { %1201 = vmatpush.bf16.msra.mxu2 %v4392_v24  ;;  %1214 = vmatpush.bf16.msra.mxu3 %v4394_v33  ;;  %v327_v15 = vadd.f32 %v326_v25, %v269_v52 }
  0xa7   :  { %v340_v13 = vpop.f32.mrf.mxu1 }
  0xa8   :  { %373 = vst [vmem:[#allocation3] sm:$0xff] %v327_v15  ;;  %v341_v32 = vadd.f32 %v340_v13, %v270_v59 }
  0xa9   :  { %v204_v30 = vpop.f32.mrf.mxu2 }
  0xaa   :  { %1202 = vmatpush.bf16.msra.mxu2 %v4402_v57  ;;  %1215 = vmatpush.bf16.msra.mxu3 %v4404_v2  ;;  %374 = vst [vmem:[#allocation3 + $0x18] sm:$0xff] %v341_v32  ;;  %v218_v61 = vpop.f32.mrf.mxu3  ;;  %v145_v32 = vperm.slane %v141_v14, 2 }
  0xad   :  { %v328_v25 = vpop.f32.mrf.mxu0 }
  0xae   :  { %1203 = vmatpush.bf16.msra.mxu2 %v4412_v37  ;;  %1216 = vmatpush.bf16.msra.mxu3 %v4414_v36  ;;  %v205_v37 = vadd.f32 %v204_v30, %v143_v12  ;;  %v219_v36 = vadd.f32 %v218_v61, %v144_v48  ;;  %v329_v2 = vadd.f32 %v328_v25, %v269_v52  ;;  %v146_v61 = vperm.slane %v141_v14, 3 }
  0xaf   :  { %v342_v57 = vpop.f32.mrf.mxu1 }
  0xb0   :  { %251 = vst [vmem:[#allocation2 + $0x30] sm:$0xff] %v205_v37  ;;  %v343_v13 = vadd.f32 %v342_v57, %v270_v59 }
  0xb1   :  { %252 = vst [vmem:[#allocation2] sm:$0xff] %v219_v36  ;;  %v206_v15 = vpop.f32.mrf.mxu2 }
  0xb2   :  { %1204 = vmatpush.bf16.msra.mxu2 %v4420_v42  ;;  %1217 = vmatpush.bf16.msra.mxu3 %v4422_v38  ;;  %377 = vst [vmem:[#allocation3 + $0x28] sm:$0xff] %v329_v2  ;;  %v207_v42 = vadd.f32 %v206_v15, %v143_v12  ;;  %v220_v38 = vpop.f32.mrf.mxu3 }
  0xb3   :  { %378 = vst [vmem:[#allocation3 + $0x8] sm:$0xff] %v343_v13  ;;  %v221_v26 = vadd.f32 %v220_v38, %v144_v48 }
  0xb4   :  { %255 = vst [vmem:[#allocation2 + $0x8] sm:$0xff] %v207_v42 }
  0xb5   :  { %256 = vst [vmem:[#allocation2 + $0x20] sm:$0xff] %v221_v26  ;;  %v271_v26 = vperm.slane %v4487_v40, 2 }
  0xb6   :  { %1205 = vmatpush.bf16.msra.mxu2 %v4428_v58  ;;  %1218 = vmatpush.bf16.msra.mxu3 %v4430_v54 }
  0xb7   :  { %v445_v37 = vld [vmem:[#allocation2 + $0x30] sm:$0x3] }
  0xb8   :  { %v446_v57 = vld [vmem:[#allocation2] sm:$0x3] }
  0xb9   :  { %v232_v30 = vpop.f32.mrf.mxu2 }
  0xba   :  { %v233_v58 = vadd.f32 %v232_v30, %v145_v32  ;;  %v246_v22 = vpop.f32.mrf.mxu3  ;;  %v729_v33 = vld [vmem:[#allocation3 + $0x8] sm:$0xc0] }
  0xbb   :  { %v247_v54 = vadd.f32 %v246_v22, %v146_v61 }
  0xbc   :  { %253 = vst [vmem:[#allocation2 + $0x18] sm:$0xff] %v233_v58 }
  0xbd   :  { %254 = vst [vmem:[#allocation2 + $0x10] sm:$0xff] %v247_v54  ;;  %v272_v54 = vperm.slane %v4487_v40, 3 }
  0xc1   :  { %v234_v52 = vpop.f32.mrf.mxu2 }
  0xc2   :  { %v235_v25 = vadd.f32 %v234_v52, %v145_v32  ;;  %v248_v12 = vpop.f32.mrf.mxu3 }
  0xc3   :  { %v249_v38 = vadd.f32 %v248_v12, %v146_v61 }
  0xc4   :  { %257 = vst [vmem:[#allocation2 + $0x28] sm:$0xff] %v235_v25 }
  0xc5   :  { %v618_v36 = vpop.f32.mrf.mxu0  ;;  %v631_v59 = vpop.f32.mrf.mxu1  ;;  %258 = vst [vmem:[#allocation2 + $0x38] sm:$0xff] %v249_v38 }
  0xc6   :  { %v661_v2 = vadd.f32 %v618_v36, %v445_v37  ;;  %v662_v13 = vadd.f32 %v631_v59, %v446_v57 }
  0xc8   :  { %v3362_v42 = vmul.f32 -1.442695, %v661_v2  ;;  %v3363_v48 = vmul.f32 -1.442695, %v662_v13 }
  0xc9   :  { %v354_v58 = vpop.f32.mrf.mxu2 }
  0xca   :  { %3710 = vpow2.f32 %v3362_v42  ;;  %v355_v14 = vadd.f32 %v354_v58, %v271_v26  ;;  %v368_v15 = vpop.f32.mrf.mxu3 }
  0xcb   :  { %3712 = vpow2.f32 %v3363_v48  ;;  %v369_v37 = vadd.f32 %v368_v15, %v272_v54 }
  0xcc   :  { %375 = vst [vmem:[#allocation3 + $0x10] sm:$0xff] %v355_v14 }
  0xcd   :  { %v620_v22 = vpop.f32.mrf.mxu0  ;;  %v633_v30 = vpop.f32.mrf.mxu1  ;;  %376 = vst [vmem:[#allocation3 + $0x20] sm:$0xff] %v369_v37 }
  0xce   :  { %v448_v22 = vld [vmem:[#allocation2 + $0x10] sm:$0x3]  ;;  %v447_v30 = vld [vmem:[#allocation2 + $0x18] sm:$0x3] }
  0xd0   :  { %v3711_v32 = vpop.eup %3710 }
  0xd1   :  { %v3713_v36 = vpop.eup %3712  ;;  %v4504_v61 = vadd.f32 1.0, %v3711_v32  ;;  %v356_v2 = vpop.f32.mrf.mxu2 }
  0xd2   :  { %v687_v52 = vadd.f32 1.0, %v3713_v36  ;;  %v357_v57 = vadd.f32 %v356_v2, %v271_v26  ;;  %v370_v59 = vpop.f32.mrf.mxu3 }
  0xd3   :  { %3714 = vrcp.f32 %v4504_v61  ;;  %v371_v40 = vadd.f32 %v370_v59, %v272_v54  ;;  %vm674_vm2 = vweird.f32 %v4504_v61 }
  0xd4   :  { %3716 = vrcp.f32 %v687_v52  ;;  %379 = vst [vmem:[#allocation3 + $0x30] sm:$0xff] %v357_v57  ;;  %vm693_vm4 = vweird.f32 %v687_v52 }
  0xd5   :  { %380 = vst [vmem:[#allocation3 + $0x38] sm:$0xff] %v371_v40  ;;  %v728_v40 = vld [vmem:[#allocation3 + $0x28] sm:$0xc0] }
  0xd9   :  { %v3715_v25 = vpop.eup %3714 }
  0xda   :  { %v3717_v12 = vpop.eup %3716  ;;  %v670_v13 = vmul.f32 %v3715_v25, %v4504_v61  ;;  %vm675_vm1 = vweird.f32 %v3715_v25 }
  0xdb   :  { %v689_v38 = vmul.f32 %v3717_v12, %v687_v52  ;;  %vm694_vm3 = vweird.f32 %v3717_v12  ;;  %vm4511_vm5 = vmor %vm674_vm2, %vm675_vm1 }
  0xdc   :  { %v671_v48 = vsub.f32 1.0, %v670_v13  ;;  %vm4516_vm6 = vmor %vm693_vm4, %vm694_vm3 }
  0xdd   :  { %v690_v58 = vsub.f32 1.0, %v689_v38 }
  0xde   :  { %v644_v42 = vpop.f32.mrf.mxu2  ;;  %v657_v14 = vpop.f32.mrf.mxu3  ;;  %v672_v26 = vmul.f32 %v3715_v25, %v671_v48  ;;  %v680_v48 = vand.u32 2147483648, %v4504_v61 }
  0xdf   :  { %v664_v15 = vadd.f32 %v657_v14, %v448_v22  ;;  %v663_v37 = vadd.f32 %v644_v42, %v447_v30  ;;  %v691_v36 = vmul.f32 %v3717_v12, %v690_v58  ;;  %v699_v58 = vand.u32 2147483648, %v687_v52 }
  0xe0   :  { %v673_v62 = vadd.f32 %v3715_v25, %v672_v26 }
  0xe1   :  { %v3364_v32 = vmul.f32 -1.442695, %v664_v15  ;;  %v692_v22 = vadd.f32 %v3717_v12, %v691_v36 }
  0xe2   :  { %v677_v36 = vsel %vm4511_vm5, %v3715_v25, %v673_v62 }
  0xe3   :  { %3718 = vpow2.f32 %v3364_v32 }
  0xe4   :  { %3720 = vtanh.f32 %v663_v37  ;;  %v697_v37 = vand.u32 2147483647, %v687_v52 }
  0xe5   :  { %v901_v2 = vpop.f32.mrf.mxu0  ;;  %v914_v54 = vpop.f32.mrf.mxu1 }
  0xe6   :  { %v948_v57 = vrot.slane %v901_v2, 2  ;;  %v949_v59 = vrot.slane %v914_v54, 2  ;;  %v646_v38 = vpop.f32.mrf.mxu2  ;;  %v659_v42 = vpop.f32.mrf.mxu3  ;;  %vm698_vm8 = vcmp.eq.f32.partialorder %v697_v37, 8.507059e+37 }
  0xe8   :  { %v956_v24 = vadd.f32 %v948_v57, %v728_v40  ;;  %v957_v13 = vadd.f32 %v949_v59, %v729_v33  ;;  %v678_v33 = vand.u32 2147483647, %v4504_v61  ;;  %v700_v40 = vor.u32 1.1754944e-38, %v699_v58 }
  0xe9   :  { %v3719_v32 = vpop.eup %3718  ;;  %v681_v61 = vor.u32 1.1754944e-38, %v680_v48 }
  0xea   :  { %v3493_v14 = vmul.f32 -1.442695, %v956_v24  ;;  %v3494_v15 = vmul.f32 -1.442695, %v957_v13  ;;  %v696_v24 = vsel %vm4516_vm6, %v3717_v12, %v692_v22  ;;  %v707_v2 = vadd.f32 1.0, %v3719_v32  ;;  %v3721_v59 = vpop.eup %3720 }
  0xeb   :  { %vm679_vm7 = vcmp.eq.f32.partialorder %v678_v33, 8.507059e+37  ;;  %v701_v13 = vsel %vm698_vm8, %v700_v40, %v696_v24 }
  0xec   :  { %3722 = vpow2.f32 %v3493_v14  ;;  %v682_v52 = vsel %vm679_vm7, %v681_v61, %v677_v36  ;;  %v723_v30 = vmul.f32 0.0, %v701_v13  ;;  %v717_v37 = vand.u32 2147483647, %v707_v2 }
  0xed   :  { %3724 = vpow2.f32 %v3494_v15  ;;  %v903_v54 = vpop.f32.mrf.mxu0  ;;  %v916_v57 = vpop.f32.mrf.mxu1  ;;  %v724_v38 = vmul.f32 %v3721_v59, %v682_v52  ;;  %v719_v15 = vand.u32 2147483648, %v707_v2  ;;  %vm713_vm10 = vweird.f32 %v707_v2 }
  0xee   :  { %3726 = vrcp.f32 %v707_v2  ;;  %vm718_vm12 = vcmp.eq.f32.partialorder %v717_v37, 8.507059e+37 }
  0xef   :  { %v4528_v22 = vadd.f32 %v724_v38, %v723_v30  ;;  %v720_v40 = vor.u32 1.1754944e-38, %v719_v15 }
  0xf1   :  { %5264 = vst [vmem:[#allocation60_spill] sm:$0xff] %v4528_v22 }
  0xf2   :  { %v3723_v42 = vpop.eup %3722 }
  0xf3   :  { %v3725_v14 = vpop.eup %3724  ;;  %v4524_v62 = vadd.f32 1.0, %v3723_v42  ;;  %v731_v42 = vld [vmem:[#allocation3 + $0x38] sm:$0xc0] }
  0xf4   :  { %v4526_v25 = vadd.f32 1.0, %v3725_v14  ;;  %v3727_v12 = vpop.eup %3726 }
  0xf5   :  { %3728 = vrcp.f32 %v4524_v62  ;;  %v709_v58 = vmul.f32 %v3727_v12, %v707_v2  ;;  %vm714_vm9 = vweird.f32 %v3727_v12  ;;  %vm969_vm15 = vweird.f32 %v4524_v62 }
  0xf6   :  { %3730 = vrcp.f32 %v4526_v25  ;;  %vm715_vm11 = vmor %vm713_vm10, %vm714_vm9  ;;  %vm988_vm1 = vweird.f32 %v4526_v25 }
  0xf7   :  { %v710_v48 = vsub.f32 1.0, %v709_v58  ;;  %3732 = vtanh.f32 %v4528_v22  ;;  %v730_v22 = vld [vmem:[#allocation3 + $0x30] sm:$0xc0] }
  0xf9   :  { %v711_v33 = vmul.f32 %v3727_v12, %v710_v48 }
  0xfb   :  { %v4533_v32 = vpop.eup %3728  ;;  %v712_v24 = vadd.f32 %v3727_v12, %v711_v33 }
  0xfc   :  { %v4535_v26 = vpop.eup %3730  ;;  %v965_v36 = vmul.f32 %v4533_v32, %v4524_v62  ;;  %vm970_vm13 = vweird.f32 %v4533_v32 }
  0xfd   :  { %v984_v54 = vmul.f32 %v4535_v26, %v4526_v25  ;;  %v716_v52 = vsel %vm715_vm11, %v3727_v12, %v712_v24  ;;  %v3733_v13 = vpop.eup %3732  ;;  %v5266_v24 = vld [vmem:[#allocation21_spill] sm:$0xff]  ;;  %vm989_vm14 = vweird.f32 %v4535_v26  ;;  %vm4555_vm2 = vmor %vm969_vm15, %vm970_vm13 }
  0xfe   :  { %v927_v57 = vpop.f32.mrf.mxu2  ;;  %v940_v59 = vpop.f32.mrf.mxu3  ;;  %v721_v14 = vsel %vm718_vm12, %v720_v40, %v716_v52  ;;  %v966_v30 = vsub.f32 1.0, %v965_v36  ;;  %v5265_v36 = vld [vmem:[#allocation20_spill] sm:$0xff]  ;;  %v973_v40 = vand.u32 2147483647, %v4524_v62  ;;  %v5270_v52 = vld [vmem:[#allocation23_spill] sm:$0xff]  ;;  %vm4563_vm3 = vmor %vm988_vm1, %vm989_vm14 }
  0xff   :  { %v951_v61 = vrot.slane %v940_v59, 2  ;;  %v950_v38 = vrot.slane %v927_v57, 2  ;;  %v985_v2 = vsub.f32 1.0, %v984_v54  ;;  %v727_v48 = vmul.f32 %v3733_v13, %v721_v14 }
 0x100   :  { %v967_v15 = vmul.f32 %v4533_v32, %v966_v30  ;;  %v975_v57 = vand.u32 2147483648, %v4524_v62  ;;  %vm974_vm4 = vcmp.eq.f32.partialorder %v973_v40, 8.507059e+37 }
 0x101   :  { %v959_v58 = vadd.f32 %v951_v61, %v731_v42  ;;  %1023 = vst [vmem:[#allocation4 + $0x8] sm:$0x3] %v727_v48  ;;  %v1029_v34 = vpack.c.bf16 %v727_v48, %v727_v48  ;;  %v958_v1 = vadd.f32 %v950_v38, %v730_v22  ;;  %v986_v63 = vmul.f32 %v4535_v26, %v985_v2  ;;  %v5273_v2 = vld [vmem:[#allocation24_spill] sm:$0xff] }
 0x102   :  { %v968_v22 = vadd.f32 %v4533_v32, %v967_v15  ;;  %v992_v61 = vand.u32 2147483647, %v4526_v25  ;;  %v976_v30 = vor.u32 1.1754944e-38, %v975_v57 }
 0x103   :  { %v3495_v33 = vmul.f32 -1.442695, %v959_v58  ;;  %1038 = vmatmul.bf16.vlgmr.msrb.gmra.mxu0 %v1029_v34  ;;  %1051 = vmatmul.bf16.vlgmr.msrb.gmra.mxu1 %v1029_v34  ;;  %v987_v54 = vadd.f32 %v4535_v26, %v986_v63  ;;  %v5269_v63 = vld [vmem:[#allocation22_spill] sm:$0xff]  ;;  %v5274_v58 = vld [vmem:[#allocation25_spill] sm:$0xff] }
 0x104   :  { %1064 = vmatmul.bf16.vlgmr.msrb.gmra.mxu2 %v1029_v34  ;;  %1077 = vmatmul.bf16.vlgmr.msrb.gmra.mxu3 %v1029_v34  ;;  %v994_v34 = vand.u32 2147483648, %v4526_v25  ;;  %v972_v42 = vsel %vm4555_vm2, %v4533_v32, %v968_v22  ;;  %vm993_vm5 = vcmp.eq.f32.partialorder %v992_v61, 8.507059e+37 }
 0x105   :  { %3734 = vpow2.f32 %v3495_v33  ;;  %1316 = vmatpush.bf16.msrb.mxu0 %v5265_v36  ;;  %1329 = vmatpush.bf16.msrb.mxu1 %v5266_v24  ;;  %v991_v62 = vsel %vm4563_vm3, %v4535_v26, %v987_v54  ;;  %v977_v48 = vsel %vm974_vm4, %v976_v30, %v972_v42  ;;  %v5277_v30 = vld [vmem:[#allocation32_spill] sm:$0xff] }
 0x106   :  { %v942_v12 = vpop.f32.mrf.mxu3  ;;  %v929_v37 = vpop.f32.mrf.mxu2  ;;  %3736 = vtanh.f32 %v958_v1  ;;  %1342 = vmatpush.bf16.msrb.mxu2 %v4248_v23  ;;  %1355 = vmatpush.bf16.msrb.mxu3 %v4250_v27  ;;  %v995_v14 = vor.u32 1.1754944e-38, %v994_v34 }
 0x108   :  { %v996_v33 = vsel %vm993_vm5, %v995_v14, %v991_v62  ;;  %v5276_v14 = vld [vmem:[#allocation47_spill] sm:$0xff] }
 0x109   :  { %1317 = vmatpush.bf16.msrb.mxu0 %v5269_v63  ;;  %1330 = vmatpush.bf16.msrb.mxu1 %v5270_v52  ;;  %v1018_v15 = vmul.f32 0.0, %v996_v33  ;;  %v5279_v33 = vld [vmem:[#allocation50_spill] sm:$0xff] }
 0x10a   :  { %1343 = vmatpush.bf16.msrb.mxu2 %v4263_v39  ;;  %1356 = vmatpush.bf16.msrb.mxu3 %v4266_v43 }
 0x10b   :  { %v3735_v59 = vpop.eup %3734 }
 0x10c   :  { %v1002_v38 = vadd.f32 1.0, %v3735_v59  ;;  %v3737_v25 = vpop.eup %3736 }
 0x10d   :  { %1318 = vmatpush.bf16.msrb.mxu0 %v5273_v2  ;;  %1331 = vmatpush.bf16.msrb.mxu1 %v5274_v58  ;;  %v1019_v32 = vmul.f32 %v3737_v25, %v977_v48  ;;  %v5275_v25 = vld [vmem:[#allocation46_spill] sm:$0xff]  ;;  %v5278_v48 = vld [vmem:[#allocation33_spill] sm:$0xff] }
 0x10e   :  { %3738 = vrcp.f32 %v1002_v38  ;;  %1344 = vmatpush.bf16.msrb.mxu2 %v4275_v55  ;;  %1357 = vmatpush.bf16.msrb.mxu3 %v4278_v60  ;;  %v1014_v54 = vand.u32 2147483648, %v1002_v38  ;;  %v1012_v57 = vand.u32 2147483647, %v1002_v38  ;;  %vm1008_vm7 = vweird.f32 %v1002_v38 }
 0x10f   :  { %v4583_v12 = vadd.f32 %v1019_v32, %v1018_v15  ;;  %v5280_v32 = vld [vmem:[#allocation51_spill] sm:$0xff]  ;;  %v5281_v15 = vld [vmem:[#allocation34_spill] sm:$0xff] }
 0x110   :  { %v1015_v1 = vor.u32 1.1754944e-38, %v1014_v54  ;;  %vm1013_vm9 = vcmp.eq.f32.partialorder %v1012_v57, 8.507059e+37  ;;  %v5285_v54 = vld [vmem:[#allocation40_spill] sm:$0xff]  ;;  %v5287_v57 = vld [vmem:[#allocation54_spill] sm:$0xff] }
 0x111   :  { %1319 = vmatpush.bf16.msrb.mxu0 %v4237_v4  ;;  %1332 = vmatpush.bf16.msrb.mxu1 %v4240_v8  ;;  %3740 = vtanh.f32 %v4583_v12 }
 0x112   :  { %1345 = vmatpush.bf16.msrb.mxu2 %v4291_v7  ;;  %1358 = vmatpush.bf16.msrb.mxu3 %v4294_v11 }
 0x114   :  { %v3739_v26 = vpop.eup %3738 }
 0x115   :  { %v1004_v37 = vmul.f32 %v3739_v26, %v1002_v38  ;;  %1320 = vmatpush.bf16.msrb.mxu0 %v4243_v17  ;;  %1333 = vmatpush.bf16.msrb.mxu1 %v4246_v20  ;;  %vm1009_vm6 = vweird.f32 %v3739_v26 }
 0x116   :  { %1346 = vmatpush.bf16.msrb.mxu2 %v4307_v28  ;;  %1359 = vmatpush.bf16.msrb.mxu3 %v4309_v29  ;;  %vm1010_vm8 = vmor %vm1008_vm7, %vm1009_vm6 }
 0x117   :  { %v1005_v22 = vsub.f32 1.0, %v1004_v37  ;;  %v3741_v61 = vpop.eup %3740  ;;  %v5283_v37 = vld [vmem:[#allocation52_spill] sm:$0xff] }
 0x119   :  { %v1006_v34 = vmul.f32 %v3739_v26, %v1005_v22  ;;  %1321 = vmatpush.bf16.msrb.mxu0 %v4253_v31  ;;  %1334 = vmatpush.bf16.msrb.mxu1 %v4258_v35  ;;  %v5284_v22 = vld [vmem:[#allocation53_spill] sm:$0xff] }
 0x11a   :  { %1347 = vmatpush.bf16.msrb.mxu2 %v4324_v49  ;;  %1360 = vmatpush.bf16.msrb.mxu3 %v4326_v51 }
 0x11b   :  { %v1007_v59 = vadd.f32 %v3739_v26, %v1006_v34  ;;  %v5286_v34 = vld [vmem:[#allocation41_spill] sm:$0xff] }
 0x11d   :  { %v1011_v40 = vsel %vm1010_vm8, %v3739_v26, %v1007_v59  ;;  %1322 = vmatpush.bf16.msrb.mxu0 %v4269_v46  ;;  %1335 = vmatpush.bf16.msrb.mxu1 %v4272_v50  ;;  %v5282_v26 = vld [vmem:[#allocation35_spill] sm:$0xff] }
 0x11e   :  { %v1016_v13 = vsel %vm1013_vm9, %v1015_v1, %v1011_v40  ;;  %1348 = vmatpush.bf16.msrb.mxu2 %v4336_v9  ;;  %1361 = vmatpush.bf16.msrb.mxu3 %v4338_v10  ;;  %v5288_v59 = vld [vmem:[#allocation55_spill] sm:$0xff]  ;;  %v5289_v1 = vld [vmem:[#allocation44_spill] sm:$0xff]  ;;  %v5290_v40 = vld [vmem:[#allocation45_spill] sm:$0xff] }
 0x11f   :  { %v1022_v42 = vmul.f32 %v3741_v61, %v1016_v13  ;;  %v5291_v61 = vld [vmem:[#allocation56_spill] sm:$0xff]  ;;  %v5292_v13 = vld [vmem:[#allocation57_spill] sm:$0xff] }
 0x121   :  { %1024 = vst [vmem:[#allocation5] sm:$0xc0] %v1022_v42  ;;  %v1168_v38 = vpack.c.bf16 %v1022_v42, %v1022_v42  ;;  %1323 = vmatpush.bf16.msrb.mxu0 %v4281_v0  ;;  %1336 = vmatpush.bf16.msrb.mxu1 %v4284_v3  ;;  %v5293_v42 = vld [vmem:[#allocation48_spill] sm:$0xff] }
 0x122   :  { %1349 = vmatpush.bf16.msrb.mxu2 %v4348_v41  ;;  %1362 = vmatpush.bf16.msrb.mxu3 %v4350_v47 }
 0x123   :  { %v1170_v62 = vrot.slane %v1168_v38, 3  ;;  %v5294_v38 = vld [vmem:[#allocation49_spill] sm:$0xff] }
 0x125   :  { %1180 = vmatmul.bf16.vlgmr.msra.gmra.mxu0 %v1170_v62  ;;  %1193 = vmatmul.bf16.vlgmr.msra.gmra.mxu1 %v1170_v62 }
 0x126   :  { %1206 = vmatmul.bf16.vlgmr.msra.gmra.mxu2 %v1170_v62  ;;  %1219 = vmatmul.bf16.vlgmr.msra.gmra.mxu3 %v1170_v62  ;;  %v5295_v62 = vld [vmem:[#allocation58_spill] sm:$0xff] }
 0x127   :  { %1458 = vmatpush.bf16.msra.mxu0 %v4286_v5  ;;  %1471 = vmatpush.bf16.msra.mxu1 %v4289_v6 }
 0x128   :  { %1484 = vmatpush.bf16.msra.mxu2 %v4352_v53  ;;  %1497 = vmatpush.bf16.msra.mxu3 %v4354_v56  ;;  %v1164_v56 = vld [vmem:[#allocation3 + $0x28] sm:$0x30] }
 0x129   :  { %v1165_v53 = vld [vmem:[#allocation3 + $0x8] sm:$0x30] }
 0x12b   :  { %1459 = vmatpush.bf16.msra.mxu0 %v4299_v19  ;;  %1472 = vmatpush.bf16.msra.mxu1 %v4303_v21 }
 0x12c   :  { %1485 = vmatpush.bf16.msra.mxu2 %v4366_v16  ;;  %1498 = vmatpush.bf16.msra.mxu3 %v4368_v18 }
 0x12f   :  { %1460 = vmatpush.bf16.msra.mxu0 %v4315_v44  ;;  %1473 = vmatpush.bf16.msra.mxu1 %v4320_v45 }
 0x130   :  { %1486 = vmatpush.bf16.msra.mxu2 %v5275_v25  ;;  %1499 = vmatpush.bf16.msra.mxu3 %v5276_v14 }
 0x133   :  { %1461 = vmatpush.bf16.msra.mxu0 %v5277_v30  ;;  %1474 = vmatpush.bf16.msra.mxu1 %v5278_v48 }
 0x134   :  { %1487 = vmatpush.bf16.msra.mxu2 %v5279_v33  ;;  %1500 = vmatpush.bf16.msra.mxu3 %v5280_v32 }
 0x137   :  { %1462 = vmatpush.bf16.msra.mxu0 %v5281_v15  ;;  %1475 = vmatpush.bf16.msra.mxu1 %v5282_v26 }
 0x138   :  { %1488 = vmatpush.bf16.msra.mxu2 %v5283_v37  ;;  %1501 = vmatpush.bf16.msra.mxu3 %v5284_v22  ;;  %v1025_v37 = vld [vmem:[#allocation2 + $0x30] sm:$0xc] }
 0x13b   :  { %1463 = vmatpush.bf16.msra.mxu0 %v5285_v54  ;;  %1476 = vmatpush.bf16.msra.mxu1 %v5286_v34  ;;  %v5296_v54 = vld [vmem:[#allocation59_spill] sm:$0xff] }
 0x13c   :  { %1489 = vmatpush.bf16.msra.mxu2 %v5287_v57  ;;  %1502 = vmatpush.bf16.msra.mxu3 %v5288_v59 }
 0x13f   :  { %1464 = vmatpush.bf16.msra.mxu0 %v5289_v1  ;;  %1477 = vmatpush.bf16.msra.mxu1 %v5290_v40  ;;  %v1026_v1 = vld [vmem:[#allocation2] sm:$0xc] }
 0x140   :  { %1490 = vmatpush.bf16.msra.mxu2 %v5291_v61  ;;  %1503 = vmatpush.bf16.msra.mxu3 %v5292_v13 }
 0x143   :  { %1465 = vmatpush.bf16.msra.mxu0 %v5293_v42  ;;  %1478 = vmatpush.bf16.msra.mxu1 %v5294_v38 }
 0x144   :  { %1491 = vmatpush.bf16.msra.mxu2 %v5295_v62  ;;  %1504 = vmatpush.bf16.msra.mxu3 %v5296_v54  ;;  %v1028_v62 = vld [vmem:[#allocation2 + $0x10] sm:$0xc] }
 0x180   :  { %v1039_v34 = vpop.f32.mrf.mxu0  ;;  %v1052_v57 = vpop.f32.mrf.mxu1 }
 0x181   :  { %v1086_v22 = vrot.slane %v1039_v34, 6  ;;  %v1087_v59 = vrot.slane %v1052_v57, 6 }
 0x183   :  { %v1094_v26 = vadd.f32 %v1086_v22, %v1025_v37  ;;  %v1095_v40 = vadd.f32 %v1087_v59, %v1026_v1  ;;  %v1027_v22 = vld [vmem:[#allocation2 + $0x18] sm:$0xc] }
 0x185   :  { %v3496_v15 = vmul.f32 -1.442695, %v1094_v26  ;;  %v3497_v61 = vmul.f32 -1.442695, %v1095_v40 }
 0x187   :  { %3742 = vpow2.f32 %v3496_v15  ;;  %v1065_v13 = vpop.f32.mrf.mxu2  ;;  %v1078_v32 = vpop.f32.mrf.mxu3 }
 0x188   :  { %3744 = vpow2.f32 %v3497_v61  ;;  %v1089_v42 = vrot.slane %v1078_v32, 6  ;;  %v1041_v38 = vpop.f32.mrf.mxu0  ;;  %v1054_v33 = vpop.f32.mrf.mxu1  ;;  %v1088_v26 = vrot.slane %v1065_v13, 6 }
 0x18a   :  { %v1097_v48 = vadd.f32 %v1089_v42, %v1028_v62  ;;  %v1096_v1 = vadd.f32 %v1088_v26, %v1027_v22 }
 0x18c   :  { %v3498_v54 = vmul.f32 -1.442695, %v1097_v48 }
 0x18d   :  { %v3743_v30 = vpop.eup %3742 }
 0x18e   :  { %v3745_v14 = vpop.eup %3744  ;;  %v1101_v34 = vadd.f32 1.0, %v3743_v30  ;;  %3746 = vpow2.f32 %v3498_v54 }
 0x18f   :  { %v1120_v57 = vadd.f32 1.0, %v3745_v14  ;;  %v1067_v25 = vpop.f32.mrf.mxu2  ;;  %v1080_v37 = vpop.f32.mrf.mxu3 }
 0x190   :  { %3748 = vrcp.f32 %v1101_v34  ;;  %v1113_v54 = vand.u32 2147483648, %v1101_v34  ;;  %v1111_v42 = vand.u32 2147483647, %v1101_v34  ;;  %vm1107_vm12 = vweird.f32 %v1101_v34 }
 0x191   :  { %3750 = vrcp.f32 %v1120_v57  ;;  %v1132_v25 = vand.u32 2147483648, %v1120_v57  ;;  %v1130_v38 = vand.u32 2147483647, %v1120_v57  ;;  %vm1126_vm13 = vweird.f32 %v1120_v57 }
 0x192   :  { %v1114_v26 = vor.u32 1.1754944e-38, %v1113_v54  ;;  %vm1112_vm1 = vcmp.eq.f32.partialorder %v1111_v42, 8.507059e+37 }
 0x193   :  { %vm1131_vm2 = vcmp.eq.f32.partialorder %v1130_v38, 8.507059e+37 }
 0x194   :  { %v3747_v15 = vpop.eup %3746 }
 0x195   :  { %v4634_v59 = vadd.f32 1.0, %v3747_v15 }
 0x196   :  { %v3749_v32 = vpop.eup %3748 }
 0x197   :  { %v3751_v33 = vpop.eup %3750  ;;  %v1103_v40 = vmul.f32 %v3749_v32, %v1101_v34  ;;  %3752 = vrcp.f32 %v4634_v59  ;;  %vm1108_vm10 = vweird.f32 %v3749_v32  ;;  %vm1146_vm4 = vweird.f32 %v4634_v59 }
 0x198   :  { %v1122_v48 = vmul.f32 %v3751_v33, %v1120_v57  ;;  %3754 = vtanh.f32 %v1096_v1  ;;  %vm1127_vm11 = vweird.f32 %v3751_v33  ;;  %vm1109_vm14 = vmor %vm1107_vm12, %vm1108_vm10  ;;  %v1133_v1 = vor.u32 1.1754944e-38, %v1132_v25 }
 0x199   :  { %v1104_v61 = vsub.f32 1.0, %v1103_v40  ;;  %v5297_v40 = vld [vmem:[#allocation60_spill] sm:$0xff]  ;;  %vm1128_vm15 = vmor %vm1126_vm13, %vm1127_vm11 }
 0x19a   :  { %v1123_v30 = vsub.f32 1.0, %v1122_v48  ;;  %v1157_v48 = vrot.slane %v5297_v40, 6 }
 0x19b   :  { %v1105_v14 = vmul.f32 %v3749_v32, %v1104_v61 }
 0x19c   :  { %v1124_v13 = vmul.f32 %v3751_v33, %v1123_v30 }
 0x19d   :  { %v3753_v62 = vpop.eup %3752  ;;  %v1106_v37 = vadd.f32 %v3749_v32, %v1105_v14 }
 0x19e   :  { %v1125_v15 = vadd.f32 %v3751_v33, %v1124_v13  ;;  %v1142_v22 = vmul.f32 %v3753_v62, %v4634_v59  ;;  %v3755_v61 = vpop.eup %3754  ;;  %vm1147_vm3 = vweird.f32 %v3753_v62 }
 0x19f   :  { %v1110_v45 = vsel %vm1109_vm14, %v3749_v32, %v1106_v37  ;;  %vm1148_vm5 = vmor %vm1146_vm4, %vm1147_vm3  ;;  %v1167_v37 = vld [vmem:[#allocation3 + $0x38] sm:$0x30] }
 0x1a0   :  { %v1115_v44 = vsel %vm1112_vm1, %v1114_v26, %v1110_v45  ;;  %v1129_v30 = vsel %vm1128_vm15, %v3751_v33, %v1125_v15  ;;  %v1143_v18 = vsub.f32 1.0, %v1142_v22 }
 0x1a1   :  { %v1134_v16 = vsel %vm1131_vm2, %v1133_v1, %v1129_v30  ;;  %v1160_v14 = vmul.f32 %v3755_v61, %v1115_v44  ;;  %v1152_v44 = vand.u32 2147483648, %v4634_v59 }
 0x1a2   :  { %v1181_v34 = vpop.f32.mrf.mxu0  ;;  %v1194_v57 = vpop.f32.mrf.mxu1  ;;  %v1159_v21 = vmul.f32 %v1157_v48, %v1134_v16  ;;  %v1144_v19 = vmul.f32 %v3753_v62, %v1143_v18  ;;  %v1150_v16 = vand.u32 2147483647, %v4634_v59 }
 0x1a3   :  { %v1228_v54 = vrot.slane %v1181_v34, 4  ;;  %v1229_v13 = vrot.slane %v1194_v57, 4  ;;  %v1153_v26 = vor.u32 1.1754944e-38, %v1152_v44 }
 0x1a4   :  { %v4639_v40 = vadd.f32 %v1160_v14, %v1159_v21  ;;  %v1145_v42 = vadd.f32 %v3753_v62, %v1144_v19  ;;  %vm1151_vm6 = vcmp.eq.f32.partialorder %v1150_v16, 8.507059e+37 }
 0x1a5   :  { %v1236_v25 = vadd.f32 %v1228_v54, %v1164_v56  ;;  %v1237_v32 = vadd.f32 %v1229_v13, %v1165_v53 }
 0x1a6   :  { %3756 = vtanh.f32 %v4639_v40  ;;  %v1149_v19 = vsel %vm1148_vm5, %v3753_v62, %v1145_v42  ;;  %v1166_v42 = vld [vmem:[#allocation3 + $0x30] sm:$0x30] }
 0x1a7   :  { %v3499_v45 = vmul.f32 -1.442695, %v1236_v25  ;;  %v3500_v33 = vmul.f32 -1.442695, %v1237_v32  ;;  %v1154_v48 = vsel %vm1151_vm6, %v1153_v26, %v1149_v19 }
 0x1a9   :  { %3758 = vpow2.f32 %v3499_v45  ;;  %v1207_v18 = vpop.f32.mrf.mxu2  ;;  %v1220_v38 = vpop.f32.mrf.mxu3 }
 0x1aa   :  { %3760 = vpow2.f32 %v3500_v33  ;;  %v1231_v21 = vrot.slane %v1220_v38, 4  ;;  %v1183_v56 = vpop.f32.mrf.mxu0  ;;  %v1196_v53 = vpop.f32.mrf.mxu1  ;;  %v1230_v62 = vrot.slane %v1207_v18, 4 }
 0x1ac   :  { %v1239_v15 = vadd.f32 %v1231_v21, %v1167_v37  ;;  %v3757_v22 = vpop.eup %3756  ;;  %v1238_v44 = vadd.f32 %v1230_v62, %v1166_v42 }
 0x1ad   :  { %v1163_v61 = vmul.f32 %v3757_v22, %v1154_v48 }
 0x1ae   :  { %v3501_v1 = vmul.f32 -1.442695, %v1239_v15 }
 0x1af   :  { %v3759_v30 = vpop.eup %3758  ;;  %1306 = vst [vmem:[#allocation4 + $0x8] sm:$0xc] %v1163_v61  ;;  %v1312_v34 = vpack.c.bf16 %v1163_v61, %v1163_v61 }
 0x1b0   :  { %v3761_v14 = vpop.eup %3760  ;;  %v1243_v59 = vadd.f32 1.0, %v3759_v30  ;;  %3762 = vpow2.f32 %v3501_v1 }
 0x1b1   :  { %v1262_v57 = vadd.f32 1.0, %v3761_v14  ;;  %v1209_v54 = vpop.f32.mrf.mxu2  ;;  %v1222_v13 = vpop.f32.mrf.mxu3  ;;  %v1314_v25 = vrot.slane %v1312_v34, 1  ;;  %v1299_v34 = vrot.slane %v4583_v12, 2 }
 0x1b2   :  { %3764 = vrcp.f32 %v1243_v59  ;;  %v1255_v53 = vand.u32 2147483648, %v1243_v59  ;;  %v1253_v26 = vand.u32 2147483647, %v1243_v59  ;;  %vm1249_vm9 = vweird.f32 %v1243_v59 }
 0x1b3   :  { %3766 = vrcp.f32 %v1262_v57  ;;  %1324 = vmatmul.bf16.vlgmr.msrb.gmra.mxu0 %v1314_v25  ;;  %1337 = vmatmul.bf16.vlgmr.msrb.gmra.mxu1 %v1314_v25  ;;  %v1274_v19 = vand.u32 2147483648, %v1262_v57  ;;  %v1272_v22 = vand.u32 2147483647, %v1262_v57  ;;  %vm1268_vm10 = vweird.f32 %v1262_v57 }
 0x1b4   :  { %1350 = vmatmul.bf16.vlgmr.msrb.gmra.mxu2 %v1314_v25  ;;  %1363 = vmatmul.bf16.vlgmr.msrb.gmra.mxu3 %v1314_v25  ;;  %v1256_v61 = vor.u32 1.1754944e-38, %v1255_v53  ;;  %vm1254_vm13 = vcmp.eq.f32.partialorder %v1253_v26, 8.507059e+37 }
 0x1b5   :  { %1602 = vmatpush.bf16.msrb.mxu0 %v5265_v36  ;;  %1615 = vmatpush.bf16.msrb.mxu1 %v5266_v24  ;;  %v1275_v54 = vor.u32 1.1754944e-38, %v1274_v19  ;;  %vm1273_vm14 = vcmp.eq.f32.partialorder %v1272_v22, 8.507059e+37  ;;  %v5299_v22 = vld [vmem:[#allocation39_spill] sm:$0xff] }
 0x1b6   :  { %v3763_v32 = vpop.eup %3762  ;;  %1628 = vmatpush.bf16.msrb.mxu2 %v4248_v23  ;;  %1641 = vmatpush.bf16.msrb.mxu3 %v4250_v27 }
 0x1b7   :  { %v4645_v45 = vadd.f32 1.0, %v3763_v32 }
 0x1b8   :  { %v3765_v33 = vpop.eup %3764 }
 0x1b9   :  { %v3767_v16 = vpop.eup %3766  ;;  %v1245_v38 = vmul.f32 %v3765_v33, %v1243_v59  ;;  %3768 = vrcp.f32 %v4645_v45  ;;  %1603 = vmatpush.bf16.msrb.mxu0 %v5269_v63  ;;  %1616 = vmatpush.bf16.msrb.mxu1 %v5270_v52  ;;  %vm1250_vm7 = vweird.f32 %v3765_v33  ;;  %vm1288_vm1 = vweird.f32 %v4645_v45 }
 0x1ba   :  { %v1264_v18 = vmul.f32 %v3767_v16, %v1262_v57  ;;  %3770 = vtanh.f32 %v1238_v44  ;;  %1629 = vmatpush.bf16.msrb.mxu2 %v4263_v39  ;;  %1642 = vmatpush.bf16.msrb.mxu3 %v4266_v43  ;;  %vm1269_vm8 = vweird.f32 %v3767_v16  ;;  %vm1251_vm11 = vmor %vm1249_vm9, %vm1250_vm7 }
 0x1bb   :  { %v1246_v21 = vsub.f32 1.0, %v1245_v38  ;;  %vm1270_vm12 = vmor %vm1268_vm10, %vm1269_vm8 }
 0x1bc   :  { %v1265_v56 = vsub.f32 1.0, %v1264_v18  ;;  %v1292_v18 = vand.u32 2147483647, %v4645_v45 }
 0x1bd   :  { %v1247_v37 = vmul.f32 %v3765_v33, %v1246_v21  ;;  %1604 = vmatpush.bf16.msrb.mxu0 %v5273_v2  ;;  %1617 = vmatpush.bf16.msrb.mxu1 %v5274_v58 }
 0x1be   :  { %v1266_v15 = vmul.f32 %v3767_v16, %v1265_v56  ;;  %1630 = vmatpush.bf16.msrb.mxu2 %v4275_v55  ;;  %1643 = vmatpush.bf16.msrb.mxu3 %v4278_v60  ;;  %vm1293_vm3 = vcmp.eq.f32.partialorder %v1292_v18, 8.507059e+37  ;;  %v5318_v18 = vld [vmem:[#allocation54_spill] sm:$0xff] }
 0x1bf   :  { %v3769_v48 = vpop.eup %3768  ;;  %v1248_v1 = vadd.f32 %v3765_v33, %v1247_v37 }
 0x1c0   :  { %v1267_v30 = vadd.f32 %v3767_v16, %v1266_v15  ;;  %v1284_v14 = vmul.f32 %v3769_v48, %v4645_v45  ;;  %v3771_v59 = vpop.eup %3770  ;;  %vm1289_vm15 = vweird.f32 %v3769_v48  ;;  %v5298_v15 = vld [vmem:[#allocation38_spill] sm:$0xff] }
 0x1c1   :  { %v1252_v13 = vsel %vm1251_vm11, %v3765_v33, %v1248_v1  ;;  %1605 = vmatpush.bf16.msrb.mxu0 %v4237_v4  ;;  %1618 = vmatpush.bf16.msrb.mxu1 %v4240_v8  ;;  %vm1290_vm2 = vmor %vm1288_vm1, %vm1289_vm15  ;;  %v5301_v1 = vld [vmem:[#allocation29_spill] sm:$0xff] }
 0x1c2   :  { %v1257_v57 = vsel %vm1254_vm13, %v1256_v61, %v1252_v13  ;;  %v1271_v62 = vsel %vm1270_vm12, %v3767_v16, %v1267_v30  ;;  %v1285_v25 = vsub.f32 1.0, %v1284_v14  ;;  %1631 = vmatpush.bf16.msrb.mxu2 %v4291_v7  ;;  %1644 = vmatpush.bf16.msrb.mxu3 %v4294_v11  ;;  %v1294_v16 = vand.u32 2147483648, %v4645_v45  ;;  %v5302_v61 = vld [vmem:[#allocation42_spill] sm:$0xff]  ;;  %v5303_v30 = vld [vmem:[#allocation43_spill] sm:$0xff] }
 0x1c3   :  { %v1276_v32 = vsel %vm1273_vm14, %v1275_v54, %v1271_v62  ;;  %v1302_v42 = vmul.f32 %v3771_v59, %v1257_v57  ;;  %v5304_v14 = vld [vmem:[#allocation30_spill] sm:$0xff]  ;;  %v5307_v13 = vld [vmem:[#allocation47_spill] sm:$0xff]  ;;  %v5308_v59 = vld [vmem:[#allocation32_spill] sm:$0xff] }
 0x1c4   :  { %v1301_v44 = vmul.f32 %v1299_v34, %v1276_v32  ;;  %v1286_v38 = vmul.f32 %v3769_v48, %v1285_v25  ;;  %v1295_v56 = vor.u32 1.1754944e-38, %v1294_v16  ;;  %v5305_v34 = vld [vmem:[#allocation31_spill] sm:$0xff]  ;;  %v5306_v54 = vld [vmem:[#allocation46_spill] sm:$0xff]  ;;  %v5309_v57 = vld [vmem:[#allocation33_spill] sm:$0xff] }
 0x1c5   :  { %1606 = vmatpush.bf16.msrb.mxu0 %v4243_v17  ;;  %1619 = vmatpush.bf16.msrb.mxu1 %v4246_v20  ;;  %v5310_v62 = vld [vmem:[#allocation50_spill] sm:$0xff]  ;;  %v5311_v25 = vld [vmem:[#allocation51_spill] sm:$0xff]  ;;  %v5317_v16 = vld [vmem:[#allocation41_spill] sm:$0xff] }
 0x1c6   :  { %v4666_v12 = vadd.f32 %v1302_v42, %v1301_v44  ;;  %v1287_v33 = vadd.f32 %v3769_v48, %v1286_v38  ;;  %1632 = vmatpush.bf16.msrb.mxu2 %v4307_v28  ;;  %1645 = vmatpush.bf16.msrb.mxu3 %v4309_v29  ;;  %v5312_v32 = vld [vmem:[#allocation34_spill] sm:$0xff]  ;;  %v5313_v42 = vld [vmem:[#allocation35_spill] sm:$0xff]  ;;  %v5314_v44 = vld [vmem:[#allocation52_spill] sm:$0xff] }
 0x1c7   :  { %v5315_v38 = vld [vmem:[#allocation53_spill] sm:$0xff] }
 0x1c8   :  { %3772 = vtanh.f32 %v4666_v12  ;;  %v1291_v21 = vsel %vm1290_vm2, %v3769_v48, %v1287_v33  ;;  %v5300_v48 = vld [vmem:[#allocation28_spill] sm:$0xff] }
 0x1c9   :  { %1607 = vmatpush.bf16.msrb.mxu0 %v4253_v31  ;;  %1620 = vmatpush.bf16.msrb.mxu1 %v4258_v35  ;;  %v1296_v19 = vsel %vm1293_vm3, %v1295_v56, %v1291_v21  ;;  %v5316_v33 = vld [vmem:[#allocation40_spill] sm:$0xff]  ;;  %v5319_v21 = vld [vmem:[#allocation55_spill] sm:$0xff] }
 0x1ca   :  { %1633 = vmatpush.bf16.msrb.mxu2 %v4324_v49  ;;  %1646 = vmatpush.bf16.msrb.mxu3 %v4326_v51  ;;  %v5320_v56 = vld [vmem:[#allocation44_spill] sm:$0xff] }
 0x1cd   :  { %1608 = vmatpush.bf16.msrb.mxu0 %v4269_v46  ;;  %1621 = vmatpush.bf16.msrb.mxu1 %v4272_v50 }
 0x1ce   :  { %v3773_v53 = vpop.eup %3772  ;;  %1634 = vmatpush.bf16.msrb.mxu2 %v4336_v9  ;;  %1647 = vmatpush.bf16.msrb.mxu3 %v4338_v10 }
 0x1cf   :  { %v1305_v37 = vmul.f32 %v3773_v53, %v1296_v19  ;;  %v5321_v53 = vld [vmem:[#allocation45_spill] sm:$0xff]  ;;  %v5322_v19 = vld [vmem:[#allocation56_spill] sm:$0xff] }
 0x1d1   :  { %1307 = vst [vmem:[#allocation5] sm:$0x30] %v1305_v37  ;;  %v1454_v45 = vpack.c.bf16 %v1305_v37, %v1305_v37  ;;  %1609 = vmatpush.bf16.msrb.mxu0 %v4281_v0  ;;  %1622 = vmatpush.bf16.msrb.mxu1 %v4284_v3  ;;  %v5323_v37 = vld [vmem:[#allocation57_spill] sm:$0xff] }
 0x1d2   :  { %1635 = vmatpush.bf16.msrb.mxu2 %v4348_v41  ;;  %1648 = vmatpush.bf16.msrb.mxu3 %v4350_v47 }
 0x1d3   :  { %v1456_v26 = vrot.slane %v1454_v45, 2  ;;  %v5324_v45 = vld [vmem:[#allocation48_spill] sm:$0xff] }
 0x1d5   :  { %1466 = vmatmul.bf16.vlgmr.msra.gmra.mxu0 %v1456_v26  ;;  %1479 = vmatmul.bf16.vlgmr.msra.gmra.mxu1 %v1456_v26 }
 0x1d6   :  { %1492 = vmatmul.bf16.vlgmr.msra.gmra.mxu2 %v1456_v26  ;;  %1505 = vmatmul.bf16.vlgmr.msra.gmra.mxu3 %v1456_v26  ;;  %v5325_v26 = vld [vmem:[#allocation49_spill] sm:$0xff] }
 0x1d7   :  { %1744 = vmatpush.bf16.msra.mxu0 %v4286_v5  ;;  %1757 = vmatpush.bf16.msra.mxu1 %v4289_v6 }
 0x1d8   :  { %1770 = vmatpush.bf16.msra.mxu2 %v5298_v15  ;;  %1783 = vmatpush.bf16.msra.mxu3 %v5299_v22  ;;  %v1451_v22 = vld [vmem:[#allocation3 + $0x8] sm:$0xc] }
 0x1db   :  { %1745 = vmatpush.bf16.msra.mxu0 %v5300_v48  ;;  %1758 = vmatpush.bf16.msra.mxu1 %v5301_v1 }
 0x1dc   :  { %1771 = vmatpush.bf16.msra.mxu2 %v5302_v61  ;;  %1784 = vmatpush.bf16.msra.mxu3 %v5303_v30 }
 0x1df   :  { %1746 = vmatpush.bf16.msra.mxu0 %v5304_v14  ;;  %1759 = vmatpush.bf16.msra.mxu1 %v5305_v34 }
 0x1e0   :  { %1772 = vmatpush.bf16.msra.mxu2 %v5306_v54  ;;  %1785 = vmatpush.bf16.msra.mxu3 %v5307_v13 }
 0x1e3   :  { %1747 = vmatpush.bf16.msra.mxu0 %v5308_v59  ;;  %1760 = vmatpush.bf16.msra.mxu1 %v5309_v57 }
 0x1e4   :  { %1773 = vmatpush.bf16.msra.mxu2 %v5310_v62  ;;  %1786 = vmatpush.bf16.msra.mxu3 %v5311_v25 }
 0x1e7   :  { %1748 = vmatpush.bf16.msra.mxu0 %v5312_v32  ;;  %1761 = vmatpush.bf16.msra.mxu1 %v5313_v42  ;;  %v1308_v42 = vld [vmem:[#allocation2 + $0x30] sm:$0x30] }
 0x1e8   :  { %1774 = vmatpush.bf16.msra.mxu2 %v5314_v44  ;;  %1787 = vmatpush.bf16.msra.mxu3 %v5315_v38  ;;  %v5326_v38 = vld [vmem:[#allocation58_spill] sm:$0xff] }
 0x1eb   :  { %1749 = vmatpush.bf16.msra.mxu0 %v5316_v33  ;;  %1762 = vmatpush.bf16.msra.mxu1 %v5317_v16  ;;  %v5327_v33 = vld [vmem:[#allocation59_spill] sm:$0xff] }
 0x1ec   :  { %1775 = vmatpush.bf16.msra.mxu2 %v5318_v18  ;;  %1788 = vmatpush.bf16.msra.mxu3 %v5319_v21 }
 0x1ef   :  { %1750 = vmatpush.bf16.msra.mxu0 %v5320_v56  ;;  %1763 = vmatpush.bf16.msra.mxu1 %v5321_v53  ;;  %v1309_v56 = vld [vmem:[#allocation2] sm:$0x30] }
 0x1f0   :  { %1776 = vmatpush.bf16.msra.mxu2 %v5322_v19  ;;  %1789 = vmatpush.bf16.msra.mxu3 %v5323_v37 }
 0x1f3   :  { %1751 = vmatpush.bf16.msra.mxu0 %v5324_v45  ;;  %1764 = vmatpush.bf16.msra.mxu1 %v5325_v26 }
 0x1f4   :  { %1777 = vmatpush.bf16.msra.mxu2 %v5326_v38  ;;  %1790 = vmatpush.bf16.msra.mxu3 %v5327_v33  ;;  %v1311_v38 = vld [vmem:[#allocation2 + $0x10] sm:$0x30] }
 0x230   :  { %v1325_v16 = vpop.f32.mrf.mxu0  ;;  %v1338_v18 = vpop.f32.mrf.mxu1 }
 0x231   :  { %v1372_v44 = vrot.slane %v1325_v16, 4  ;;  %v1373_v21 = vrot.slane %v1338_v18, 4 }
 0x233   :  { %v1380_v32 = vadd.f32 %v1372_v44, %v1308_v42  ;;  %v1381_v53 = vadd.f32 %v1373_v21, %v1309_v56  ;;  %v1310_v44 = vld [vmem:[#allocation2 + $0x18] sm:$0x30] }
 0x235   :  { %v3502_v25 = vmul.f32 -1.442695, %v1380_v32  ;;  %v3503_v19 = vmul.f32 -1.442695, %v1381_v53 }
 0x237   :  { %3774 = vpow2.f32 %v3502_v25  ;;  %v1351_v37 = vpop.f32.mrf.mxu2  ;;  %v1364_v62 = vpop.f32.mrf.mxu3 }
 0x238   :  { %3776 = vpow2.f32 %v3503_v19  ;;  %v1375_v45 = vrot.slane %v1364_v62, 4  ;;  %v1327_v26 = vpop.f32.mrf.mxu0  ;;  %v1340_v57 = vpop.f32.mrf.mxu1  ;;  %v1374_v32 = vrot.slane %v1351_v37, 4 }
 0x23a   :  { %v1383_v59 = vadd.f32 %v1375_v45, %v1311_v38  ;;  %v1382_v56 = vadd.f32 %v1374_v32, %v1310_v44 }
 0x23c   :  { %v3504_v33 = vmul.f32 -1.442695, %v1383_v59 }
 0x23d   :  { %v3775_v13 = vpop.eup %3774 }
 0x23e   :  { %v3777_v54 = vpop.eup %3776  ;;  %v1387_v16 = vadd.f32 1.0, %v3775_v13  ;;  %3778 = vpow2.f32 %v3504_v33 }
 0x23f   :  { %v1406_v18 = vadd.f32 1.0, %v3777_v54  ;;  %v1353_v34 = vpop.f32.mrf.mxu2  ;;  %v1366_v42 = vpop.f32.mrf.mxu3 }
 0x240   :  { %3780 = vrcp.f32 %v1387_v16  ;;  %v1397_v33 = vand.u32 2147483647, %v1387_v16  ;;  %v1399_v54 = vand.u32 2147483648, %v1387_v16  ;;  %v1443_v42 = vrot.slane %v4639_v40, 6 }
 0x241   :  { %3782 = vrcp.f32 %v1406_v18  ;;  %v1418_v34 = vand.u32 2147483648, %v1406_v18  ;;  %v1416_v37 = vand.u32 2147483647, %v1406_v18  ;;  %vm1393_vm6 = vweird.f32 %v1387_v16 }
 0x242   :  { %vm1412_vm7 = vweird.f32 %v1406_v18  ;;  %vm1398_vm10 = vcmp.eq.f32.partialorder %v1397_v33, 8.507059e+37 }
 0x243   :  { %vm1417_vm11 = vcmp.eq.f32.partialorder %v1416_v37, 8.507059e+37 }
 0x244   :  { %v3779_v25 = vpop.eup %3778 }
 0x245   :  { %v4720_v21 = vadd.f32 1.0, %v3779_v25  ;;  %v1400_v25 = vor.u32 1.1754944e-38, %v1399_v54 }
 0x246   :  { %v3781_v62 = vpop.eup %3780 }
 0x247   :  { %v3783_v57 = vpop.eup %3782  ;;  %v1389_v53 = vmul.f32 %v3781_v62, %v1387_v16  ;;  %3784 = vrcp.f32 %v4720_v21  ;;  %vm1394_vm4 = vweird.f32 %v3781_v62  ;;  %vm1432_vm13 = vweird.f32 %v4720_v21 }
 0x248   :  { %v1408_v59 = vmul.f32 %v3783_v57, %v1406_v18  ;;  %3786 = vtanh.f32 %v1382_v56  ;;  %vm1413_vm5 = vweird.f32 %v3783_v57  ;;  %vm1395_vm8 = vmor %vm1393_vm6, %vm1394_vm4  ;;  %v1450_v18 = vld [vmem:[#allocation3 + $0x28] sm:$0xc] }
 0x249   :  { %v1390_v38 = vsub.f32 1.0, %v1389_v53  ;;  %vm1414_vm9 = vmor %vm1412_vm7, %vm1413_vm5 }
 0x24a   :  { %v1409_v13 = vsub.f32 1.0, %v1408_v59  ;;  %v1419_v59 = vor.u32 1.1754944e-38, %v1418_v34 }
 0x24b   :  { %v1391_v19 = vmul.f32 %v3781_v62, %v1390_v38 }
 0x24c   :  { %v1410_v45 = vmul.f32 %v3783_v57, %v1409_v13 }
 0x24d   :  { %v3785_v26 = vpop.eup %3784  ;;  %v1392_v32 = vadd.f32 %v3781_v62, %v1391_v19 }
 0x24e   :  { %v1411_v44 = vadd.f32 %v3783_v57, %v1410_v45  ;;  %v1428_v53 = vmul.f32 %v3785_v26, %v4720_v21  ;;  %v3787_v13 = vpop.eup %3786  ;;  %vm1433_vm12 = vweird.f32 %v3785_v26 }
 0x24f   :  { %v1396_v56 = vsel %vm1395_vm8, %v3781_v62, %v1392_v32  ;;  %vm1434_vm14 = vmor %vm1432_vm13, %vm1433_vm12 }
 0x250   :  { %v1401_v30 = vsel %vm1398_vm10, %v1400_v25, %v1396_v56  ;;  %v1415_v61 = vsel %vm1414_vm9, %v3783_v57, %v1411_v44  ;;  %v1429_v1 = vsub.f32 1.0, %v1428_v53 }
 0x251   :  { %v1420_v19 = vsel %vm1417_vm11, %v1419_v59, %v1415_v61  ;;  %v1446_v16 = vmul.f32 %v3787_v13, %v1401_v30  ;;  %v1438_v61 = vand.u32 2147483648, %v4720_v21 }
 0x252   :  { %v1467_v38 = vpop.f32.mrf.mxu0  ;;  %v1480_v14 = vpop.f32.mrf.mxu1  ;;  %v1445_v54 = vmul.f32 %v1443_v42, %v1420_v19  ;;  %v1430_v15 = vmul.f32 %v3785_v26, %v1429_v1 }
 0x253   :  { %v1514_v40 = vrot.slane %v1467_v38, 6  ;;  %v1515_v48 = vrot.slane %v1480_v14, 6  ;;  %v1439_v1 = vor.u32 1.1754944e-38, %v1438_v61 }
 0x254   :  { %v4725_v34 = vadd.f32 %v1446_v16, %v1445_v54  ;;  %v1431_v37 = vadd.f32 %v3785_v26, %v1430_v15 }
 0x255   :  { %v1522_v45 = vadd.f32 %v1514_v40, %v1450_v18  ;;  %v1523_v6 = vadd.f32 %v1515_v48, %v1451_v22  ;;  %v1436_v22 = vand.u32 2147483647, %v4720_v21  ;;  %v1453_v48 = vld [vmem:[#allocation3 + $0x38] sm:$0xc] }
 0x256   :  { %3788 = vtanh.f32 %v4725_v34  ;;  %v1435_v15 = vsel %vm1434_vm14, %v3785_v26, %v1431_v37 }
 0x257   :  { %v3505_v62 = vmul.f32 -1.442695, %v1522_v45  ;;  %v3506_v33 = vmul.f32 -1.442695, %v1523_v6  ;;  %vm1437_vm15 = vcmp.eq.f32.partialorder %v1436_v22, 8.507059e+37 }
 0x258   :  { %v1440_v53 = vsel %vm1437_vm15, %v1439_v1, %v1435_v15 }
 0x259   :  { %v1493_v57 = vpop.f32.mrf.mxu2  ;;  %v1506_v32 = vpop.f32.mrf.mxu3  ;;  %3790 = vpow2.f32 %v3505_v62  ;;  %v1452_v62 = vld [vmem:[#allocation3 + $0x30] sm:$0xc] }
 0x25a   :  { %v1517_v30 = vrot.slane %v1506_v32, 6  ;;  %v1469_v14 = vpop.f32.mrf.mxu0  ;;  %v1482_v42 = vpop.f32.mrf.mxu1  ;;  %3792 = vpow2.f32 %v3506_v33  ;;  %v1516_v18 = vrot.slane %v1493_v57, 6 }
 0x25c   :  { %v1525_v6 = vadd.f32 %v1517_v30, %v1453_v48  ;;  %v3789_v44 = vpop.eup %3788  ;;  %v1524_v37 = vadd.f32 %v1516_v18, %v1452_v62 }
 0x25d   :  { %v1449_v56 = vmul.f32 %v3789_v44, %v1440_v53 }
 0x25e   :  { %v3507_v25 = vmul.f32 -1.442695, %v1525_v6 }
 0x25f   :  { %v3791_v59 = vpop.eup %3790  ;;  %1592 = vst [vmem:[#allocation4 + $0x8] sm:$0x30] %v1449_v56  ;;  %v1598_v21 = vpack.c.bf16 %v1449_v56, %v1449_v56 }
 0x260   :  { %3794 = vpow2.f32 %v3507_v25  ;;  %v3793_v38 = vpop.eup %3792  ;;  %v1529_v13 = vadd.f32 1.0, %v3791_v59 }
 0x261   :  { %v1495_v40 = vpop.f32.mrf.mxu2  ;;  %v1508_v19 = vpop.f32.mrf.mxu3  ;;  %v1548_v16 = vadd.f32 1.0, %v3793_v38  ;;  %v1600_v54 = vrot.slane %v1598_v21, 2  ;;  %v1585_v21 = vrot.slane %v4666_v12, 2 }
 0x262   :  { %3796 = vrcp.f32 %v1529_v13  ;;  %v1541_v42 = vand.u32 2147483648, %v1529_v13  ;;  %v1539_v6 = vand.u32 2147483647, %v1529_v13  ;;  %vm1535_vm3 = vweird.f32 %v1529_v13 }
 0x263   :  { %3798 = vrcp.f32 %v1548_v16  ;;  %1610 = vmatmul.bf16.vlgmr.msrb.gmra.mxu0 %v1600_v54  ;;  %1623 = vmatmul.bf16.vlgmr.msrb.gmra.mxu1 %v1600_v54  ;;  %v1560_v22 = vand.u32 2147483648, %v1548_v16  ;;  %v1558_v25 = vand.u32 2147483647, %v1548_v16  ;;  %vm1554_vm4 = vweird.f32 %v1548_v16 }
 0x264   :  { %1636 = vmatmul.bf16.vlgmr.msrb.gmra.mxu2 %v1600_v54  ;;  %1649 = vmatmul.bf16.vlgmr.msrb.gmra.mxu3 %v1600_v54  ;;  %v1542_v59 = vor.u32 1.1754944e-38, %v1541_v42  ;;  %vm1540_vm7 = vcmp.eq.f32.partialorder %v1539_v6, 8.507059e+37  ;;  %v5328_v6 = vld [vmem:[#allocation27_spill] sm:$0xff] }
 0x265   :  { %1876 = vmatpush.bf16.msrb.mxu0 %v5265_v36  ;;  %1889 = vmatpush.bf16.msrb.mxu1 %v5266_v24  ;;  %v1561_v38 = vor.u32 1.1754944e-38, %v1560_v22  ;;  %vm1559_vm8 = vcmp.eq.f32.partialorder %v1558_v25, 8.507059e+37  ;;  %v5331_v25 = vld [vmem:[#allocation28_spill] sm:$0xff] }
 0x266   :  { %v3795_v26 = vpop.eup %3794  ;;  %1902 = vmatpush.bf16.msrb.mxu2 %v4248_v23  ;;  %1915 = vmatpush.bf16.msrb.mxu3 %v4250_v27 }
 0x267   :  { %v4731_v45 = vadd.f32 1.0, %v3795_v26 }
 0x268   :  { %v3797_v33 = vpop.eup %3796 }
 0x269   :  { %3800 = vrcp.f32 %v4731_v45  ;;  %v3799_v32 = vpop.eup %3798  ;;  %v1531_v61 = vmul.f32 %v3797_v33, %v1529_v13  ;;  %1877 = vmatpush.bf16.msrb.mxu0 %v5269_v63  ;;  %1890 = vmatpush.bf16.msrb.mxu1 %v5270_v52  ;;  %vm1536_vm1 = vweird.f32 %v3797_v33  ;;  %v1580_v12 = vand.u32 2147483648, %v4731_v45 }
 0x26a   :  { %v1550_v57 = vmul.f32 %v3799_v32, %v1548_v16  ;;  %3802 = vtanh.f32 %v1524_v37  ;;  %1903 = vmatpush.bf16.msrb.mxu2 %v4263_v39  ;;  %1916 = vmatpush.bf16.msrb.mxu3 %v4266_v43  ;;  %vm1555_vm2 = vweird.f32 %v3799_v32  ;;  %vm1537_vm5 = vmor %vm1535_vm3, %vm1536_vm1  ;;  %vm1574_vm10 = vweird.f32 %v4731_v45 }
 0x26b   :  { %v1532_v30 = vsub.f32 1.0, %v1531_v61  ;;  %vm1556_vm6 = vmor %vm1554_vm4, %vm1555_vm2 }
 0x26c   :  { %v1551_v14 = vsub.f32 1.0, %v1550_v57 }
 0x26d   :  { %v1533_v48 = vmul.f32 %v3797_v33, %v1532_v30  ;;  %1878 = vmatpush.bf16.msrb.mxu0 %v5273_v2  ;;  %1891 = vmatpush.bf16.msrb.mxu1 %v5274_v58  ;;  %v1581_v30 = vor.u32 1.1754944e-38, %v1580_v12  ;;  %v5348_v12 = vld [vmem:[#allocation41_spill] sm:$0xff] }
 0x26e   :  { %v1552_v1 = vmul.f32 %v3799_v32, %v1551_v14  ;;  %1904 = vmatpush.bf16.msrb.mxu2 %v4275_v55  ;;  %1917 = vmatpush.bf16.msrb.mxu3 %v4278_v60 }
 0x26f   :  { %v3801_v15 = vpop.eup %3800  ;;  %v1534_v44 = vadd.f32 %v3797_v33, %v1533_v48 }
 0x270   :  { %v1570_v53 = vmul.f32 %v3801_v15, %v4731_v45  ;;  %v1553_v56 = vadd.f32 %v3799_v32, %v1552_v1  ;;  %v3803_v13 = vpop.eup %3802  ;;  %vm1575_vm9 = vweird.f32 %v3801_v15  ;;  %v5330_v1 = vld [vmem:[#allocation39_spill] sm:$0xff] }
 0x271   :  { %v1538_v40 = vsel %vm1537_vm5, %v3797_v33, %v1534_v44  ;;  %1879 = vmatpush.bf16.msrb.mxu0 %v4237_v4  ;;  %1892 = vmatpush.bf16.msrb.mxu1 %v4240_v8  ;;  %vm1576_vm11 = vmor %vm1574_vm10, %vm1575_vm9  ;;  %v5332_v44 = vld [vmem:[#allocation29_spill] sm:$0xff] }
 0x272   :  { %v1571_v19 = vsub.f32 1.0, %v1570_v53  ;;  %v1543_v16 = vsel %vm1540_vm7, %v1542_v59, %v1538_v40  ;;  %v1557_v18 = vsel %vm1556_vm6, %v3799_v32, %v1553_v56  ;;  %1905 = vmatpush.bf16.msrb.mxu2 %v4291_v7  ;;  %1918 = vmatpush.bf16.msrb.mxu3 %v4294_v11  ;;  %v1578_v32 = vand.u32 2147483647, %v4731_v45  ;;  %v5333_v53 = vld [vmem:[#allocation42_spill] sm:$0xff]  ;;  %v5334_v59 = vld [vmem:[#allocation43_spill] sm:$0xff] }
 0x273   :  { %v1562_v54 = vsel %vm1559_vm8, %v1561_v38, %v1557_v18  ;;  %v1588_v26 = vmul.f32 %v3803_v13, %v1543_v16  ;;  %v5335_v56 = vld [vmem:[#allocation30_spill] sm:$0xff]  ;;  %v5336_v38 = vld [vmem:[#allocation31_spill] sm:$0xff]  ;;  %v5339_v13 = vld [vmem:[#allocation32_spill] sm:$0xff] }
 0x274   :  { %v1572_v62 = vmul.f32 %v3801_v15, %v1571_v19  ;;  %v1587_v37 = vmul.f32 %v1585_v21, %v1562_v54  ;;  %vm1579_vm12 = vcmp.eq.f32.partialorder %v1578_v32, 8.507059e+37  ;;  %v5337_v40 = vld [vmem:[#allocation46_spill] sm:$0xff]  ;;  %v5338_v19 = vld [vmem:[#allocation47_spill] sm:$0xff]  ;;  %v5340_v21 = vld [vmem:[#allocation33_spill] sm:$0xff] }
 0x275   :  { %1880 = vmatpush.bf16.msrb.mxu0 %v4243_v17  ;;  %1893 = vmatpush.bf16.msrb.mxu1 %v4246_v20  ;;  %v5341_v16 = vld [vmem:[#allocation50_spill] sm:$0xff]  ;;  %v5342_v18 = vld [vmem:[#allocation51_spill] sm:$0xff] }
 0x276   :  { %v4752_v33 = vadd.f32 %v1588_v26, %v1587_v37  ;;  %v1573_v61 = vadd.f32 %v3801_v15, %v1572_v62  ;;  %1906 = vmatpush.bf16.msrb.mxu2 %v4307_v28  ;;  %1919 = vmatpush.bf16.msrb.mxu3 %v4309_v29  ;;  %v5343_v54 = vld [vmem:[#allocation34_spill] sm:$0xff]  ;;  %v5344_v26 = vld [vmem:[#allocation35_spill] sm:$0xff]  ;;  %v5345_v62 = vld [vmem:[#allocation52_spill] sm:$0xff] }
 0x277   :  { %v5346_v37 = vld [vmem:[#allocation53_spill] sm:$0xff]  ;;  %v5349_v32 = vld [vmem:[#allocation54_spill] sm:$0xff] }
 0x278   :  { %3804 = vtanh.f32 %v4752_v33  ;;  %v1577_v57 = vsel %vm1576_vm11, %v3801_v15, %v1573_v61  ;;  %v5329_v15 = vld [vmem:[#allocation38_spill] sm:$0xff]  ;;  %v5347_v61 = vld [vmem:[#allocation40_spill] sm:$0xff] }
 0x279   :  { %1881 = vmatpush.bf16.msrb.mxu0 %v4253_v31  ;;  %1894 = vmatpush.bf16.msrb.mxu1 %v4258_v35  ;;  %v1582_v42 = vsel %vm1579_vm12, %v1581_v30, %v1577_v57  ;;  %v5350_v57 = vld [vmem:[#allocation55_spill] sm:$0xff]  ;;  %v5351_v30 = vld [vmem:[#allocation44_spill] sm:$0xff] }
 0x27a   :  { %1907 = vmatpush.bf16.msrb.mxu2 %v4324_v49  ;;  %1920 = vmatpush.bf16.msrb.mxu3 %v4326_v51 }
 0x27d   :  { %1882 = vmatpush.bf16.msrb.mxu0 %v4269_v46  ;;  %1895 = vmatpush.bf16.msrb.mxu1 %v4272_v50 }
 0x27e   :  { %v3805_v14 = vpop.eup %3804  ;;  %1908 = vmatpush.bf16.msrb.mxu2 %v4336_v9  ;;  %1921 = vmatpush.bf16.msrb.mxu3 %v4338_v10 }
 0x27f   :  { %v1591_v22 = vmul.f32 %v3805_v14, %v1582_v42  ;;  %v5352_v14 = vld [vmem:[#allocation45_spill] sm:$0xff]  ;;  %v5353_v42 = vld [vmem:[#allocation56_spill] sm:$0xff] }
 0x281   :  { %1593 = vst [vmem:[#allocation5] sm:$0xc] %v1591_v22  ;;  %v1740_v45 = vpack.c.bf16 %v1591_v22, %v1591_v22  ;;  %1883 = vmatpush.bf16.msrb.mxu0 %v4281_v0  ;;  %1896 = vmatpush.bf16.msrb.mxu1 %v4284_v3  ;;  %v5354_v22 = vld [vmem:[#allocation57_spill] sm:$0xff] }
 0x282   :  { %1909 = vmatpush.bf16.msrb.mxu2 %v4348_v41  ;;  %1922 = vmatpush.bf16.msrb.mxu3 %v4350_v47 }
 0x283   :  { %v1742_v48 = vrot.slane %v1740_v45, 1  ;;  %v5355_v45 = vld [vmem:[#allocation48_spill] sm:$0xff] }
 0x285   :  { %1752 = vmatmul.bf16.vlgmr.msra.gmra.mxu0 %v1742_v48  ;;  %1765 = vmatmul.bf16.vlgmr.msra.gmra.mxu1 %v1742_v48 }
 0x286   :  { %1778 = vmatmul.bf16.vlgmr.msra.gmra.mxu2 %v1742_v48  ;;  %1791 = vmatmul.bf16.vlgmr.msra.gmra.mxu3 %v1742_v48  ;;  %v5356_v48 = vld [vmem:[#allocation49_spill] sm:$0xff] }
 0x287   :  { %2003 = vmatpush.bf16.msra.mxu0 %v4286_v5  ;;  %2016 = vmatpush.bf16.msra.mxu1 %v5328_v6 }
 0x288   :  { %2029 = vmatpush.bf16.msra.mxu2 %v5329_v15  ;;  %2042 = vmatpush.bf16.msra.mxu3 %v5330_v1 }
 0x28b   :  { %2004 = vmatpush.bf16.msra.mxu0 %v5331_v25  ;;  %2017 = vmatpush.bf16.msra.mxu1 %v5332_v44 }
 0x28c   :  { %2030 = vmatpush.bf16.msra.mxu2 %v5333_v53  ;;  %2043 = vmatpush.bf16.msra.mxu3 %v5334_v59 }
 0x28f   :  { %2005 = vmatpush.bf16.msra.mxu0 %v5335_v56  ;;  %2018 = vmatpush.bf16.msra.mxu1 %v5336_v38 }
 0x290   :  { %2031 = vmatpush.bf16.msra.mxu2 %v5337_v40  ;;  %2044 = vmatpush.bf16.msra.mxu3 %v5338_v19 }
 0x293   :  { %2006 = vmatpush.bf16.msra.mxu0 %v5339_v13  ;;  %2019 = vmatpush.bf16.msra.mxu1 %v5340_v21 }
 0x294   :  { %2032 = vmatpush.bf16.msra.mxu2 %v5341_v16  ;;  %2045 = vmatpush.bf16.msra.mxu3 %v5342_v18 }
 0x297   :  { %2007 = vmatpush.bf16.msra.mxu0 %v5343_v54  ;;  %2020 = vmatpush.bf16.msra.mxu1 %v5344_v26  ;;  %v1594_v26 = vld [vmem:[#allocation2 + $0x30] sm:$0xc0] }
 0x298   :  { %2033 = vmatpush.bf16.msra.mxu2 %v5345_v62  ;;  %2046 = vmatpush.bf16.msra.mxu3 %v5346_v37  ;;  %v5357_v37 = vld [vmem:[#allocation58_spill] sm:$0xff] }
 0x29b   :  { %2008 = vmatpush.bf16.msra.mxu0 %v5347_v61  ;;  %2021 = vmatpush.bf16.msra.mxu1 %v5348_v12  ;;  %v5358_v61 = vld [vmem:[#allocation59_spill] sm:$0xff] }
 0x29c   :  { %2034 = vmatpush.bf16.msra.mxu2 %v5349_v32  ;;  %2047 = vmatpush.bf16.msra.mxu3 %v5350_v57 }
 0x29f   :  { %2009 = vmatpush.bf16.msra.mxu0 %v5351_v30  ;;  %2022 = vmatpush.bf16.msra.mxu1 %v5352_v14  ;;  %v1595_v30 = vld [vmem:[#allocation2] sm:$0xc0] }
 0x2a0   :  { %2035 = vmatpush.bf16.msra.mxu2 %v5353_v42  ;;  %2048 = vmatpush.bf16.msra.mxu3 %v5354_v22 }
 0x2a3   :  { %2010 = vmatpush.bf16.msra.mxu0 %v5355_v45  ;;  %2023 = vmatpush.bf16.msra.mxu1 %v5356_v48 }
 0x2a4   :  { %2036 = vmatpush.bf16.msra.mxu2 %v5357_v37  ;;  %2049 = vmatpush.bf16.msra.mxu3 %v5358_v61  ;;  %v1597_v37 = vld [vmem:[#allocation2 + $0x10] sm:$0xc0] }
 0x2e0   :  { %v1611_v12 = vpop.f32.mrf.mxu0  ;;  %v1624_v32 = vpop.f32.mrf.mxu1 }
 0x2e1   :  { %v1658_v62 = vrot.slane %v1611_v12, 2  ;;  %v1659_v57 = vrot.slane %v1624_v32, 2 }
 0x2e3   :  { %v1666_v54 = vadd.f32 %v1658_v62, %v1594_v26  ;;  %v1667_v14 = vadd.f32 %v1659_v57, %v1595_v30  ;;  %v1596_v62 = vld [vmem:[#allocation2 + $0x18] sm:$0xc0] }
 0x2e5   :  { %v3508_v18 = vmul.f32 -1.442695, %v1666_v54  ;;  %v3509_v42 = vmul.f32 -1.442695, %v1667_v14 }
 0x2e7   :  { %3806 = vpow2.f32 %v3508_v18  ;;  %v1637_v22 = vpop.f32.mrf.mxu2  ;;  %v1650_v16 = vpop.f32.mrf.mxu3 }
 0x2e8   :  { %3808 = vpow2.f32 %v3509_v42  ;;  %v1661_v45 = vrot.slane %v1650_v16, 2  ;;  %v1613_v48 = vpop.f32.mrf.mxu0  ;;  %v1626_v21 = vpop.f32.mrf.mxu1  ;;  %v1660_v54 = vrot.slane %v1637_v22, 2 }
 0x2ea   :  { %v1669_v13 = vadd.f32 %v1661_v45, %v1597_v37  ;;  %v1668_v30 = vadd.f32 %v1660_v54, %v1596_v62 }
 0x2ec   :  { %v3510_v61 = vmul.f32 -1.442695, %v1669_v13 }
 0x2ed   :  { %v3807_v19 = vpop.eup %3806 }
 0x2ee   :  { %v3809_v40 = vpop.eup %3808  ;;  %v1673_v12 = vadd.f32 1.0, %v3807_v19  ;;  %3810 = vpow2.f32 %v3510_v61 }
 0x2ef   :  { %v1692_v32 = vadd.f32 1.0, %v3809_v40  ;;  %v1639_v38 = vpop.f32.mrf.mxu2  ;;  %v1652_v26 = vpop.f32.mrf.mxu3 }
 0x2f0   :  { %3812 = vrcp.f32 %v1673_v12  ;;  %v1683_v61 = vand.u32 2147483647, %v1673_v12  ;;  %v1685_v40 = vand.u32 2147483648, %v1673_v12  ;;  %v1729_v26 = vrot.slane %v4725_v34, 6 }
 0x2f1   :  { %3814 = vrcp.f32 %v1692_v32  ;;  %v1704_v38 = vand.u32 2147483648, %v1692_v32  ;;  %v1702_v22 = vand.u32 2147483647, %v1692_v32  ;;  %vm1679_vm15 = vweird.f32 %v1673_v12 }
 0x2f2   :  { %vm1698_vm1 = vweird.f32 %v1692_v32  ;;  %vm1684_vm4 = vcmp.eq.f32.partialorder %v1683_v61, 8.507059e+37  ;;  %v1739_v61 = vld [vmem:[#allocation3 + $0x38] sm:$0x3] }
 0x2f3   :  { %vm1703_vm5 = vcmp.eq.f32.partialorder %v1702_v22, 8.507059e+37 }
 0x2f4   :  { %v3811_v18 = vpop.eup %3810 }
 0x2f5   :  { %v4806_v57 = vadd.f32 1.0, %v3811_v18  ;;  %v1686_v18 = vor.u32 1.1754944e-38, %v1685_v40 }
 0x2f6   :  { %v3813_v16 = vpop.eup %3812 }
 0x2f7   :  { %v3815_v21 = vpop.eup %3814  ;;  %v1675_v14 = vmul.f32 %v3813_v16, %v1673_v12  ;;  %3816 = vrcp.f32 %v4806_v57  ;;  %vm1680_vm13 = vweird.f32 %v3813_v16  ;;  %v1737_v12 = vld [vmem:[#allocation3 + $0x8] sm:$0x3]  ;;  %vm1718_vm7 = vweird.f32 %v4806_v57 }
 0x2f8   :  { %v1694_v13 = vmul.f32 %v3815_v21, %v1692_v32  ;;  %3818 = vtanh.f32 %v1668_v30  ;;  %vm1699_vm14 = vweird.f32 %v3815_v21  ;;  %vm1681_vm2 = vmor %vm1679_vm15, %vm1680_vm13 }
 0x2f9   :  { %v1676_v37 = vsub.f32 1.0, %v1675_v14  ;;  %vm1700_vm3 = vmor %vm1698_vm1, %vm1699_vm14 }
 0x2fa   :  { %v1695_v19 = vsub.f32 1.0, %v1694_v13  ;;  %v1705_v13 = vor.u32 1.1754944e-38, %v1704_v38 }
 0x2fb   :  { %v1677_v42 = vmul.f32 %v3813_v16, %v1676_v37  ;;  %v1736_v37 = vld [vmem:[#allocation3 + $0x28] sm:$0x3] }
 0x2fc   :  { %v1696_v45 = vmul.f32 %v3815_v21, %v1695_v19 }
 0x2fd   :  { %v3817_v48 = vpop.eup %3816  ;;  %v1678_v54 = vadd.f32 %v3813_v16, %v1677_v42 }
 0x2fe   :  { %v1697_v62 = vadd.f32 %v3815_v21, %v1696_v45  ;;  %v1714_v14 = vmul.f32 %v3817_v48, %v4806_v57  ;;  %v3819_v59 = vpop.eup %3818  ;;  %vm1719_vm6 = vweird.f32 %v3817_v48 }
 0x2ff   :  { %v1682_v30 = vsel %vm1681_vm2, %v3813_v16, %v1678_v54  ;;  %vm1720_vm8 = vmor %vm1718_vm7, %vm1719_vm6 }
 0x300   :  { %v1687_v53 = vsel %vm1684_vm4, %v1686_v18, %v1682_v30  ;;  %v1701_v44 = vsel %vm1700_vm3, %v3815_v21, %v1697_v62  ;;  %v1715_v34 = vsub.f32 1.0, %v1714_v14 }
 0x301   :  { %v1706_v32 = vsel %vm1703_vm5, %v1705_v13, %v1701_v44  ;;  %v1732_v25 = vmul.f32 %v3819_v59, %v1687_v53  ;;  %v1724_v44 = vand.u32 2147483648, %v4806_v57 }
 0x302   :  { %v1753_v56 = vpop.f32.mrf.mxu0  ;;  %v1766_v19 = vpop.f32.mrf.mxu1  ;;  %v1731_v45 = vmul.f32 %v1729_v26, %v1706_v32  ;;  %v1716_v6 = vmul.f32 %v3817_v48, %v1715_v34 }
 0x303   :  { %v1796_v42 = vadd.f32 %v1753_v56, %v1736_v37  ;;  %v1797_v40 = vadd.f32 %v1766_v19, %v1737_v12  ;;  %v1725_v13 = vor.u32 1.1754944e-38, %v1724_v44 }
 0x304   :  { %v4811_v38 = vadd.f32 %v1732_v25, %v1731_v45  ;;  %v1717_v18 = vadd.f32 %v3817_v48, %v1716_v6  ;;  %v1722_v25 = vand.u32 2147483647, %v4806_v57  ;;  %v1738_v57 = vld [vmem:[#allocation3 + $0x30] sm:$0x3] }
 0x305   :  { %v3511_v1 = vmul.f32 -1.442695, %v1796_v42  ;;  %v3512_v15 = vmul.f32 -1.442695, %v1797_v40 }
 0x306   :  { %v1721_v26 = vsel %vm1720_vm8, %v3817_v48, %v1717_v18  ;;  %vm1723_vm9 = vcmp.eq.f32.partialorder %v1722_v25, 8.507059e+37 }
 0x307   :  { %3820 = vpow2.f32 %v3511_v1  ;;  %v1726_v37 = vsel %vm1723_vm9, %v1725_v13, %v1721_v26 }
 0x308   :  { %3822 = vpow2.f32 %v3512_v15 }
 0x309   :  { %3824 = vtanh.f32 %v4811_v38  ;;  %v1779_v16 = vpop.f32.mrf.mxu2  ;;  %v1792_v22 = vpop.f32.mrf.mxu3 }
 0x30a   :  { %v1799_v21 = vadd.f32 %v1792_v22, %v1739_v61  ;;  %v1755_v54 = vpop.f32.mrf.mxu0  ;;  %v1768_v56 = vpop.f32.mrf.mxu1  ;;  %v1798_v40 = vadd.f32 %v1779_v16, %v1738_v57 }
 0x30c   :  { %v3513_v53 = vmul.f32 -1.442695, %v1799_v21 }
 0x30d   :  { %v3821_v59 = vpop.eup %3820 }
 0x30e   :  { %v3823_v15 = vpop.eup %3822  ;;  %v1803_v1 = vadd.f32 1.0, %v3821_v59  ;;  %3826 = vpow2.f32 %v3513_v53 }
 0x30f   :  { %v3825_v62 = vpop.eup %3824  ;;  %v1822_v14 = vadd.f32 1.0, %v3823_v15 }
 0x310   :  { %3828 = vrcp.f32 %v1803_v1  ;;  %v1735_v19 = vmul.f32 %v3825_v62, %v1726_v37  ;;  %v1815_v56 = vand.u32 2147483648, %v1803_v1  ;;  %v1813_v44 = vand.u32 2147483647, %v1803_v1 }
 0x311   :  { %3830 = vrcp.f32 %v1822_v14  ;;  %v1781_v6 = vpop.f32.mrf.mxu2  ;;  %v1794_v30 = vpop.f32.mrf.mxu3  ;;  %v1834_v18 = vand.u32 2147483648, %v1822_v14  ;;  %v1832_v25 = vand.u32 2147483647, %v1822_v14  ;;  %vm1809_vm12 = vweird.f32 %v1803_v1 }
 0x312   :  { %1866 = vst [vmem:[#allocation4 + $0x8] sm:$0xc0] %v1735_v19  ;;  %v1872_v42 = vpack.c.bf16 %v1735_v19, %v1735_v19  ;;  %vm1828_vm13 = vweird.f32 %v1822_v14  ;;  %v1816_v26 = vor.u32 1.1754944e-38, %v1815_v56  ;;  %vm1814_vm1 = vcmp.eq.f32.partialorder %v1813_v44, 8.507059e+37  ;;  %v5360_v44 = vld [vmem:[#allocation38_spill] sm:$0xff] }
 0x313   :  { %v1835_v6 = vor.u32 1.1754944e-38, %v1834_v18  ;;  %v1859_v37 = vrot.slane %v4752_v33, 2  ;;  %vm1833_vm2 = vcmp.eq.f32.partialorder %v1832_v25, 8.507059e+37  ;;  %v5362_v25 = vld [vmem:[#allocation28_spill] sm:$0xff] }
 0x314   :  { %v3827_v34 = vpop.eup %3826  ;;  %v1874_v45 = vrot.slane %v1872_v42, 3 }
 0x315   :  { %v4817_v12 = vadd.f32 1.0, %v3827_v34 }
 0x316   :  { %v3829_v32 = vpop.eup %3828  ;;  %1884 = vmatmul.bf16.vlgmr.msrb.gmra.mxu0 %v1874_v45  ;;  %1897 = vmatmul.bf16.vlgmr.msrb.gmra.mxu1 %v1874_v45 }
 0x317   :  { %v3831_v48 = vpop.eup %3830  ;;  %v1805_v61 = vmul.f32 %v3829_v32, %v1803_v1  ;;  %3832 = vrcp.f32 %v4817_v12  ;;  %1910 = vmatmul.bf16.vlgmr.msrb.gmra.mxu2 %v1874_v45  ;;  %1923 = vmatmul.bf16.vlgmr.msrb.gmra.mxu3 %v1874_v45  ;;  %vm1810_vm10 = vweird.f32 %v3829_v32  ;;  %vm1848_vm4 = vweird.f32 %v4817_v12 }
 0x318   :  { %v1824_v22 = vmul.f32 %v3831_v48, %v1822_v14  ;;  %3834 = vtanh.f32 %v1798_v40  ;;  %2144 = vmatpush.bf16.msrb.mxu0 %v5265_v36  ;;  %2157 = vmatpush.bf16.msrb.mxu1 %v5266_v24  ;;  %vm1829_vm11 = vweird.f32 %v3831_v48  ;;  %vm1811_vm14 = vmor %vm1809_vm12, %vm1810_vm10 }
 0x319   :  { %v1806_v21 = vsub.f32 1.0, %v1805_v61  ;;  %2170 = vmatpush.bf16.msrb.mxu2 %v4248_v23  ;;  %2183 = vmatpush.bf16.msrb.mxu3 %v4250_v27  ;;  %vm1830_vm15 = vmor %vm1828_vm13, %vm1829_vm11  ;;  %v1852_v61 = vand.u32 2147483647, %v4817_v12 }
 0x31a   :  { %v1825_v54 = vsub.f32 1.0, %v1824_v22 }
 0x31b   :  { %v1807_v16 = vmul.f32 %v3829_v32, %v1806_v21  ;;  %vm1853_vm6 = vcmp.eq.f32.partialorder %v1852_v61, 8.507059e+37  ;;  %v5381_v61 = vld [vmem:[#allocation55_spill] sm:$0xff] }
 0x31c   :  { %v1826_v53 = vmul.f32 %v3831_v48, %v1825_v54  ;;  %2145 = vmatpush.bf16.msrb.mxu0 %v5269_v63  ;;  %2158 = vmatpush.bf16.msrb.mxu1 %v5270_v52 }
 0x31d   :  { %v3833_v59 = vpop.eup %3832  ;;  %v1808_v15 = vadd.f32 %v3829_v32, %v1807_v16  ;;  %2171 = vmatpush.bf16.msrb.mxu2 %v4263_v39  ;;  %2184 = vmatpush.bf16.msrb.mxu3 %v4266_v43  ;;  %v5359_v16 = vld [vmem:[#allocation27_spill] sm:$0xff] }
 0x31e   :  { %v1827_v62 = vadd.f32 %v3831_v48, %v1826_v53  ;;  %v1844_v13 = vmul.f32 %v3833_v59, %v4817_v12  ;;  %v3835_v1 = vpop.eup %3834  ;;  %vm1849_vm3 = vweird.f32 %v3833_v59  ;;  %v5361_v53 = vld [vmem:[#allocation39_spill] sm:$0xff] }
 0x31f   :  { %v1812_v30 = vsel %vm1811_vm14, %v3829_v32, %v1808_v15  ;;  %vm1850_vm5 = vmor %vm1848_vm4, %vm1849_vm3  ;;  %v5364_v15 = vld [vmem:[#allocation42_spill] sm:$0xff] }
 0x320   :  { %v1817_v14 = vsel %vm1814_vm1, %v1816_v26, %v1812_v30  ;;  %v1831_v19 = vsel %vm1830_vm15, %v3831_v48, %v1827_v62  ;;  %v1845_v34 = vsub.f32 1.0, %v1844_v13  ;;  %2146 = vmatpush.bf16.msrb.mxu0 %v5273_v2  ;;  %2159 = vmatpush.bf16.msrb.mxu1 %v5274_v58  ;;  %v1854_v48 = vand.u32 2147483648, %v4817_v12  ;;  %v5365_v26 = vld [vmem:[#allocation43_spill] sm:$0xff]  ;;  %v5366_v62 = vld [vmem:[#allocation30_spill] sm:$0xff] }
 0x321   :  { %v1836_v42 = vsel %vm1833_vm2, %v1835_v6, %v1831_v19  ;;  %v1862_v57 = vmul.f32 %v3835_v1, %v1817_v14  ;;  %2172 = vmatpush.bf16.msrb.mxu2 %v4275_v55  ;;  %2185 = vmatpush.bf16.msrb.mxu3 %v4278_v60  ;;  %v5367_v13 = vld [vmem:[#allocation31_spill] sm:$0xff]  ;;  %v5368_v6 = vld [vmem:[#allocation46_spill] sm:$0xff]  ;;  %v5371_v1 = vld [vmem:[#allocation33_spill] sm:$0xff] }
 0x322   :  { %v1861_v40 = vmul.f32 %v1859_v37, %v1836_v42  ;;  %v1846_v45 = vmul.f32 %v3833_v59, %v1845_v34  ;;  %v1855_v21 = vor.u32 1.1754944e-38, %v1854_v48  ;;  %v5369_v30 = vld [vmem:[#allocation47_spill] sm:$0xff]  ;;  %v5370_v37 = vld [vmem:[#allocation32_spill] sm:$0xff]  ;;  %v5372_v14 = vld [vmem:[#allocation50_spill] sm:$0xff] }
 0x323   :  { %v5373_v19 = vld [vmem:[#allocation51_spill] sm:$0xff]  ;;  %v5374_v34 = vld [vmem:[#allocation34_spill] sm:$0xff] }
 0x324   :  { %v4834_v33 = vadd.f32 %v1862_v57, %v1861_v40  ;;  %v1847_v32 = vadd.f32 %v3833_v59, %v1846_v45  ;;  %2147 = vmatpush.bf16.msrb.mxu0 %v4237_v4  ;;  %2160 = vmatpush.bf16.msrb.mxu1 %v4240_v8  ;;  %v5375_v42 = vld [vmem:[#allocation35_spill] sm:$0xff]  ;;  %v5376_v57 = vld [vmem:[#allocation52_spill] sm:$0xff]  ;;  %v5377_v40 = vld [vmem:[#allocation53_spill] sm:$0xff] }
 0x325   :  { %2173 = vmatpush.bf16.msrb.mxu2 %v4291_v7  ;;  %2186 = vmatpush.bf16.msrb.mxu3 %v4294_v11  ;;  %v5378_v45 = vld [vmem:[#allocation40_spill] sm:$0xff]  ;;  %v5380_v48 = vld [vmem:[#allocation54_spill] sm:$0xff] }
 0x326   :  { %3836 = vtanh.f32 %v4834_v33  ;;  %v1851_v22 = vsel %vm1850_vm5, %v3833_v59, %v1847_v32  ;;  %v5363_v59 = vld [vmem:[#allocation29_spill] sm:$0xff] }
 0x327   :  { %v1856_v56 = vsel %vm1853_vm6, %v1855_v21, %v1851_v22  ;;  %v5379_v32 = vld [vmem:[#allocation41_spill] sm:$0xff]  ;;  %v5382_v22 = vld [vmem:[#allocation44_spill] sm:$0xff] }
 0x328   :  { %2148 = vmatpush.bf16.msrb.mxu0 %v4243_v17  ;;  %2161 = vmatpush.bf16.msrb.mxu1 %v4246_v20  ;;  %v5383_v21 = vld [vmem:[#allocation45_spill] sm:$0xff] }
 0x329   :  { %2174 = vmatpush.bf16.msrb.mxu2 %v4307_v28  ;;  %2187 = vmatpush.bf16.msrb.mxu3 %v4309_v29 }
 0x32c   :  { %v3837_v54 = vpop.eup %3836  ;;  %2149 = vmatpush.bf16.msrb.mxu0 %v4253_v31  ;;  %2162 = vmatpush.bf16.msrb.mxu1 %v4258_v35 }
 0x32d   :  { %v1865_v18 = vmul.f32 %v3837_v54, %v1856_v56  ;;  %2175 = vmatpush.bf16.msrb.mxu2 %v4324_v49  ;;  %2188 = vmatpush.bf16.msrb.mxu3 %v4326_v51  ;;  %v5384_v54 = vld [vmem:[#allocation56_spill] sm:$0xff]  ;;  %v5385_v56 = vld [vmem:[#allocation57_spill] sm:$0xff] }
 0x32f   :  { %1867 = vst [vmem:[#allocation5] sm:$0x3] %v1865_v18  ;;  %v2002_v12 = vpack.c.bf16 %v1865_v18, %v1865_v18  ;;  %v5386_v18 = vld [vmem:[#allocation48_spill] sm:$0xff] }
 0x330   :  { %2150 = vmatpush.bf16.msrb.mxu0 %v4269_v46  ;;  %2163 = vmatpush.bf16.msrb.mxu1 %v4272_v50 }
 0x331   :  { %2011 = vmatmul.bf16.vlgmr.msra.gmra.mxu0 %v2002_v12  ;;  %2024 = vmatmul.bf16.vlgmr.msra.gmra.mxu1 %v2002_v12 }
 0x332   :  { %2037 = vmatmul.bf16.vlgmr.msra.gmra.mxu2 %v2002_v12  ;;  %2050 = vmatmul.bf16.vlgmr.msra.gmra.mxu3 %v2002_v12  ;;  %v5387_v12 = vld [vmem:[#allocation49_spill] sm:$0xff] }
 0x333   :  { %2176 = vmatpush.bf16.msrb.mxu2 %v4336_v9  ;;  %2189 = vmatpush.bf16.msrb.mxu3 %v4338_v10 }
 0x334   :  { %2151 = vmatpush.bf16.msrb.mxu0 %v4281_v0  ;;  %2164 = vmatpush.bf16.msrb.mxu1 %v4284_v3 }
 0x337   :  { %2177 = vmatpush.bf16.msrb.mxu2 %v4348_v41  ;;  %2190 = vmatpush.bf16.msrb.mxu3 %v4350_v47 }
 0x338   :  { %2286 = vmatpush.bf16.msra.mxu0 %v4286_v5  ;;  %2299 = vmatpush.bf16.msra.mxu1 %v5359_v16 }
 0x33b   :  { %2312 = vmatpush.bf16.msra.mxu2 %v5360_v44  ;;  %2325 = vmatpush.bf16.msra.mxu3 %v5361_v53 }
 0x33c   :  { %2287 = vmatpush.bf16.msra.mxu0 %v5362_v25  ;;  %2300 = vmatpush.bf16.msra.mxu1 %v5363_v59 }
 0x33f   :  { %2313 = vmatpush.bf16.msra.mxu2 %v5364_v15  ;;  %2326 = vmatpush.bf16.msra.mxu3 %v5365_v26  ;;  %v1999_v15 = vld [vmem:[#allocation3 + $0x18] sm:$0xc0] }
 0x340   :  { %2288 = vmatpush.bf16.msra.mxu0 %v5366_v62  ;;  %2301 = vmatpush.bf16.msra.mxu1 %v5367_v13 }
 0x343   :  { %2314 = vmatpush.bf16.msra.mxu2 %v5368_v6  ;;  %2327 = vmatpush.bf16.msra.mxu3 %v5369_v30 }
 0x344   :  { %2289 = vmatpush.bf16.msra.mxu0 %v5370_v37  ;;  %2302 = vmatpush.bf16.msra.mxu1 %v5371_v1 }
 0x347   :  { %2315 = vmatpush.bf16.msra.mxu2 %v5372_v14  ;;  %2328 = vmatpush.bf16.msra.mxu3 %v5373_v19 }
 0x348   :  { %2290 = vmatpush.bf16.msra.mxu0 %v5374_v34  ;;  %2303 = vmatpush.bf16.msra.mxu1 %v5375_v42 }
 0x34b   :  { %2316 = vmatpush.bf16.msra.mxu2 %v5376_v57  ;;  %2329 = vmatpush.bf16.msra.mxu3 %v5377_v40  ;;  %v5388_v40 = vld [vmem:[#allocation58_spill] sm:$0xff]  ;;  %v1869_v57 = vld [vmem:[#allocation2 + $0x20] sm:$0x3] }
 0x34c   :  { %2291 = vmatpush.bf16.msra.mxu0 %v5378_v45  ;;  %2304 = vmatpush.bf16.msra.mxu1 %v5379_v32  ;;  %v5389_v45 = vld [vmem:[#allocation59_spill] sm:$0xff]  ;;  %v1868_v32 = vld [vmem:[#allocation2 + $0x8] sm:$0x3] }
 0x34f   :  { %2317 = vmatpush.bf16.msra.mxu2 %v5380_v48  ;;  %2330 = vmatpush.bf16.msra.mxu3 %v5381_v61 }
 0x350   :  { %2292 = vmatpush.bf16.msra.mxu0 %v5382_v22  ;;  %2305 = vmatpush.bf16.msra.mxu1 %v5383_v21 }
 0x353   :  { %2318 = vmatpush.bf16.msra.mxu2 %v5384_v54  ;;  %2331 = vmatpush.bf16.msra.mxu3 %v5385_v56  ;;  %v1871_v56 = vld [vmem:[#allocation2 + $0x38] sm:$0x3] }
 0x354   :  { %2293 = vmatpush.bf16.msra.mxu0 %v5386_v18  ;;  %2306 = vmatpush.bf16.msra.mxu1 %v5387_v12 }
 0x357   :  { %2319 = vmatpush.bf16.msra.mxu2 %v5388_v40  ;;  %2332 = vmatpush.bf16.msra.mxu3 %v5389_v45 }
 0x393   :  { %v1885_v48 = vpop.f32.mrf.mxu0  ;;  %v1898_v61 = vpop.f32.mrf.mxu1 }
 0x394   :  { %v1928_v42 = vadd.f32 %v1885_v48, %v1868_v32  ;;  %v1929_v22 = vadd.f32 %v1898_v61, %v1869_v57  ;;  %v1870_v48 = vld [vmem:[#allocation2 + $0x28] sm:$0x3] }
 0x396   :  { %v3514_v34 = vmul.f32 -1.442695, %v1928_v42  ;;  %v3515_v21 = vmul.f32 -1.442695, %v1929_v22 }
 0x398   :  { %3838 = vpow2.f32 %v3514_v34 }
 0x399   :  { %3840 = vpow2.f32 %v3515_v21 }
 0x39a   :  { %v1911_v54 = vpop.f32.mrf.mxu2  ;;  %v1924_v19 = vpop.f32.mrf.mxu3 }
 0x39b   :  { %v1931_v18 = vadd.f32 %v1924_v19, %v1871_v56  ;;  %v1887_v14 = vpop.f32.mrf.mxu0  ;;  %v1900_v12 = vpop.f32.mrf.mxu1  ;;  %v1930_v22 = vadd.f32 %v1911_v54, %v1870_v48 }
 0x39d   :  { %v3516_v1 = vmul.f32 -1.442695, %v1931_v18 }
 0x39e   :  { %v3839_v40 = vpop.eup %3838 }
 0x39f   :  { %v3841_v37 = vpop.eup %3840  ;;  %v1935_v45 = vadd.f32 1.0, %v3839_v40  ;;  %3842 = vpow2.f32 %v3516_v1 }
 0x3a0   :  { %v1954_v30 = vadd.f32 1.0, %v3841_v37  ;;  %v1991_v37 = vrot.slane %v4811_v38, 6 }
 0x3a1   :  { %3844 = vrcp.f32 %v1935_v45  ;;  %v1947_v18 = vand.u32 2147483648, %v1935_v45  ;;  %v1945_v1 = vand.u32 2147483647, %v1935_v45  ;;  %vm1941_vm10 = vweird.f32 %v1935_v45 }
 0x3a2   :  { %3846 = vrcp.f32 %v1954_v30  ;;  %v1913_v32 = vpop.f32.mrf.mxu2  ;;  %v1926_v57 = vpop.f32.mrf.mxu3  ;;  %v1966_v12 = vand.u32 2147483648, %v1954_v30  ;;  %vm1960_vm9 = vweird.f32 %v1954_v30 }
 0x3a3   :  { %v1964_v57 = vand.u32 2147483647, %v1954_v30  ;;  %vm1946_vm13 = vcmp.eq.f32.partialorder %v1945_v1, 8.507059e+37 }
 0x3a5   :  { %v3843_v42 = vpop.eup %3842  ;;  %vm1965_vm14 = vcmp.eq.f32.partialorder %v1964_v57, 8.507059e+37 }
 0x3a6   :  { %v4892_v34 = vadd.f32 1.0, %v3843_v42 }
 0x3a7   :  { %v3845_v61 = vpop.eup %3844 }
 0x3a8   :  { %v3847_v21 = vpop.eup %3846  ;;  %v1937_v19 = vmul.f32 %v3845_v61, %v1935_v45  ;;  %3848 = vrcp.f32 %v4892_v34  ;;  %vm1942_vm7 = vweird.f32 %v3845_v61  ;;  %vm1980_vm1 = vweird.f32 %v4892_v34 }
 0x3a9   :  { %v1956_v14 = vmul.f32 %v3847_v21, %v1954_v30  ;;  %3850 = vtanh.f32 %v1930_v22  ;;  %vm1961_vm8 = vweird.f32 %v3847_v21  ;;  %vm1943_vm11 = vmor %vm1941_vm10, %vm1942_vm7 }
 0x3aa   :  { %v1938_v56 = vsub.f32 1.0, %v1937_v19  ;;  %v1948_v19 = vor.u32 1.1754944e-38, %v1947_v18  ;;  %vm1962_vm12 = vmor %vm1960_vm9, %vm1961_vm8 }
 0x3ab   :  { %v1957_v40 = vsub.f32 1.0, %v1956_v14  ;;  %v1998_v14 = vld [vmem:[#allocation3] sm:$0xc0] }
 0x3ac   :  { %v1939_v32 = vmul.f32 %v3845_v61, %v1938_v56 }
 0x3ad   :  { %v1958_v13 = vmul.f32 %v3847_v21, %v1957_v40  ;;  %v1967_v40 = vor.u32 1.1754944e-38, %v1966_v12 }
 0x3ae   :  { %v2012_v42 = vpop.f32.mrf.mxu0  ;;  %v2025_v6 = vpop.f32.mrf.mxu1  ;;  %v1940_v26 = vadd.f32 %v3845_v61, %v1939_v32 }
 0x3af   :  { %v2059_v54 = vrot.slane %v2012_v42, 2  ;;  %v2060_v48 = vrot.slane %v2025_v6, 2  ;;  %v3849_v62 = vpop.eup %3848  ;;  %v1959_v38 = vadd.f32 %v3847_v21, %v1958_v13 }
 0x3b0   :  { %v1976_v22 = vmul.f32 %v3849_v62, %v4892_v34  ;;  %v1944_v25 = vsel %vm1943_vm11, %v3845_v61, %v1940_v26  ;;  %v3851_v6 = vpop.eup %3850  ;;  %v2001_v61 = vld [vmem:[#allocation3 + $0x20] sm:$0xc0]  ;;  %vm1981_vm15 = vweird.f32 %v3849_v62 }
 0x3b1   :  { %v2067_v56 = vadd.f32 %v2059_v54, %v1998_v14  ;;  %v2068_v59 = vadd.f32 %v2060_v48, %v1999_v15  ;;  %v1949_v30 = vsel %vm1946_vm13, %v1948_v19, %v1944_v25  ;;  %v1963_v32 = vsel %vm1962_vm12, %v3847_v21, %v1959_v38  ;;  %vm1982_vm2 = vmor %vm1980_vm1, %vm1981_vm15 }
 0x3b2   :  { %v1977_v45 = vsub.f32 1.0, %v1976_v22  ;;  %v1968_v42 = vsel %vm1965_vm14, %v1967_v40, %v1963_v32  ;;  %v1994_v53 = vmul.f32 %v3851_v6, %v1949_v30  ;;  %v1986_v21 = vand.u32 2147483648, %v4892_v34 }
 0x3b3   :  { %v3517_v18 = vmul.f32 -1.442695, %v2067_v56  ;;  %v3518_v44 = vmul.f32 -1.442695, %v2068_v59  ;;  %v1993_v16 = vmul.f32 %v1991_v37, %v1968_v42  ;;  %v1984_v37 = vand.u32 2147483647, %v4892_v34 }
 0x3b4   :  { %v1978_v13 = vmul.f32 %v3849_v62, %v1977_v45  ;;  %v1987_v22 = vor.u32 1.1754944e-38, %v1986_v21  ;;  %v2000_v45 = vld [vmem:[#allocation3 + $0x10] sm:$0xc0] }
 0x3b5   :  { %3852 = vpow2.f32 %v3517_v18  ;;  %v2038_v5 = vpop.f32.mrf.mxu2  ;;  %v2051_v54 = vpop.f32.mrf.mxu3  ;;  %v4899_v26 = vadd.f32 %v1994_v53, %v1993_v16  ;;  %vm1985_vm3 = vcmp.eq.f32.partialorder %v1984_v37, 8.507059e+37 }
 0x3b6   :  { %3854 = vpow2.f32 %v3518_v44  ;;  %v2062_v15 = vrot.slane %v2051_v54, 2  ;;  %v2014_v48 = vpop.f32.mrf.mxu0  ;;  %v2027_v12 = vpop.f32.mrf.mxu1  ;;  %v1979_v25 = vadd.f32 %v3849_v62, %v1978_v13  ;;  %v2061_v6 = vrot.slane %v2038_v5, 2 }
 0x3b7   :  { %3856 = vtanh.f32 %v4899_v26 }
 0x3b8   :  { %v2070_v1 = vadd.f32 %v2062_v15, %v2001_v61  ;;  %v1983_v16 = vsel %vm1982_vm2, %v3849_v62, %v1979_v25  ;;  %v2069_v13 = vadd.f32 %v2061_v6, %v2000_v45 }
 0x3b9   :  { %v1988_v40 = vsel %vm1985_vm3, %v1987_v22, %v1983_v16 }
 0x3ba   :  { %v3519_v59 = vmul.f32 -1.442695, %v2070_v1 }
 0x3bb   :  { %v3853_v57 = vpop.eup %3852 }
 0x3bc   :  { %v3855_v44 = vpop.eup %3854  ;;  %v2074_v19 = vadd.f32 1.0, %v3853_v57  ;;  %3858 = vpow2.f32 %v3519_v59 }
 0x3bd   :  { %v2093_v53 = vadd.f32 1.0, %v3855_v44  ;;  %v2040_v14 = vpop.f32.mrf.mxu2  ;;  %v2053_v38 = vpop.f32.mrf.mxu3 }
 0x3be   :  { %3860 = vrcp.f32 %v2074_v19  ;;  %v3857_v56 = vpop.eup %3856  ;;  %v2086_v12 = vand.u32 2147483648, %v2074_v19  ;;  %v2084_v25 = vand.u32 2147483647, %v2074_v19  ;;  %vm2080_vm6 = vweird.f32 %v2074_v19 }
 0x3bf   :  { %3862 = vrcp.f32 %v2093_v53  ;;  %v1997_v30 = vmul.f32 %v3857_v56, %v1988_v40  ;;  %v2105_v61 = vand.u32 2147483648, %v2093_v53  ;;  %v2103_v59 = vand.u32 2147483647, %v2093_v53 }
 0x3c0   :  { %vm2099_vm7 = vweird.f32 %v2093_v53  ;;  %v2087_v44 = vor.u32 1.1754944e-38, %v2086_v12  ;;  %v2130_v38 = vrot.slane %v4834_v33, 2  ;;  %vm2085_vm10 = vcmp.eq.f32.partialorder %v2084_v25, 8.507059e+37  ;;  %v5391_v25 = vld [vmem:[#allocation27_spill] sm:$0xff] }
 0x3c1   :  { %2137 = vst [vmem:[#allocation4] sm:$0x3] %v1997_v30  ;;  %v2143_v34 = vpack.c.bf16 %v1997_v30, %v1997_v30  ;;  %v2106_v22 = vor.u32 1.1754944e-38, %v2105_v61  ;;  %vm2104_vm11 = vcmp.eq.f32.partialorder %v2103_v59, 8.507059e+37  ;;  %v5393_v59 = vld [vmem:[#allocation39_spill] sm:$0xff] }
 0x3c2   :  { %v3859_v32 = vpop.eup %3858 }
 0x3c3   :  { %v4905_v18 = vadd.f32 1.0, %v3859_v32  ;;  %2152 = vmatmul.bf16.vlgmr.msrb.gmra.mxu0 %v2143_v34  ;;  %2165 = vmatmul.bf16.vlgmr.msrb.gmra.mxu1 %v2143_v34 }
 0x3c4   :  { %v3861_v42 = vpop.eup %3860  ;;  %2178 = vmatmul.bf16.vlgmr.msrb.gmra.mxu2 %v2143_v34  ;;  %2191 = vmatmul.bf16.vlgmr.msrb.gmra.mxu3 %v2143_v34 }
 0x3c5   :  { %v3863_v62 = vpop.eup %3862  ;;  %v2076_v54 = vmul.f32 %v3861_v42, %v2074_v19  ;;  %3864 = vrcp.f32 %v4905_v18  ;;  %2430 = vmatpush.bf16.msrb.mxu0 %v5265_v36  ;;  %2443 = vmatpush.bf16.msrb.mxu1 %v5266_v24  ;;  %vm2081_vm4 = vweird.f32 %v3861_v42  ;;  %vm2119_vm13 = vweird.f32 %v4905_v18 }
 0x3c6   :  { %v2095_v15 = vmul.f32 %v3863_v62, %v2093_v53  ;;  %2456 = vmatpush.bf16.msrb.mxu2 %v4248_v23  ;;  %2469 = vmatpush.bf16.msrb.mxu3 %v4250_v27  ;;  %3866 = vtanh.f32 %v2069_v13  ;;  %vm2100_vm5 = vweird.f32 %v3863_v62  ;;  %vm2082_vm8 = vmor %vm2080_vm6, %vm2081_vm4  ;;  %v2125_v13 = vand.u32 2147483648, %v4905_v18 }
 0x3c7   :  { %v2077_v5 = vsub.f32 1.0, %v2076_v54  ;;  %vm2101_vm9 = vmor %vm2099_vm7, %vm2100_vm5 }
 0x3c8   :  { %v2096_v48 = vsub.f32 1.0, %v2095_v15  ;;  %v2126_v15 = vor.u32 1.1754944e-38, %v2125_v13  ;;  %v5411_v13 = vld [vmem:[#allocation41_spill] sm:$0xff] }
 0x3c9   :  { %v2078_v1 = vmul.f32 %v3861_v42, %v2077_v5  ;;  %2431 = vmatpush.bf16.msrb.mxu0 %v5269_v63  ;;  %2444 = vmatpush.bf16.msrb.mxu1 %v5270_v52 }
 0x3ca   :  { %v2097_v21 = vmul.f32 %v3863_v62, %v2096_v48  ;;  %2457 = vmatpush.bf16.msrb.mxu2 %v4263_v39  ;;  %2470 = vmatpush.bf16.msrb.mxu3 %v4266_v43 }
 0x3cb   :  { %v3865_v37 = vpop.eup %3864  ;;  %v2079_v57 = vadd.f32 %v3861_v42, %v2078_v1  ;;  %v5390_v1 = vld [vmem:[#allocation26_spill] sm:$0xff] }
 0x3cc   :  { %v2098_v16 = vadd.f32 %v3863_v62, %v2097_v21  ;;  %v2115_v14 = vmul.f32 %v3865_v37, %v4905_v18  ;;  %v3867_v40 = vpop.eup %3866  ;;  %vm2120_vm12 = vweird.f32 %v3865_v37  ;;  %v5392_v21 = vld [vmem:[#allocation38_spill] sm:$0xff] }
 0x3cd   :  { %v2083_v56 = vsel %vm2082_vm8, %v3861_v42, %v2079_v57  ;;  %2432 = vmatpush.bf16.msrb.mxu0 %v5273_v2  ;;  %2445 = vmatpush.bf16.msrb.mxu1 %v5274_v58  ;;  %vm2121_vm14 = vmor %vm2119_vm13, %vm2120_vm12  ;;  %v5395_v57 = vld [vmem:[#allocation29_spill] sm:$0xff] }
 0x3ce   :  { %v2088_v6 = vsel %vm2085_vm10, %v2087_v44, %v2083_v56  ;;  %v2102_v19 = vsel %vm2101_vm9, %v3863_v62, %v2098_v16  ;;  %v2116_v30 = vsub.f32 1.0, %v2115_v14  ;;  %2458 = vmatpush.bf16.msrb.mxu2 %v4275_v55  ;;  %2471 = vmatpush.bf16.msrb.mxu3 %v4278_v60  ;;  %v2123_v62 = vand.u32 2147483647, %v4905_v18  ;;  %v5396_v44 = vld [vmem:[#allocation42_spill] sm:$0xff]  ;;  %v5397_v16 = vld [vmem:[#allocation43_spill] sm:$0xff] }
 0x3cf   :  { %v2107_v53 = vsel %vm2104_vm11, %v2106_v22, %v2102_v19  ;;  %v2133_v32 = vmul.f32 %v3867_v40, %v2088_v6  ;;  %v5398_v14 = vld [vmem:[#allocation30_spill] sm:$0xff]  ;;  %v5401_v56 = vld [vmem:[#allocation47_spill] sm:$0xff]  ;;  %v5402_v40 = vld [vmem:[#allocation32_spill] sm:$0xff] }
 0x3d0   :  { %v2132_v33 = vmul.f32 %v2130_v38, %v2107_v53  ;;  %v2117_v34 = vmul.f32 %v3865_v37, %v2116_v30  ;;  %vm2124_vm15 = vcmp.eq.f32.partialorder %v2123_v62, 8.507059e+37  ;;  %v5399_v38 = vld [vmem:[#allocation31_spill] sm:$0xff]  ;;  %v5400_v22 = vld [vmem:[#allocation46_spill] sm:$0xff]  ;;  %v5403_v6 = vld [vmem:[#allocation33_spill] sm:$0xff] }
 0x3d1   :  { %2433 = vmatpush.bf16.msrb.mxu0 %v4237_v4  ;;  %2446 = vmatpush.bf16.msrb.mxu1 %v4240_v8  ;;  %v5404_v19 = vld [vmem:[#allocation50_spill] sm:$0xff]  ;;  %v5405_v30 = vld [vmem:[#allocation51_spill] sm:$0xff] }
 0x3d2   :  { %v4923_v45 = vadd.f32 %v2133_v32, %v2132_v33  ;;  %v2118_v42 = vadd.f32 %v3865_v37, %v2117_v34  ;;  %2459 = vmatpush.bf16.msrb.mxu2 %v4291_v7  ;;  %2472 = vmatpush.bf16.msrb.mxu3 %v4294_v11  ;;  %v5406_v53 = vld [vmem:[#allocation34_spill] sm:$0xff]  ;;  %v5407_v32 = vld [vmem:[#allocation35_spill] sm:$0xff]  ;;  %v5408_v33 = vld [vmem:[#allocation52_spill] sm:$0xff] }
 0x3d3   :  { %v5409_v34 = vld [vmem:[#allocation53_spill] sm:$0xff]  ;;  %v5412_v62 = vld [vmem:[#allocation54_spill] sm:$0xff] }
 0x3d4   :  { %3868 = vtanh.f32 %v4923_v45  ;;  %v2122_v54 = vsel %vm2121_vm14, %v3865_v37, %v2118_v42  ;;  %v5394_v37 = vld [vmem:[#allocation28_spill] sm:$0xff] }
 0x3d5   :  { %2434 = vmatpush.bf16.msrb.mxu0 %v4243_v17  ;;  %2447 = vmatpush.bf16.msrb.mxu1 %v4246_v20  ;;  %v2127_v48 = vsel %vm2124_vm15, %v2126_v15, %v2122_v54  ;;  %v5410_v42 = vld [vmem:[#allocation40_spill] sm:$0xff]  ;;  %v5413_v54 = vld [vmem:[#allocation55_spill] sm:$0xff] }
 0x3d6   :  { %2460 = vmatpush.bf16.msrb.mxu2 %v4307_v28  ;;  %2473 = vmatpush.bf16.msrb.mxu3 %v4309_v29  ;;  %v5414_v15 = vld [vmem:[#allocation44_spill] sm:$0xff] }
 0x3d9   :  { %2435 = vmatpush.bf16.msrb.mxu0 %v4253_v31  ;;  %2448 = vmatpush.bf16.msrb.mxu1 %v4258_v35 }
 0x3da   :  { %v3869_v5 = vpop.eup %3868  ;;  %2461 = vmatpush.bf16.msrb.mxu2 %v4324_v49  ;;  %2474 = vmatpush.bf16.msrb.mxu3 %v4326_v51 }
 0x3db   :  { %v2136_v12 = vmul.f32 %v3869_v5, %v2127_v48  ;;  %v5415_v5 = vld [vmem:[#allocation45_spill] sm:$0xff]  ;;  %v5416_v48 = vld [vmem:[#allocation56_spill] sm:$0xff] }
 0x3dd   :  { %2138 = vst [vmem:[#allocation5 + $0x8] sm:$0xc0] %v2136_v12  ;;  %v2282_v18 = vpack.c.bf16 %v2136_v12, %v2136_v12  ;;  %2436 = vmatpush.bf16.msrb.mxu0 %v4269_v46  ;;  %2449 = vmatpush.bf16.msrb.mxu1 %v4272_v50  ;;  %v5417_v12 = vld [vmem:[#allocation57_spill] sm:$0xff] }
 0x3de   :  { %2462 = vmatpush.bf16.msrb.mxu2 %v4336_v9  ;;  %2475 = vmatpush.bf16.msrb.mxu3 %v4338_v10 }
 0x3df   :  { %v2284_v61 = vrot.slane %v2282_v18, 3  ;;  %v5418_v18 = vld [vmem:[#allocation48_spill] sm:$0xff] }
 0x3e1   :  { %2294 = vmatmul.bf16.vlgmr.msra.gmra.mxu0 %v2284_v61  ;;  %2307 = vmatmul.bf16.vlgmr.msra.gmra.mxu1 %v2284_v61 }
 0x3e2   :  { %2320 = vmatmul.bf16.vlgmr.msra.gmra.mxu2 %v2284_v61  ;;  %2333 = vmatmul.bf16.vlgmr.msra.gmra.mxu3 %v2284_v61  ;;  %v5419_v61 = vld [vmem:[#allocation49_spill] sm:$0xff] }
 0x3e3   :  { %2437 = vmatpush.bf16.msrb.mxu0 %v4281_v0  ;;  %2450 = vmatpush.bf16.msrb.mxu1 %v4284_v3 }
 0x3e4   :  { %2463 = vmatpush.bf16.msrb.mxu2 %v4348_v41  ;;  %2476 = vmatpush.bf16.msrb.mxu3 %v4350_v47 }
 0x3e7   :  { %2572 = vmatpush.bf16.msra.mxu0 %v5390_v1  ;;  %2585 = vmatpush.bf16.msra.mxu1 %v5391_v25 }
 0x3e8   :  { %2598 = vmatpush.bf16.msra.mxu2 %v5392_v21  ;;  %2611 = vmatpush.bf16.msra.mxu3 %v5393_v59 }
 0x3eb   :  { %2573 = vmatpush.bf16.msra.mxu0 %v5394_v37  ;;  %2586 = vmatpush.bf16.msra.mxu1 %v5395_v57  ;;  %v2279_v57 = vld [vmem:[#allocation3 + $0x18] sm:$0x30] }
 0x3ec   :  { %2599 = vmatpush.bf16.msra.mxu2 %v5396_v44  ;;  %2612 = vmatpush.bf16.msra.mxu3 %v5397_v16 }
 0x3ef   :  { %2574 = vmatpush.bf16.msra.mxu0 %v5398_v14  ;;  %2587 = vmatpush.bf16.msra.mxu1 %v5399_v38 }
 0x3f0   :  { %2600 = vmatpush.bf16.msra.mxu2 %v5400_v22  ;;  %2613 = vmatpush.bf16.msra.mxu3 %v5401_v56 }
 0x3f3   :  { %2575 = vmatpush.bf16.msra.mxu0 %v5402_v40  ;;  %2588 = vmatpush.bf16.msra.mxu1 %v5403_v6 }
 0x3f4   :  { %2601 = vmatpush.bf16.msra.mxu2 %v5404_v19  ;;  %2614 = vmatpush.bf16.msra.mxu3 %v5405_v30 }
 0x3f7   :  { %2576 = vmatpush.bf16.msra.mxu0 %v5406_v53  ;;  %2589 = vmatpush.bf16.msra.mxu1 %v5407_v32  ;;  %v2139_v32 = vld [vmem:[#allocation2 + $0x8] sm:$0xc] }
 0x3f8   :  { %2602 = vmatpush.bf16.msra.mxu2 %v5408_v33  ;;  %2615 = vmatpush.bf16.msra.mxu3 %v5409_v34  ;;  %v5420_v34 = vld [vmem:[#allocation58_spill] sm:$0xff] }
 0x3fb   :  { %2577 = vmatpush.bf16.msra.mxu0 %v5410_v42  ;;  %2590 = vmatpush.bf16.msra.mxu1 %v5411_v13  ;;  %v5421_v42 = vld [vmem:[#allocation59_spill] sm:$0xff] }
 0x3fc   :  { %2603 = vmatpush.bf16.msra.mxu2 %v5412_v62  ;;  %2616 = vmatpush.bf16.msra.mxu3 %v5413_v54 }
 0x3ff   :  { %2578 = vmatpush.bf16.msra.mxu0 %v5414_v15  ;;  %2591 = vmatpush.bf16.msra.mxu1 %v5415_v5  ;;  %v2140_v15 = vld [vmem:[#allocation2 + $0x20] sm:$0xc] }
 0x400   :  { %2604 = vmatpush.bf16.msra.mxu2 %v5416_v48  ;;  %2617 = vmatpush.bf16.msra.mxu3 %v5417_v12 }
 0x403   :  { %2579 = vmatpush.bf16.msra.mxu0 %v5418_v18  ;;  %2592 = vmatpush.bf16.msra.mxu1 %v5419_v61 }
 0x404   :  { %2605 = vmatpush.bf16.msra.mxu2 %v5420_v34  ;;  %2618 = vmatpush.bf16.msra.mxu3 %v5421_v42  ;;  %v2142_v34 = vld [vmem:[#allocation2 + $0x38] sm:$0xc] }
 0x440   :  { %v2153_v13 = vpop.f32.mrf.mxu0  ;;  %v2166_v62 = vpop.f32.mrf.mxu1 }
 0x441   :  { %v2200_v33 = vrot.slane %v2153_v13, 6  ;;  %v2201_v54 = vrot.slane %v2166_v62, 6 }
 0x443   :  { %v2208_v53 = vadd.f32 %v2200_v33, %v2139_v32  ;;  %v2209_v5 = vadd.f32 %v2201_v54, %v2140_v15  ;;  %v2141_v33 = vld [vmem:[#allocation2 + $0x28] sm:$0xc] }
 0x445   :  { %v3520_v30 = vmul.f32 -1.442695, %v2208_v53  ;;  %v3521_v48 = vmul.f32 -1.442695, %v2209_v5 }
 0x447   :  { %3870 = vpow2.f32 %v3520_v30  ;;  %v2179_v12 = vpop.f32.mrf.mxu2  ;;  %v2192_v19 = vpop.f32.mrf.mxu3 }
 0x448   :  { %3872 = vpow2.f32 %v3521_v48  ;;  %v2203_v18 = vrot.slane %v2192_v19, 6  ;;  %v2155_v61 = vpop.f32.mrf.mxu0  ;;  %v2168_v6 = vpop.f32.mrf.mxu1  ;;  %v2202_v53 = vrot.slane %v2179_v12, 6 }
 0x44a   :  { %v2211_v40 = vadd.f32 %v2203_v18, %v2142_v34  ;;  %v2210_v15 = vadd.f32 %v2202_v53, %v2141_v33  ;;  %v2271_v18 = vrot.slane %v4899_v26, 6 }
 0x44c   :  { %v3522_v42 = vmul.f32 -1.442695, %v2211_v40 }
 0x44d   :  { %v3871_v56 = vpop.eup %3870 }
 0x44e   :  { %v3873_v22 = vpop.eup %3872  ;;  %v2215_v13 = vadd.f32 1.0, %v3871_v56  ;;  %3874 = vpow2.f32 %v3522_v42 }
 0x44f   :  { %v2234_v62 = vadd.f32 1.0, %v3873_v22  ;;  %v2181_v38 = vpop.f32.mrf.mxu2  ;;  %v2194_v32 = vpop.f32.mrf.mxu3 }
 0x450   :  { %3876 = vrcp.f32 %v2215_v13  ;;  %v2225_v56 = vand.u32 2147483647, %v2215_v13  ;;  %v2227_v22 = vand.u32 2147483648, %v2215_v13  ;;  %vm2221_vm4 = vweird.f32 %v2215_v13 }
 0x451   :  { %3878 = vrcp.f32 %v2234_v62  ;;  %v2246_v38 = vand.u32 2147483648, %v2234_v62  ;;  %v2244_v12 = vand.u32 2147483647, %v2234_v62  ;;  %vm2240_vm3 = vweird.f32 %v2234_v62 }
 0x452   :  { %vm2226_vm5 = vcmp.eq.f32.partialorder %v2225_v56, 8.507059e+37 }
 0x453   :  { %v2247_v14 = vor.u32 1.1754944e-38, %v2246_v38  ;;  %vm2245_vm8 = vcmp.eq.f32.partialorder %v2244_v12, 8.507059e+37 }
 0x454   :  { %v3875_v30 = vpop.eup %3874 }
 0x455   :  { %v4981_v54 = vadd.f32 1.0, %v3875_v30 }
 0x456   :  { %v3877_v19 = vpop.eup %3876 }
 0x457   :  { %v3879_v6 = vpop.eup %3878  ;;  %v2217_v5 = vmul.f32 %v3877_v19, %v2215_v13  ;;  %3880 = vrcp.f32 %v4981_v54  ;;  %vm2222_vm1 = vweird.f32 %v3877_v19  ;;  %vm2260_vm10 = vweird.f32 %v4981_v54 }
 0x458   :  { %v2236_v40 = vmul.f32 %v3879_v6, %v2234_v62  ;;  %3882 = vtanh.f32 %v2210_v15  ;;  %vm2241_vm2 = vweird.f32 %v3879_v6  ;;  %vm2223_vm6 = vmor %vm2221_vm4, %vm2222_vm1 }
 0x459   :  { %v2218_v34 = vsub.f32 1.0, %v2217_v5  ;;  %v2228_v5 = vor.u32 1.1754944e-38, %v2227_v22  ;;  %vm2242_vm7 = vmor %vm2240_vm3, %vm2241_vm2 }
 0x45a   :  { %v2237_v42 = vsub.f32 1.0, %v2236_v40 }
 0x45b   :  { %v2219_v48 = vmul.f32 %v3877_v19, %v2218_v34 }
 0x45c   :  { %v2238_v61 = vmul.f32 %v3879_v6, %v2237_v42  ;;  %v2278_v42 = vld [vmem:[#allocation3] sm:$0x30] }
 0x45d   :  { %v4985_v32 = vpop.eup %3880  ;;  %v2220_v53 = vadd.f32 %v3877_v19, %v2219_v48 }
 0x45e   :  { %v2295_v30 = vpop.f32.mrf.mxu0  ;;  %v2308_v33 = vpop.f32.mrf.mxu1  ;;  %v2239_v40 = vadd.f32 %v3879_v6, %v2238_v61  ;;  %v2256_v15 = vmul.f32 %v4985_v32, %v4981_v54  ;;  %vm2261_vm9 = vweird.f32 %v4985_v32 }
 0x45f   :  { %v2342_v34 = vrot.slane %v2295_v30, 4  ;;  %v2224_v26 = vsel %vm2223_vm6, %v3877_v19, %v2220_v53  ;;  %v2343_v16 = vrot.slane %v2308_v33, 4  ;;  %v3883_v44 = vpop.eup %3882  ;;  %v2281_v33 = vld [vmem:[#allocation3 + $0x20] sm:$0x30]  ;;  %vm2262_vm11 = vmor %vm2260_vm10, %vm2261_vm9 }
 0x460   :  { %v2229_v62 = vsel %vm2226_vm5, %v2228_v5, %v2224_v26  ;;  %v2243_v48 = vsel %vm2242_vm7, %v3879_v6, %v2239_v40  ;;  %v2257_v13 = vsub.f32 1.0, %v2256_v15 }
 0x461   :  { %v2350_v56 = vadd.f32 %v2342_v34, %v2278_v42  ;;  %v2248_v37 = vsel %vm2245_vm8, %v2247_v14, %v2243_v48  ;;  %v2274_v59 = vmul.f32 %v3883_v44, %v2229_v62  ;;  %v2351_v22 = vadd.f32 %v2343_v16, %v2279_v57 }
 0x462   :  { %v2273_v61 = vmul.f32 %v2271_v18, %v2248_v37  ;;  %v2258_v47 = vmul.f32 %v4985_v32, %v2257_v13  ;;  %v2266_v44 = vand.u32 2147483648, %v4981_v54 }
 0x463   :  { %v3523_v21 = vmul.f32 -1.442695, %v2350_v56  ;;  %v3524_v30 = vmul.f32 -1.442695, %v2351_v22  ;;  %v2280_v56 = vld [vmem:[#allocation3 + $0x10] sm:$0x30] }
 0x464   :  { %v4990_v41 = vadd.f32 %v2274_v59, %v2273_v61  ;;  %v2259_v37 = vadd.f32 %v4985_v32, %v2258_v47  ;;  %v2267_v15 = vor.u32 1.1754944e-38, %v2266_v44 }
 0x465   :  { %3884 = vpow2.f32 %v3523_v21  ;;  %v2321_v19 = vpop.f32.mrf.mxu2  ;;  %v2334_v38 = vpop.f32.mrf.mxu3  ;;  %v2264_v21 = vand.u32 2147483647, %v4981_v54 }
 0x466   :  { %3886 = vpow2.f32 %v3524_v30  ;;  %v2345_v12 = vrot.slane %v2334_v38, 4  ;;  %v2297_v53 = vpop.f32.mrf.mxu0  ;;  %v2310_v6 = vpop.f32.mrf.mxu1  ;;  %v2263_v5 = vsel %vm2262_vm11, %v4985_v32, %v2259_v37  ;;  %v2344_v62 = vrot.slane %v2321_v19, 4 }
 0x467   :  { %3888 = vtanh.f32 %v4990_v41  ;;  %vm2265_vm12 = vcmp.eq.f32.partialorder %v2264_v21, 8.507059e+37 }
 0x468   :  { %v2353_v57 = vadd.f32 %v2345_v12, %v2281_v33  ;;  %v2268_v47 = vsel %vm2265_vm12, %v2267_v15, %v2263_v5  ;;  %v2352_v30 = vadd.f32 %v2344_v62, %v2280_v56  ;;  %v5442_v56 = vld [vmem:[#allocation40_spill] sm:$0xff] }
 0x46a   :  { %v3525_v59 = vmul.f32 -1.442695, %v2353_v57 }
 0x46b   :  { %v3885_v16 = vpop.eup %3884 }
 0x46c   :  { %v3887_v14 = vpop.eup %3886  ;;  %v2357_v18 = vadd.f32 1.0, %v3885_v16  ;;  %3890 = vpow2.f32 %v3525_v59 }
 0x46d   :  { %v3889_v40 = vpop.eup %3888  ;;  %v2376_v34 = vadd.f32 1.0, %v3887_v14  ;;  %v2323_v26 = vpop.f32.mrf.mxu2 }
 0x46e   :  { %v2336_v42 = vpop.f32.mrf.mxu3  ;;  %3892 = vrcp.f32 %v2357_v18  ;;  %v2277_v48 = vmul.f32 %v3889_v40, %v2268_v47  ;;  %v2369_v33 = vand.u32 2147483648, %v2357_v18  ;;  %v2367_v44 = vand.u32 2147483647, %v2357_v18 }
 0x46f   :  { %3894 = vrcp.f32 %v2376_v34  ;;  %v2388_v57 = vand.u32 2147483648, %v2376_v34  ;;  %v2386_v59 = vand.u32 2147483647, %v2376_v34  ;;  %vm2363_vm15 = vweird.f32 %v2357_v18 }
 0x470   :  { %2420 = vst [vmem:[#allocation4] sm:$0xc] %v2277_v48  ;;  %v2426_v13 = vpack.c.bf16 %v2277_v48, %v2277_v48  ;;  %vm2382_vm1 = vweird.f32 %v2376_v34  ;;  %v2370_v5 = vor.u32 1.1754944e-38, %v2369_v33  ;;  %vm2368_vm4 = vcmp.eq.f32.partialorder %v2367_v44, 8.507059e+37  ;;  %v5439_v48 = vld [vmem:[#allocation35_spill] sm:$0xff]  ;;  %v5452_v33 = vld [vmem:[#allocation58_spill] sm:$0xff] }
 0x471   :  { %vm2387_vm5 = vcmp.eq.f32.partialorder %v2386_v59, 8.507059e+37 }
 0x472   :  { %v3891_v54 = vpop.eup %3890  ;;  %v2428_v32 = vrot.slane %v2426_v13, 1  ;;  %v5441_v13 = vld [vmem:[#allocation53_spill] sm:$0xff] }
 0x473   :  { %v4999_v22 = vadd.f32 1.0, %v3891_v54  ;;  %v5440_v54 = vld [vmem:[#allocation52_spill] sm:$0xff] }
 0x474   :  { %v3893_v61 = vpop.eup %3892  ;;  %2438 = vmatmul.bf16.vlgmr.msrb.gmra.mxu0 %v2428_v32  ;;  %2451 = vmatmul.bf16.vlgmr.msrb.gmra.mxu1 %v2428_v32 }
 0x475   :  { %v3895_v38 = vpop.eup %3894  ;;  %v2359_v12 = vmul.f32 %v3893_v61, %v2357_v18  ;;  %3896 = vrcp.f32 %v4999_v22  ;;  %2464 = vmatmul.bf16.vlgmr.msrb.gmra.mxu2 %v2428_v32  ;;  %2477 = vmatmul.bf16.vlgmr.msrb.gmra.mxu3 %v2428_v32  ;;  %vm2364_vm13 = vweird.f32 %v3893_v61  ;;  %vm2402_vm7 = vweird.f32 %v4999_v22  ;;  %v5446_v32 = vld [vmem:[#allocation44_spill] sm:$0xff] }
 0x476   :  { %v2378_v53 = vmul.f32 %v3895_v38, %v2376_v34  ;;  %3898 = vtanh.f32 %v2352_v30  ;;  %2716 = vmatpush.bf16.msrb.mxu0 %v5265_v36  ;;  %2729 = vmatpush.bf16.msrb.mxu1 %v5266_v24  ;;  %vm2383_vm14 = vweird.f32 %v3895_v38  ;;  %vm2365_vm2 = vmor %vm2363_vm15, %vm2364_vm13  ;;  %v5445_v30 = vld [vmem:[#allocation55_spill] sm:$0xff] }
 0x477   :  { %v2360_v6 = vsub.f32 1.0, %v2359_v12  ;;  %2742 = vmatpush.bf16.msrb.mxu2 %v4248_v23  ;;  %2755 = vmatpush.bf16.msrb.mxu3 %v4250_v27  ;;  %v2413_v23 = vrot.slane %v4923_v45, 2  ;;  %vm2384_vm3 = vmor %vm2382_vm1, %vm2383_vm14  ;;  %v2389_v27 = vor.u32 1.1754944e-38, %v2388_v57  ;;  %v5436_v45 = vld [vmem:[#allocation50_spill] sm:$0xff]  ;;  %v5448_v12 = vld [vmem:[#allocation56_spill] sm:$0xff] }
 0x478   :  { %v2379_v19 = vsub.f32 1.0, %v2378_v53  ;;  %v5449_v53 = vld [vmem:[#allocation57_spill] sm:$0xff]  ;;  %v5453_v57 = vld [vmem:[#allocation59_spill] sm:$0xff] }
 0x479   :  { %v2361_v37 = vmul.f32 %v3893_v61, %v2360_v6  ;;  %v5450_v6 = vld [vmem:[#allocation48_spill] sm:$0xff] }
 0x47a   :  { %v2380_v21 = vmul.f32 %v3895_v38, %v2379_v19  ;;  %2717 = vmatpush.bf16.msrb.mxu0 %v5269_v63  ;;  %2730 = vmatpush.bf16.msrb.mxu1 %v5270_v52  ;;  %v2408_v52 = vand.u32 2147483648, %v4999_v22  ;;  %v5451_v19 = vld [vmem:[#allocation49_spill] sm:$0xff] }
 0x47b   :  { %v3897_v16 = vpop.eup %3896  ;;  %v2362_v14 = vadd.f32 %v3893_v61, %v2361_v37  ;;  %2743 = vmatpush.bf16.msrb.mxu2 %v4263_v39  ;;  %2756 = vmatpush.bf16.msrb.mxu3 %v4266_v43 }
 0x47c   :  { %v2381_v36 = vadd.f32 %v3895_v38, %v2380_v21  ;;  %v2398_v24 = vmul.f32 %v3897_v16, %v4999_v22  ;;  %v3899_v18 = vpop.eup %3898  ;;  %vm2403_vm6 = vweird.f32 %v3897_v16 }
 0x47d   :  { %v2366_v40 = vsel %vm2365_vm2, %v3893_v61, %v2362_v14  ;;  %vm2404_vm8 = vmor %vm2402_vm7, %vm2403_vm6  ;;  %v5444_v61 = vld [vmem:[#allocation54_spill] sm:$0xff]  ;;  %v2423_v14 = vld [vmem:[#allocation2 + $0x20] sm:$0x30] }
 0x47e   :  { %v2371_v15 = vsel %vm2368_vm4, %v2370_v5, %v2366_v40  ;;  %v2385_v34 = vsel %vm2384_vm3, %v3895_v38, %v2381_v36  ;;  %v2399_v26 = vsub.f32 1.0, %v2398_v24  ;;  %2718 = vmatpush.bf16.msrb.mxu0 %v5273_v2  ;;  %2731 = vmatpush.bf16.msrb.mxu1 %v5274_v58  ;;  %v2406_v2 = vand.u32 2147483647, %v4999_v22  ;;  %v5443_v22 = vld [vmem:[#allocation41_spill] sm:$0xff] }
 0x47f   :  { %v2390_v42 = vsel %vm2387_vm5, %v2389_v27, %v2385_v34  ;;  %v2416_v47 = vmul.f32 %v3899_v18, %v2371_v15  ;;  %2744 = vmatpush.bf16.msrb.mxu2 %v4275_v55  ;;  %2757 = vmatpush.bf16.msrb.mxu3 %v4278_v60  ;;  %v2409_v60 = vor.u32 1.1754944e-38, %v2408_v52  ;;  %v5447_v38 = vld [vmem:[#allocation45_spill] sm:$0xff] }
 0x480   :  { %v2415_v63 = vmul.f32 %v2413_v23, %v2390_v42  ;;  %v2400_v62 = vmul.f32 %v3897_v16, %v2399_v26  ;;  %vm2407_vm9 = vcmp.eq.f32.partialorder %v2406_v2, 8.507059e+37  ;;  %v2425_v26 = vld [vmem:[#allocation2 + $0x38] sm:$0x30] }
 0x482   :  { %v5016_v39 = vadd.f32 %v2416_v47, %v2415_v63  ;;  %v2401_v43 = vadd.f32 %v3897_v16, %v2400_v62  ;;  %2719 = vmatpush.bf16.msrb.mxu0 %v4237_v4  ;;  %2732 = vmatpush.bf16.msrb.mxu1 %v4240_v8 }
 0x483   :  { %2745 = vmatpush.bf16.msrb.mxu2 %v4291_v7  ;;  %2758 = vmatpush.bf16.msrb.mxu3 %v4294_v11  ;;  %v5427_v11 = vld [vmem:[#allocation29_spill] sm:$0xff] }
 0x484   :  { %3900 = vtanh.f32 %v5016_v39  ;;  %v2405_v55 = vsel %vm2404_vm8, %v3897_v16, %v2401_v43  ;;  %v2422_v16 = vld [vmem:[#allocation2 + $0x8] sm:$0x30] }
 0x485   :  { %v2410_v8 = vsel %vm2407_vm9, %v2409_v60, %v2405_v55 }
 0x486   :  { %2720 = vmatpush.bf16.msrb.mxu0 %v4243_v17  ;;  %2733 = vmatpush.bf16.msrb.mxu1 %v4246_v20  ;;  %v5422_v20 = vld [vmem:[#allocation36_spill] sm:$0xff] }
 0x487   :  { %2746 = vmatpush.bf16.msrb.mxu2 %v4307_v28  ;;  %2759 = vmatpush.bf16.msrb.mxu3 %v4309_v29  ;;  %v5428_v28 = vld [vmem:[#allocation42_spill] sm:$0xff]  ;;  %v5431_v29 = vld [vmem:[#allocation31_spill] sm:$0xff] }
 0x48a   :  { %v3901_v4 = vpop.eup %3900  ;;  %2721 = vmatpush.bf16.msrb.mxu0 %v4253_v31  ;;  %2734 = vmatpush.bf16.msrb.mxu1 %v4258_v35  ;;  %v5423_v31 = vld [vmem:[#allocation37_spill] sm:$0xff]  ;;  %v5424_v35 = vld [vmem:[#allocation38_spill] sm:$0xff] }
 0x48b   :  { %v2419_v58 = vmul.f32 %v3901_v4, %v2410_v8  ;;  %2747 = vmatpush.bf16.msrb.mxu2 %v4324_v49  ;;  %2760 = vmatpush.bf16.msrb.mxu3 %v4326_v51  ;;  %v5432_v49 = vld [vmem:[#allocation46_spill] sm:$0xff]  ;;  %v5433_v51 = vld [vmem:[#allocation47_spill] sm:$0xff]  ;;  %v2424_v8 = vld [vmem:[#allocation2 + $0x28] sm:$0x30] }
 0x48d   :  { %2421 = vst [vmem:[#allocation5 + $0x8] sm:$0x30] %v2419_v58  ;;  %v2568_v7 = vpack.c.bf16 %v2419_v58, %v2419_v58 }
 0x48e   :  { %2722 = vmatpush.bf16.msrb.mxu0 %v4269_v46  ;;  %2735 = vmatpush.bf16.msrb.mxu1 %v4272_v50  ;;  %v5425_v46 = vld [vmem:[#allocation39_spill] sm:$0xff]  ;;  %v5426_v50 = vld [vmem:[#allocation28_spill] sm:$0xff] }
 0x48f   :  { %v2570_v17 = vrot.slane %v2568_v7, 2  ;;  %2748 = vmatpush.bf16.msrb.mxu2 %v4336_v9  ;;  %2761 = vmatpush.bf16.msrb.mxu3 %v4338_v10  ;;  %v5434_v9 = vld [vmem:[#allocation32_spill] sm:$0xff]  ;;  %v5435_v10 = vld [vmem:[#allocation33_spill] sm:$0xff] }
 0x491   :  { %2580 = vmatmul.bf16.vlgmr.msra.gmra.mxu0 %v2570_v17  ;;  %2593 = vmatmul.bf16.vlgmr.msra.gmra.mxu1 %v2570_v17 }
 0x492   :  { %2606 = vmatmul.bf16.vlgmr.msra.gmra.mxu2 %v2570_v17  ;;  %2619 = vmatmul.bf16.vlgmr.msra.gmra.mxu3 %v2570_v17 }
 0x493   :  { %2723 = vmatpush.bf16.msrb.mxu0 %v4281_v0  ;;  %2736 = vmatpush.bf16.msrb.mxu1 %v4284_v3  ;;  %v5429_v0 = vld [vmem:[#allocation43_spill] sm:$0xff]  ;;  %v5430_v3 = vld [vmem:[#allocation30_spill] sm:$0xff] }
 0x494   :  { %2749 = vmatpush.bf16.msrb.mxu2 %v5422_v20  ;;  %2762 = vmatpush.bf16.msrb.mxu3 %v5423_v31 }
 0x497   :  { %2858 = vmatpush.bf16.msra.mxu0 %v5390_v1  ;;  %2871 = vmatpush.bf16.msra.mxu1 %v5391_v25  ;;  %v5437_v1 = vld [vmem:[#allocation51_spill] sm:$0xff]  ;;  %v5438_v25 = vld [vmem:[#allocation34_spill] sm:$0xff] }
 0x498   :  { %2884 = vmatpush.bf16.msra.mxu2 %v5424_v35  ;;  %2897 = vmatpush.bf16.msra.mxu3 %v5425_v46 }
 0x49b   :  { %2859 = vmatpush.bf16.msra.mxu0 %v5426_v50  ;;  %2872 = vmatpush.bf16.msra.mxu1 %v5427_v11  ;;  %v2557_v11 = vrot.slane %v4990_v41, 6 }
 0x49c   :  { %2885 = vmatpush.bf16.msra.mxu2 %v5428_v28  ;;  %2898 = vmatpush.bf16.msra.mxu3 %v5429_v0 }
 0x49f   :  { %2860 = vmatpush.bf16.msra.mxu0 %v5430_v3  ;;  %2873 = vmatpush.bf16.msra.mxu1 %v5431_v29 }
 0x4a0   :  { %2886 = vmatpush.bf16.msra.mxu2 %v5432_v49  ;;  %2899 = vmatpush.bf16.msra.mxu3 %v5433_v51 }
 0x4a3   :  { %2861 = vmatpush.bf16.msra.mxu0 %v5434_v9  ;;  %2874 = vmatpush.bf16.msra.mxu1 %v5435_v10 }
 0x4a4   :  { %2887 = vmatpush.bf16.msra.mxu2 %v5436_v45  ;;  %2900 = vmatpush.bf16.msra.mxu3 %v5437_v1 }
 0x4a7   :  { %2862 = vmatpush.bf16.msra.mxu0 %v5438_v25  ;;  %2875 = vmatpush.bf16.msra.mxu1 %v5439_v48 }
 0x4a8   :  { %2888 = vmatpush.bf16.msra.mxu2 %v5440_v54  ;;  %2901 = vmatpush.bf16.msra.mxu3 %v5441_v13  ;;  %v2564_v54 = vld [vmem:[#allocation3] sm:$0xc] }
 0x4ab   :  { %2863 = vmatpush.bf16.msra.mxu0 %v5442_v56  ;;  %2876 = vmatpush.bf16.msra.mxu1 %v5443_v22 }
 0x4ac   :  { %2889 = vmatpush.bf16.msra.mxu2 %v5444_v61  ;;  %2902 = vmatpush.bf16.msra.mxu3 %v5445_v30  ;;  %v2565_v61 = vld [vmem:[#allocation3 + $0x18] sm:$0xc] }
 0x4af   :  { %2864 = vmatpush.bf16.msra.mxu0 %v5446_v32  ;;  %2877 = vmatpush.bf16.msra.mxu1 %v5447_v38 }
 0x4b0   :  { %2890 = vmatpush.bf16.msra.mxu2 %v5448_v12  ;;  %2903 = vmatpush.bf16.msra.mxu3 %v5449_v53 }
 0x4b3   :  { %2865 = vmatpush.bf16.msra.mxu0 %v5450_v6  ;;  %2878 = vmatpush.bf16.msra.mxu1 %v5451_v19 }
 0x4b4   :  { %2891 = vmatpush.bf16.msra.mxu2 %v5452_v33  ;;  %2904 = vmatpush.bf16.msra.mxu3 %v5453_v57 }
 0x4f1   :  { %v2439_v37 = vpop.f32.mrf.mxu0  ;;  %v2452_v44 = vpop.f32.mrf.mxu1 }
 0x4f2   :  { %v2486_v21 = vrot.slane %v2439_v37, 4  ;;  %v2487_v59 = vrot.slane %v2452_v44, 4 }
 0x4f4   :  { %v2494_v5 = vadd.f32 %v2486_v21, %v2422_v16  ;;  %v2495_v36 = vadd.f32 %v2487_v59, %v2423_v14 }
 0x4f6   :  { %v3526_v24 = vmul.f32 -1.442695, %v2494_v5  ;;  %v3527_v23 = vmul.f32 -1.442695, %v2495_v36 }
 0x4f8   :  { %3902 = vpow2.f32 %v3526_v24  ;;  %v2465_v27 = vpop.f32.mrf.mxu2  ;;  %v2478_v40 = vpop.f32.mrf.mxu3 }
 0x4f9   :  { %3904 = vpow2.f32 %v3527_v23  ;;  %v2489_v18 = vrot.slane %v2478_v40, 4  ;;  %v2441_v15 = vpop.f32.mrf.mxu0  ;;  %v2454_v34 = vpop.f32.mrf.mxu1  ;;  %v2488_v60 = vrot.slane %v2465_v27, 4  ;;  %v2567_v27 = vld [vmem:[#allocation3 + $0x20] sm:$0xc] }
 0x4fb   :  { %v2497_v42 = vadd.f32 %v2489_v18, %v2425_v26  ;;  %v2496_v17 = vadd.f32 %v2488_v60, %v2424_v8 }
 0x4fd   :  { %v3528_v47 = vmul.f32 -1.442695, %v2497_v42 }
 0x4fe   :  { %v3903_v63 = vpop.eup %3902 }
 0x4ff   :  { %v3905_v62 = vpop.eup %3904  ;;  %v2501_v43 = vadd.f32 1.0, %v3903_v63  ;;  %3906 = vpow2.f32 %v3528_v47 }
 0x500   :  { %v2520_v52 = vadd.f32 1.0, %v3905_v62  ;;  %v2467_v2 = vpop.f32.mrf.mxu2  ;;  %v2480_v55 = vpop.f32.mrf.mxu3 }
 0x501   :  { %3908 = vrcp.f32 %v2501_v43  ;;  %v2511_v50 = vand.u32 2147483647, %v2501_v43  ;;  %v2513_v0 = vand.u32 2147483648, %v2501_v43  ;;  %vm2507_vm13 = vweird.f32 %v2501_v43 }
 0x502   :  { %3910 = vrcp.f32 %v2520_v52  ;;  %v2532_v3 = vand.u32 2147483648, %v2520_v52  ;;  %v2530_v49 = vand.u32 2147483647, %v2520_v52  ;;  %vm2526_vm12 = vweird.f32 %v2520_v52 }
 0x503   :  { %vm2512_vm14 = vcmp.eq.f32.partialorder %v2511_v50, 8.507059e+37  ;;  %v2514_v41 = vor.u32 1.1754944e-38, %v2513_v0 }
 0x504   :  { %v2533_v30 = vor.u32 1.1754944e-38, %v2532_v3  ;;  %vm2531_vm2 = vcmp.eq.f32.partialorder %v2530_v49, 8.507059e+37 }
 0x505   :  { %v3907_v4 = vpop.eup %3906 }
 0x506   :  { %v5074_v58 = vadd.f32 1.0, %v3907_v4 }
 0x507   :  { %v3909_v7 = vpop.eup %3908 }
 0x508   :  { %v3911_v20 = vpop.eup %3910  ;;  %v2503_v31 = vmul.f32 %v3909_v7, %v2501_v43  ;;  %3912 = vrcp.f32 %v5074_v58  ;;  %vm2508_vm10 = vweird.f32 %v3909_v7  ;;  %v2552_v15 = vand.u32 2147483648, %v5074_v58 }
 0x509   :  { %v2522_v35 = vmul.f32 %v3911_v20, %v2520_v52  ;;  %3914 = vtanh.f32 %v2496_v17  ;;  %vm2527_vm11 = vweird.f32 %v3911_v20  ;;  %vm2509_vm15 = vmor %vm2507_vm13, %vm2508_vm10  ;;  %vm2546_vm4 = vweird.f32 %v5074_v58 }
 0x50a   :  { %v2504_v46 = vsub.f32 1.0, %v2503_v31  ;;  %vm2528_vm1 = vmor %vm2526_vm12, %vm2527_vm11  ;;  %v2550_v34 = vand.u32 2147483647, %v5074_v58  ;;  %v2553_v43 = vor.u32 1.1754944e-38, %v2552_v15 }
 0x50b   :  { %v2523_v28 = vsub.f32 1.0, %v2522_v35 }
 0x50c   :  { %v2505_v29 = vmul.f32 %v3909_v7, %v2504_v46  ;;  %vm2551_vm6 = vcmp.eq.f32.partialorder %v2550_v34, 8.507059e+37 }
 0x50d   :  { %v2524_v10 = vmul.f32 %v3911_v20, %v2523_v28 }
 0x50e   :  { %v2581_v51 = vpop.f32.mrf.mxu0  ;;  %v2594_v9 = vpop.f32.mrf.mxu1  ;;  %v2506_v48 = vadd.f32 %v3909_v7, %v2505_v29 }
 0x50f   :  { %v2628_v45 = vrot.slane %v2581_v51, 6  ;;  %v2629_v1 = vrot.slane %v2594_v9, 6  ;;  %v3913_v25 = vpop.eup %3912  ;;  %v2525_v13 = vadd.f32 %v3911_v20, %v2524_v10 }
 0x510   :  { %v2542_v56 = vmul.f32 %v3913_v25, %v5074_v58  ;;  %v2510_v32 = vsel %vm2509_vm15, %v3909_v7, %v2506_v48  ;;  %v3915_v12 = vpop.eup %3914  ;;  %vm2547_vm3 = vweird.f32 %v3913_v25 }
 0x511   :  { %v2636_v22 = vadd.f32 %v2628_v45, %v2564_v54  ;;  %v2637_v38 = vadd.f32 %v2629_v1, %v2565_v61  ;;  %v2515_v53 = vsel %vm2512_vm14, %v2514_v41, %v2510_v32  ;;  %v2529_v6 = vsel %vm2528_vm1, %v3911_v20, %v2525_v13  ;;  %vm2548_vm5 = vmor %vm2546_vm4, %vm2547_vm3  ;;  %v2566_v20 = vld [vmem:[#allocation3 + $0x10] sm:$0xc] }
 0x512   :  { %v2543_v19 = vsub.f32 1.0, %v2542_v56  ;;  %v2534_v57 = vsel %vm2531_vm2, %v2533_v30, %v2529_v6  ;;  %v2560_v37 = vmul.f32 %v3915_v12, %v2515_v53  ;;  %v2699_v56 = vrot.slane %v5016_v39, 2 }
 0x513   :  { %v3529_v33 = vmul.f32 -1.442695, %v2636_v22  ;;  %v3530_v44 = vmul.f32 -1.442695, %v2637_v38  ;;  %v2559_v21 = vmul.f32 %v2557_v11, %v2534_v57 }
 0x514   :  { %v2544_v59 = vmul.f32 %v3913_v25, %v2543_v19 }
 0x515   :  { %3916 = vpow2.f32 %v3529_v33  ;;  %v2607_v16 = vpop.f32.mrf.mxu2  ;;  %v2620_v14 = vpop.f32.mrf.mxu3  ;;  %v5080_v23 = vadd.f32 %v2560_v37, %v2559_v21 }
 0x516   :  { %3918 = vpow2.f32 %v3530_v44  ;;  %v2631_v5 = vrot.slane %v2620_v14, 6  ;;  %v2583_v36 = vpop.f32.mrf.mxu0  ;;  %v2596_v24 = vpop.f32.mrf.mxu1  ;;  %v2545_v18 = vadd.f32 %v3913_v25, %v2544_v59  ;;  %v2630_v8 = vrot.slane %v2607_v16, 6 }
 0x517   :  { %3920 = vtanh.f32 %v5080_v23 }
 0x518   :  { %v2639_v40 = vadd.f32 %v2631_v5, %v2567_v27  ;;  %v2549_v62 = vsel %vm2548_vm5, %v3913_v25, %v2545_v18  ;;  %v2638_v46 = vadd.f32 %v2630_v8, %v2566_v20  ;;  %v3689_v27 = vld [vmem:[#allocation13 + $0x38] sm:$0xff] }
 0x519   :  { %v2554_v4 = vsel %vm2551_vm6, %v2553_v43, %v2549_v62  ;;  %v3685_v20 = vld [vmem:[#allocation13 + $0x18] sm:$0xff] }
 0x51a   :  { %v3531_v26 = vmul.f32 -1.442695, %v2639_v40  ;;  %v3688_v40 = vld [vmem:[#allocation13 + $0x30] sm:$0xff] }
 0x51b   :  { %v3917_v42 = vpop.eup %3916 }
 0x51c   :  { %v3919_v47 = vpop.eup %3918  ;;  %v2643_v63 = vadd.f32 1.0, %v3917_v42  ;;  %3922 = vpow2.f32 %v3531_v26  ;;  %v3687_v42 = vld [vmem:[#allocation13 + $0x28] sm:$0xff] }
 0x51d   :  { %v2662_v52 = vadd.f32 1.0, %v3919_v47  ;;  %v2609_v2 = vpop.f32.mrf.mxu2  ;;  %v2622_v55 = vpop.f32.mrf.mxu3  ;;  %v2708_v47 = vld [vmem:[#allocation2 + $0x8] sm:$0xc0] }
 0x51e   :  { %3924 = vrcp.f32 %v2643_v63  ;;  %v3921_v60 = vpop.eup %3920  ;;  %v2655_v49 = vand.u32 2147483648, %v2643_v63  ;;  %v2653_v10 = vand.u32 2147483647, %v2643_v63  ;;  %vm2649_vm9 = vweird.f32 %v2643_v63  ;;  %v3686_v55 = vld [vmem:[#allocation13 + $0x20] sm:$0xff] }
 0x51f   :  { %3926 = vrcp.f32 %v2662_v52  ;;  %v2563_v7 = vmul.f32 %v3921_v60, %v2554_v4  ;;  %v2674_v51 = vand.u32 2147483648, %v2662_v52  ;;  %v2672_v1 = vand.u32 2147483647, %v2662_v52 }
 0x520   :  { %vm2668_vm10 = vweird.f32 %v2662_v52  ;;  %v2656_v54 = vor.u32 1.1754944e-38, %v2655_v49  ;;  %vm2654_vm13 = vcmp.eq.f32.partialorder %v2653_v10, 8.507059e+37  ;;  %v3683_v49 = vld [vmem:[#allocation13 + $0x8] sm:$0xff] }
 0x521   :  { %2706 = vst [vmem:[#allocation4] sm:$0x30] %v2563_v7  ;;  %v2712_v58 = vpack.c.bf16 %v2563_v7, %v2563_v7  ;;  %v2675_v22 = vor.u32 1.1754944e-38, %v2674_v51  ;;  %vm2673_vm14 = vcmp.eq.f32.partialorder %v2672_v1, 8.507059e+37  ;;  %v2710_v10 = vld [vmem:[#allocation2 + $0x28] sm:$0xc0] }
 0x522   :  { %v3923_v17 = vpop.eup %3922  ;;  %v3682_v1 = vld [vmem:[#allocation13] sm:$0xff] }
 0x523   :  { %v2682_v31 = vadd.f32 1.0, %v3923_v17  ;;  %v2714_v50 = vrot.slane %v2712_v58, 2  ;;  %v2711_v58 = vld [vmem:[#allocation2 + $0x38] sm:$0xc0] }
 0x524   :  { %v3925_v35 = vpop.eup %3924 }
 0x525   :  { %v3927_v11 = vpop.eup %3926  ;;  %v2645_v28 = vmul.f32 %v3925_v35, %v2643_v63  ;;  %3928 = vrcp.f32 %v2682_v31  ;;  %2724 = vmatmul.bf16.vlgmr.msrb.gmra.mxu0 %v2714_v50  ;;  %2737 = vmatmul.bf16.vlgmr.msrb.gmra.mxu1 %v2714_v50  ;;  %vm2650_vm7 = vweird.f32 %v3925_v35  ;;  %v2694_v39 = vand.u32 2147483648, %v2682_v31  ;;  %v2709_v63 = vld [vmem:[#allocation2 + $0x20] sm:$0xc0] }
 0x526   :  { %v2664_v0 = vmul.f32 %v3927_v11, %v2662_v52  ;;  %2750 = vmatmul.bf16.vlgmr.msrb.gmra.mxu2 %v2714_v50  ;;  %2763 = vmatmul.bf16.vlgmr.msrb.gmra.mxu3 %v2714_v50  ;;  %3930 = vtanh.f32 %v2638_v46  ;;  %vm2669_vm8 = vweird.f32 %v3927_v11  ;;  %vm2651_vm11 = vmor %vm2649_vm9, %vm2650_vm7  ;;  %vm2688_vm1 = vweird.f32 %v2682_v31  ;;  %v3684_v50 = vld [vmem:[#allocation13 + $0x10] sm:$0xff] }
 0x527   :  { %v2646_v3 = vsub.f32 1.0, %v2645_v28  ;;  %vm2670_vm12 = vmor %vm2668_vm10, %vm2669_vm8  ;;  %v2692_v44 = vand.u32 2147483647, %v2682_v31  ;;  %v2695_v59 = vor.u32 1.1754944e-38, %v2694_v39  ;;  %3130 = vmatpush.bf16.msrb.mxu1 %v3689_v27 }
 0x528   :  { %v2665_v29 = vsub.f32 1.0, %v2664_v0 }
 0x529   :  { %v2647_v9 = vmul.f32 %v3925_v35, %v2646_v3  ;;  %vm2693_vm3 = vcmp.eq.f32.partialorder %v2692_v44, 8.507059e+37  ;;  %v3696_v44 = vld [vmem:[#allocation14 + $0x30] sm:$0xff] }
 0x52a   :  { %v2666_v45 = vmul.f32 %v3927_v11, %v2665_v29 }
 0x52b   :  { %v3929_v25 = vpop.eup %3928  ;;  %v2648_v48 = vadd.f32 %v3925_v35, %v2647_v9  ;;  %3131 = vmatpush.bf16.msrb.mxu1 %v3688_v40 }
 0x52c   :  { %v2667_v41 = vadd.f32 %v3927_v11, %v2666_v45  ;;  %v2684_v13 = vmul.f32 %v3929_v25, %v2682_v31  ;;  %v3931_v30 = vpop.eup %3930  ;;  %vm2689_vm15 = vweird.f32 %v3929_v25 }
 0x52d   :  { %v2652_v61 = vsel %vm2651_vm11, %v3925_v35, %v2648_v48  ;;  %vm2690_vm2 = vmor %vm2688_vm1, %vm2689_vm15 }
 0x52e   :  { %v2657_v32 = vsel %vm2654_vm13, %v2656_v54, %v2652_v61  ;;  %v2671_v38 = vsel %vm2670_vm12, %v3927_v11, %v2667_v41  ;;  %v2685_v12 = vsub.f32 1.0, %v2684_v13  ;;  %v3697_v13 = vld [vmem:[#allocation14 + $0x38] sm:$0xff] }
 0x52f   :  { %v2676_v53 = vsel %vm2673_vm14, %v2675_v22, %v2671_v38  ;;  %v2702_v6 = vmul.f32 %v3931_v30, %v2657_v32  ;;  %3132 = vmatpush.bf16.msrb.mxu1 %v3687_v42  ;;  %3068 = vmatpush.bf16.msrb.mxu0 %v3697_v13  ;;  %v2843_v30 = vrot.slane %v5080_v23, 6  ;;  %v2852_v13 = vld [vmem:[#allocation3 + $0x10] sm:$0x3] }
 0x530   :  { %v2701_v19 = vmul.f32 %v2699_v56, %v2676_v53  ;;  %v2686_v33 = vmul.f32 %v3929_v25, %v2685_v12  ;;  %v2850_v12 = vld [vmem:[#allocation3] sm:$0x3] }
 0x532   :  { %v5087_v57 = vadd.f32 %v2702_v6, %v2701_v19  ;;  %v2687_v37 = vadd.f32 %v3929_v25, %v2686_v33 }
 0x533   :  { %3133 = vmatpush.bf16.msrb.mxu1 %v3686_v55  ;;  %3069 = vmatpush.bf16.msrb.mxu0 %v3696_v44 }
 0x534   :  { %3932 = vtanh.f32 %v5087_v57  ;;  %v2691_v21 = vsel %vm2690_vm2, %v3929_v25, %v2687_v37  ;;  %v2851_v37 = vld [vmem:[#allocation3 + $0x18] sm:$0x3] }
 0x535   :  { %v2696_v14 = vsel %vm2693_vm3, %v2695_v59, %v2691_v21 }
 0x537   :  { %3134 = vmatpush.bf16.msrb.mxu1 %v3685_v20 }
 0x53a   :  { %v3933_v16 = vpop.eup %3932 }
 0x53b   :  { %v2705_v5 = vmul.f32 %v3933_v16, %v2696_v14  ;;  %3135 = vmatpush.bf16.msrb.mxu1 %v3684_v50 }
 0x53d   :  { %2707 = vst [vmem:[#allocation5 + $0x8] sm:$0xc] %v2705_v5  ;;  %v2854_v36 = vpack.c.bf16 %v2705_v5, %v2705_v5 }
 0x53f   :  { %v2856_v24 = vrot.slane %v2854_v36, 1  ;;  %3136 = vmatpush.bf16.msrb.mxu1 %v3683_v49 }
 0x541   :  { %2866 = vmatmul.bf16.vlgmr.msra.gmra.mxu0 %v2856_v24  ;;  %2879 = vmatmul.bf16.vlgmr.msra.gmra.mxu1 %v2856_v24 }
 0x542   :  { %2892 = vmatmul.bf16.vlgmr.msra.gmra.mxu2 %v2856_v24  ;;  %2905 = vmatmul.bf16.vlgmr.msra.gmra.mxu3 %v2856_v24 }
 0x543   :  { %3137 = vmatpush.bf16.msrb.mxu1 %v3682_v1 }
 0x5a2   :  { %v2725_v18 = vpop.f32.mrf.mxu0  ;;  %v2738_v15 = vpop.f32.mrf.mxu1 }
 0x5a3   :  { %v2772_v34 = vrot.slane %v2725_v18, 2  ;;  %v2773_v26 = vrot.slane %v2738_v15, 2 }
 0x5a5   :  { %v2780_v62 = vadd.f32 %v2772_v34, %v2708_v47  ;;  %v2781_v43 = vadd.f32 %v2773_v26, %v2709_v63  ;;  %v3695_v34 = vld [vmem:[#allocation14 + $0x28] sm:$0xff] }
 0x5a6   :  { %3070 = vmatpush.bf16.msrb.mxu0 %v3695_v34 }
 0x5a7   :  { %v3532_v52 = vmul.f32 -1.442695, %v2780_v62  ;;  %v3533_v2 = vmul.f32 -1.442695, %v2781_v43 }
 0x5a9   :  { %3934 = vpow2.f32 %v3532_v52  ;;  %v2751_v60 = vpop.f32.mrf.mxu2  ;;  %v2764_v4 = vpop.f32.mrf.mxu3 }
 0x5aa   :  { %3936 = vpow2.f32 %v3533_v2  ;;  %v2775_v8 = vrot.slane %v2764_v4, 2  ;;  %v2727_v7 = vpop.f32.mrf.mxu0  ;;  %v2740_v17 = vpop.f32.mrf.mxu1  ;;  %v2774_v51 = vrot.slane %v2751_v60, 2  ;;  %v2853_v60 = vld [vmem:[#allocation3 + $0x20] sm:$0x3] }
 0x5ac   :  { %v2783_v31 = vadd.f32 %v2775_v8, %v2711_v58  ;;  %v2782_v48 = vadd.f32 %v2774_v51, %v2710_v10  ;;  %v3694_v58 = vld [vmem:[#allocation14 + $0x20] sm:$0xff]  ;;  %v3692_v51 = vld [vmem:[#allocation14 + $0x10] sm:$0xff] }
 0x5ad   :  { %3071 = vmatpush.bf16.msrb.mxu0 %v3694_v58 }
 0x5ae   :  { %v3534_v35 = vmul.f32 -1.442695, %v2783_v31 }
 0x5af   :  { %v3935_v46 = vpop.eup %3934 }
 0x5b0   :  { %v3937_v11 = vpop.eup %3936  ;;  %v2787_v28 = vadd.f32 1.0, %v3935_v46  ;;  %3938 = vpow2.f32 %v3534_v35 }
 0x5b1   :  { %v2806_v0 = vadd.f32 1.0, %v3937_v11  ;;  %v2753_v3 = vpop.f32.mrf.mxu2  ;;  %v2766_v29 = vpop.f32.mrf.mxu3 }
 0x5b2   :  { %3940 = vrcp.f32 %v2787_v28  ;;  %v2797_v61 = vand.u32 2147483647, %v2787_v28  ;;  %v2799_v38 = vand.u32 2147483648, %v2787_v28  ;;  %vm2793_vm7 = vweird.f32 %v2787_v28  ;;  %v3693_v3 = vld [vmem:[#allocation14 + $0x18] sm:$0xff] }
 0x5b3   :  { %3942 = vrcp.f32 %v2806_v0  ;;  %v2818_v53 = vand.u32 2147483648, %v2806_v0  ;;  %v2816_v19 = vand.u32 2147483647, %v2806_v0  ;;  %vm2812_vm6 = vweird.f32 %v2806_v0  ;;  %3072 = vmatpush.bf16.msrb.mxu0 %v3693_v3  ;;  %v3966_v3 = vld [vmem:[%s5124_s0] sm:$0xff] }
 0x5b4   :  { %vm2798_vm8 = vcmp.eq.f32.partialorder %v2797_v61, 8.507059e+37  ;;  %v2800_v5 = vor.u32 1.1754944e-38, %v2799_v38 }
 0x5b5   :  { %v2819_v40 = vor.u32 1.1754944e-38, %v2818_v53  ;;  %vm2817_vm11 = vcmp.eq.f32.partialorder %v2816_v19, 8.507059e+37 }
 0x5b6   :  { %v3939_v9 = vpop.eup %3938 }
 0x5b7   :  { %v5090_v45 = vadd.f32 1.0, %v3939_v9  ;;  %3073 = vmatpush.bf16.msrb.mxu0 %v3692_v51 }
 0x5b8   :  { %v3941_v25 = vpop.eup %3940 }
 0x5b9   :  { %v3943_v54 = vpop.eup %3942  ;;  %v2789_v41 = vmul.f32 %v3941_v25, %v2787_v28  ;;  %3944 = vrcp.f32 %v5090_v45  ;;  %vm2794_vm4 = vweird.f32 %v3941_v25  ;;  %v2838_v50 = vand.u32 2147483648, %v5090_v45 }
 0x5ba   :  { %v2808_v56 = vmul.f32 %v3943_v54, %v2806_v0  ;;  %3946 = vtanh.f32 %v2782_v48  ;;  %vm2813_vm5 = vweird.f32 %v3943_v54  ;;  %vm2795_vm9 = vmor %vm2793_vm7, %vm2794_vm4  ;;  %vm2832_vm13 = vweird.f32 %v5090_v45 }
 0x5bb   :  { %v2790_v22 = vsub.f32 1.0, %v2789_v41  ;;  %vm2814_vm10 = vmor %vm2812_vm6, %vm2813_vm5  ;;  %v2836_v28 = vand.u32 2147483647, %v5090_v45  ;;  %v2839_v9 = vor.u32 1.1754944e-38, %v2838_v50  ;;  %v3709_v50 = vld [vmem:[%s5133_s9] ss:$0 sm:$0xff] }
 0x5bc   :  { %v2809_v32 = vsub.f32 1.0, %v2808_v56 }
 0x5bd   :  { %v2791_v6 = vmul.f32 %v3941_v25, %v2790_v22  ;;  %vm2837_vm15 = vcmp.eq.f32.partialorder %v2836_v28, 8.507059e+37 }
 0x5be   :  { %v2867_v33 = vpop.f32.mrf.mxu0  ;;  %v2880_v39 = vpop.f32.mrf.mxu1  ;;  %v2810_v21 = vmul.f32 %v3943_v54, %v2809_v32 }
 0x5bf   :  { %v2910_v59 = vadd.f32 %v2867_v33, %v2850_v12  ;;  %v2911_v16 = vadd.f32 %v2880_v39, %v2851_v37  ;;  %v5094_v14 = vpop.eup %3944  ;;  %v2792_v23 = vadd.f32 %v3941_v25, %v2791_v6  ;;  %v3690_v12 = vld [vmem:[#allocation14] sm:$0xff] }
 0x5c0   :  { %v2811_v36 = vadd.f32 %v3943_v54, %v2810_v21  ;;  %v2828_v24 = vmul.f32 %v5094_v14, %v5090_v45  ;;  %v3947_v26 = vpop.eup %3946  ;;  %vm2833_vm12 = vweird.f32 %v5094_v14  ;;  %v3691_v45 = vld [vmem:[#allocation14 + $0x8] sm:$0xff] }
 0x5c1   :  { %v3535_v27 = vmul.f32 -1.442695, %v2910_v59  ;;  %v2796_v18 = vsel %vm2795_vm9, %v3941_v25, %v2792_v23  ;;  %v3536_v15 = vmul.f32 -1.442695, %v2911_v16  ;;  %vm2834_vm14 = vmor %vm2832_vm13, %vm2833_vm12  ;;  %3074 = vmatpush.bf16.msrb.mxu0 %v3691_v45 }
 0x5c2   :  { %v2801_v42 = vsel %vm2798_vm8, %v2800_v5, %v2796_v18  ;;  %v2815_v47 = vsel %vm2814_vm10, %v3943_v54, %v2811_v36  ;;  %v2829_v63 = vsub.f32 1.0, %v2828_v24 }
 0x5c3   :  { %3948 = vpow2.f32 %v3535_v27  ;;  %v2820_v62 = vsel %vm2817_vm11, %v2819_v40, %v2815_v47  ;;  %v2846_v43 = vmul.f32 %v3947_v26, %v2801_v42 }
 0x5c4   :  { %3950 = vpow2.f32 %v3536_v15  ;;  %v2845_v52 = vmul.f32 %v2843_v30, %v2820_v62  ;;  %v2830_v2 = vmul.f32 %v5094_v14, %v2829_v63  ;;  %v2973_v15 = vrot.slane %v5087_v57, 2 }
 0x5c5   :  { %v2893_v55 = vpop.f32.mrf.mxu2  ;;  %v2906_v4 = vpop.f32.mrf.mxu3  ;;  %3075 = vmatpush.bf16.msrb.mxu0 %v3690_v12 }
 0x5c6   :  { %v2913_v8 = vadd.f32 %v2906_v4, %v2853_v60  ;;  %v2869_v7 = vpop.f32.mrf.mxu0  ;;  %v2882_v17 = vpop.f32.mrf.mxu1  ;;  %v2847_v20 = vadd.f32 %v2846_v43, %v2845_v52  ;;  %v2831_v31 = vadd.f32 %v5094_v14, %v2830_v2  ;;  %v2912_v61 = vadd.f32 %v2893_v55, %v2852_v13 }
 0x5c8   :  { %v3537_v35 = vmul.f32 -1.442695, %v2913_v8  ;;  %3952 = vtanh.f32 %v2847_v20  ;;  %v2835_v49 = vsel %vm2834_vm14, %v5094_v14, %v2831_v31  ;;  %v2982_v14 = vld [vmem:[#allocation4 + $0x8] sm:$0xff]  ;;  %v3002_v31 = vld [vmem:[#allocation5] sm:$0xff] }
 0x5c9   :  { %v3949_v46 = vpop.eup %3948  ;;  %v2840_v48 = vsel %vm2837_vm15, %v2839_v9, %v2835_v49 }
 0x5ca   :  { %v3951_v11 = vpop.eup %3950  ;;  %v2917_v0 = vadd.f32 1.0, %v3949_v46  ;;  %3954 = vpow2.f32 %v3537_v35 }
 0x5cb   :  { %v2936_v29 = vadd.f32 1.0, %v3951_v11 }
 0x5cc   :  { %3956 = vrcp.f32 %v2917_v0  ;;  %v2929_v19 = vand.u32 2147483648, %v2917_v0  ;;  %v2927_v39 = vand.u32 2147483647, %v2917_v0  ;;  %vm2923_vm4 = vweird.f32 %v2917_v0 }
 0x5cd   :  { %3958 = vrcp.f32 %v2936_v29  ;;  %v2895_v10 = vpop.f32.mrf.mxu2  ;;  %v2908_v1 = vpop.f32.mrf.mxu3  ;;  %v2948_v33 = vand.u32 2147483648, %v2936_v29  ;;  %v2946_v21 = vand.u32 2147483647, %v2936_v29  ;;  %vm2942_vm3 = vweird.f32 %v2936_v29 }
 0x5ce   :  { %v3953_v25 = vpop.eup %3952  ;;  %v2930_v5 = vor.u32 1.1754944e-38, %v2929_v19  ;;  %vm2928_vm7 = vcmp.eq.f32.partialorder %v2927_v39, 8.507059e+37  ;;  %v3967_v1 = vld [vmem:[%s5124_s0 + $0x8] sm:$0xff] }
 0x5cf   :  { %v2849_v41 = vmul.f32 %v3953_v25, %v2840_v48  ;;  %v2949_v40 = vor.u32 1.1754944e-38, %v2948_v33  ;;  %vm2947_vm8 = vcmp.eq.f32.partialorder %v2946_v21, 8.507059e+37 }
 0x5d0   :  { %v3955_v54 = vpop.eup %3954 }
 0x5d1   :  { %v2956_v56 = vadd.f32 1.0, %v3955_v54  ;;  %2980 = vst [vmem:[#allocation4] sm:$0xc0] %v2849_v41 }
 0x5d2   :  { %v3957_v22 = vpop.eup %3956 }
 0x5d3   :  { %v3959_v30 = vpop.eup %3958  ;;  %v2919_v32 = vmul.f32 %v3957_v22, %v2917_v0  ;;  %3960 = vrcp.f32 %v2956_v56  ;;  %vm2924_vm1 = vweird.f32 %v3957_v22  ;;  %v2968_v60 = vand.u32 2147483648, %v2956_v56 }
 0x5d4   :  { %v2938_v38 = vmul.f32 %v3959_v30, %v2936_v29  ;;  %3962 = vtanh.f32 %v2912_v61  ;;  %vm2943_vm2 = vweird.f32 %v3959_v30  ;;  %vm2925_vm5 = vmor %vm2923_vm4, %vm2924_vm1  ;;  %vm2962_vm10 = vweird.f32 %v2956_v56 }
 0x5d5   :  { %v2920_v53 = vsub.f32 1.0, %v2919_v32  ;;  %vm2944_vm6 = vmor %vm2942_vm3, %vm2943_vm2  ;;  %v2966_v4 = vand.u32 2147483647, %v2956_v56  ;;  %v2969_v57 = vor.u32 1.1754944e-38, %v2968_v60 }
 0x5d6   :  { %v2939_v6 = vsub.f32 1.0, %v2938_v38 }
 0x5d7   :  { %v2921_v37 = vmul.f32 %v3957_v22, %v2920_v53  ;;  %vm2967_vm12 = vcmp.eq.f32.partialorder %v2966_v4, 8.507059e+37 }
 0x5d8   :  { %v2940_v44 = vmul.f32 %v3959_v30, %v2939_v6  ;;  %v2983_v23 = vld [vmem:[#allocation4] sm:$0xff] }
 0x5d9   :  { %v3961_v59 = vpop.eup %3960  ;;  %v2922_v16 = vadd.f32 %v3957_v22, %v2921_v37  ;;  %v2984_v27 = vpack.c.bf16 %v2983_v23, %v2982_v14 }
 0x5da   :  { %v2941_v36 = vadd.f32 %v3959_v30, %v2940_v44  ;;  %v2958_v24 = vmul.f32 %v3961_v59, %v2956_v56  ;;  %v3963_v34 = vpop.eup %3962  ;;  %vm2963_vm9 = vweird.f32 %v3961_v59 }
 0x5db   :  { %v2926_v18 = vsel %vm2925_vm5, %v3957_v22, %v2922_v16  ;;  %3138 = vmatmul.bf16.vlgmr.msrb.gmra.mxu1 %v2984_v27  ;;  %vm2964_vm11 = vmor %vm2962_vm10, %vm2963_vm9 }
 0x5dc   :  { %v2931_v26 = vsel %vm2928_vm7, %v2930_v5, %v2926_v18  ;;  %v2945_v42 = vsel %vm2944_vm6, %v3959_v30, %v2941_v36  ;;  %v2959_v47 = vsub.f32 1.0, %v2958_v24 }
 0x5dd   :  { %v2950_v63 = vsel %vm2947_vm8, %v2949_v40, %v2945_v42  ;;  %v2976_v62 = vmul.f32 %v3963_v34, %v2931_v26 }
 0x5de   :  { %v2975_v43 = vmul.f32 %v2973_v15, %v2950_v63  ;;  %v2960_v52 = vmul.f32 %v3961_v59, %v2959_v47 }
 0x5e0   :  { %v2977_v2 = vadd.f32 %v2976_v62, %v2975_v43  ;;  %v2961_v55 = vadd.f32 %v3961_v59, %v2960_v52 }
 0x5e2   :  { %3964 = vtanh.f32 %v2977_v2  ;;  %v2965_v8 = vsel %vm2964_vm11, %v3961_v59, %v2961_v55 }
 0x5e3   :  { %v2970_v17 = vsel %vm2967_vm12, %v2969_v57, %v2965_v8 }
 0x5e8   :  { %v3965_v7 = vpop.eup %3964 }
 0x5e9   :  { %v2979_v58 = vmul.f32 %v3965_v7, %v2970_v17 }
 0x5eb   :  { %2981 = vst [vmem:[#allocation5 + $0x8] sm:$0x3] %v2979_v58 }
 0x5f2   :  { %v3001_v20 = vld [vmem:[#allocation5 + $0x8] sm:$0xff] }
 0x5f3   :  { %v3003_v35 = vpack.c.bf16 %v3002_v31, %v3001_v20 }
 0x5f5   :  { %3076 = vmatmul.bf16.vlgmr.msrb.gmra.mxu0 %v3003_v35 }
 0x658   :  { %v3139_v46 = vpop.f32.mrf.mxu1 }
 0x660   :  { %v3141_v49 = vpop.f32.mrf.mxu1 }
 0x672   :  { %v3077_v11 = vpop.f32.mrf.mxu0 }
 0x673   :  { %v3140_v28 = vadd.f32 %v3139_v46, %v3077_v11 }
 0x675   :  { %v3148_v0 = vadd.f32 %v3709_v50, %v3140_v28 }
 0x677   :  { %v3150_v29 = vadd.f32 %v3966_v3, %v3148_v0 }
 0x679   :  { %3152 = vst.msk [vmem:[%s5134_s10] sm:$0xff] %vm191_vm0, %v3150_v29 }
 0x67a   :  { %v3079_v51 = vpop.f32.mrf.mxu0 }
 0x67b   :  { %v3142_v9 = vadd.f32 %v3141_v49, %v3079_v51 }
 0x67d   :  { %v3149_v10 = vadd.f32 %v3709_v50, %v3142_v9 }
 0x67f   :  { %v3151_v25 = vadd.f32 %v3967_v1, %v3149_v10 }
 0x681   :  { %3153 = vst.msk [vmem:[%s5134_s10 + $0x8] sm:$0xff] %vm191_vm0, %v3151_v25 }
 0x682   :  { %3158 = vsyncpa [#allocation7], 1 }
 0x683   :  { %3159 = vsyncpa [#allocation9], 1 }
 0x684   :  { %3160 = vsyncpa [#allocation12], 1 }
 0x685   :  { %3161 = vsyncpa [#allocation15], 1 }

</bundles_post_ra>
